<compile_context>
chip_gen: v5e
topology: v5e:2x2
jax: 0.10.0
libtpu: 0.0.40
codegen_flags: <defaults>
</compile_context>

<pallas_src>
import jax
import jax.numpy as jnp
from jax.experimental import pallas as pl
from jax.experimental.pallas import tpu as pltpu

EPS = 1e-5                      # nn.LayerNorm default eps
INV_SQRT2 = 0.7071067811865476  # exact (erf) GELU, matching nn.GELU() default

_VMEM_LIMIT = 32 * 1024 * 1024  # safe on v5e/v6e (128 MiB) and v7x (64 MiB)


# ------------------------------ small helpers --------------------------------

def _round_up(x, m):
    return ((x + m - 1) // m) * m


def _row_tile(M, tm_max=512):
    """Pick a row tile that is a multiple of 8 and gives >=2 row blocks when
    possible (so both v7x TensorCores get work via the 'parallel' axis)."""
    m8 = _round_up(max(M, 1), 8)
    if m8 <= 8:
        return 8, 8
    tm = min(tm_max, _round_up((m8 + 1) // 2, 8))
    return tm, _round_up(m8, tm)


def _k_tile(K, tk_max=512):
    if K <= tk_max:
        return K, K                      # single full-K block (full dim allowed)
    k_pad = _round_up(K, 128)
    for t in range(tk_max, 127, -128):
        if k_pad % t == 0:
            return t, k_pad
    return 128, k_pad


def _erf_approx(x):
    # Abramowitz & Stegun 7.1.26 (|err| < 1.5e-7): avoids depending on an erf
    # lowering inside Mosaic; only exp / div / select are needed.
    p = 0.3275911
    a1, a2, a3, a4, a5 = (0.254829592, -0.284496736, 1.421413741,
                          -1.453152027, 1.061405429)
    ax = jnp.abs(x)
    t = 1.0 / (1.0 + p * ax)
    poly = ((((a5 * t + a4) * t + a3) * t + a2) * t + a1) * t
    y = 1.0 - poly * jnp.exp(-(ax * ax))
    return jnp.where(x < 0.0, -y, y)


def _gelu_kernel(x):               # used inside Pallas kernels
    return 0.5 * x * (1.0 + _erf_approx(x * INV_SQRT2))


def _gelu_ref(x):                  # used by the pure-JAX reference
    return 0.5 * x * (1.0 + jax.lax.erf(x * INV_SQRT2))


def _layernorm_ref(x, g, b):
    mu = jnp.mean(x, axis=-1, keepdims=True)
    var = jnp.mean(jnp.square(x - mu), axis=-1, keepdims=True)
    return (x - mu) * jax.lax.rsqrt(var + EPS) * g + b


# ----------------------------- linear kernel ---------------------------------

def _linear_kernel(x_ref, w_ref, b_ref, o_ref, acc_ref):
    k = pl.program_id(1)

    @pl.when(k == 0)
    def _():
        acc_ref[...] = jnp.zeros_like(acc_ref)

    # In-kernel bf16 cast of the activation tile: x stays f32 in HBM (single
    # read, no extra cast/pad pass over the 4096-wide video features).
    acc_ref[...] += jnp.dot(x_ref[...].astype(jnp.bfloat16), w_ref[...],
                            preferred_element_type=jnp.float32)

    @pl.when(k == pl.num_programs(1) - 1)
    def _():
        o_ref[...] = acc_ref[...] + b_ref[...]


def pallas_linear(x2d, w, b):
    """y = x @ W + b, output lane-padded to a multiple of 128.

    x:(M,K) f32, W:(K,N) f32, b:(1,N) f32 -> (M, round_up(N,128)) f32 where
    columns >= N are exactly zero (weights/bias zero-padded -> lane-dense vst).
    """
    M, K = x2d.shape
    N = w.shape[1]
    Np = _round_up(N, 128)
    tm, m_pad = _row_tile(M)
    tk, k_pad = _k_tile(K)

    x_p = x2d
    if (m_pad, k_pad) != (M, K):
        x_p = jnp.pad(x2d, ((0, m_pad - M), (0, k_pad - K)))
    w_p = jnp.pad(w, ((0, k_pad - K), (0, Np - N))).astype(jnp.bfloat16)
    b_p = jnp.pad(b, ((0, 0), (0, Np - N))).astype(jnp.float32)

    out = pl.pallas_call(
        _linear_kernel,
        out_shape=jax.ShapeDtypeStruct((m_pad, Np), jnp.float32),
        grid=(m_pad // tm, k_pad // tk),
        in_specs=[pl.BlockSpec((tm, tk), lambda m, k: (m, k)),
                  pl.BlockSpec((tk, Np), lambda m, k: (k, 0)),
                  pl.BlockSpec((1, Np), lambda m, k: (0, 0))],
        out_specs=pl.BlockSpec((tm, Np), lambda m, k: (m, 0)),
        scratch_shapes=[pltpu.VMEM((tm, Np), jnp.float32)],
        compiler_params=pltpu.CompilerParams(
            dimension_semantics=("parallel", "arbitrary"),
            vmem_limit_bytes=_VMEM_LIMIT),
    )(x_p, w_p, b_p)
    return out[:M]


# ------------------------------ mixer kernel ---------------------------------

def _make_mixer_kernel(depth, d_real):
    inv_d = 1.0 / float(d_real)

    def kernel(x_ref,
               lnag, lnab, w1a, b1a, w2a, b2a,
               lnbg, lnbb, w1b, b1b, w2b, b2b,
               o_ref):
        dp = x_ref.shape[-1]
        lane = jax.lax.broadcasted_iota(jnp.int32, (1, dp), 1)
        mask = (lane < d_real).astype(jnp.float32)

        def layernorm(x, g, b):
            # Masked LayerNorm over the d_real true lanes; padded lanes (which
            # are exactly 0 on input and in g/b) stay exactly 0 on output.
            mu = jnp.sum(x, axis=-1, keepdims=True) * inv_d
            xc = (x - mu) * mask
            var = jnp.sum(xc * xc, axis=-1, keepdims=True) * inv_d
            return xc * jax.lax.rsqrt(var + EPS) * g + b

        def ff(xn, w1, b1, w2, b2):
            h = _gelu_kernel(jnp.dot(xn.astype(jnp.bfloat16), w1,
                                     preferred_element_type=jnp.float32) + b1)
            return jnp.dot(h.astype(jnp.bfloat16), w2,
                           preferred_element_type=jnp.float32) + b2

        x = x_ref[...]
        for d in range(depth):   # static depth -> unrolled; weights stay resident
            # Block A (Conv1d k=1 FF, transpose=True): residual adds the *normed* input.
            xn = layernorm(x, lnag[d], lnab[d])
            x = ff(xn, w1a[d], b1a[d], w2a[d], b2a[d]) + xn
            # Block B: standard pre-norm residual (adds the un-normed input).
            xn2 = layernorm(x, lnbg[d], lnbb[d])
            x = ff(xn2, w1b[d], b1b[d], w2b[d], b2b[d]) + x
        o_ref[...] = x

    return kernel


def _pad_mixer_weights(mp, dim, dp):
    """Zero-pad the dim axis of every mixer weight to dp lanes; matmul weights
    cast to bf16 once (hoisted out of any loop)."""
    pad_l = lambda a: jnp.pad(a, ((0, 0), (0, 0), (0, dp - dim)))   # last dim
    pad_m = lambda a: jnp.pad(a, ((0, 0), (0, dp - dim), (0, 0)))   # middle dim
    return (
        pad_l(mp["ln_a_g"]), pad_l(mp["ln_a_b"]),
        pad_m(mp["w1_a"]).astype(jnp.bfloat16), mp["b1_a"].astype(jnp.float32),
        pad_l(mp["w2_a"]).astype(jnp.bfloat16), pad_l(mp["b2_a"]),
        pad_l(mp["ln_b_g"]), pad_l(mp["ln_b_b"]),
        pad_m(mp["w1_b"]).astype(jnp.bfloat16), mp["b1_b"].astype(jnp.float32),
        pad_l(mp["w2_b"]).astype(jnp.bfloat16), pad_l(mp["b2_b"]),
    )


def pallas_mixer(x2d, weights, depth, d_real):
    """Runs the whole `linear_forward` stack. x2d:(M, DP) f32 -> (M, DP) f32."""
    M, DP = x2d.shape
    tm, m_pad = _row_tile(M)
    x_p = x2d if m_pad == M else jnp.pad(x2d, ((0, m_pad - M), (0, 0)))

    def full_spec(a):
        nd = a.ndim
        return pl.BlockSpec(a.shape, lambda i, _nd=nd: (0,) * _nd)

    out = pl.pallas_call(
        _make_mixer_kernel(depth, d_real),
        out_shape=jax.ShapeDtypeStruct((m_pad, DP), jnp.float32),
        grid=(m_pad // tm,),
        in_specs=[pl.BlockSpec((tm, DP), lambda i: (i, 0))]
                 + [full_spec(a) for a in weights],
        out_specs=pl.BlockSpec((tm, DP), lambda i: (i, 0)),
        compiler_params=pltpu.CompilerParams(
            dimension_semantics=("parallel",),
            vmem_limit_bytes=_VMEM_LIMIT),
    )(x_p, *weights)
    return out[:M]


# ----------------------------- optimized forward ------------------------------

@jax.jit
def _scoring_head_impl(p, audio, video, inv_audio, inv_video, lens):
    B, aclip, A_SEQ, A_IN = audio.shape
    _, vclip, V_SEQ, V_IN = video.shape
    clip = min(aclip, vclip)
    dim = p["cls_token"].shape[-1]
    DP = _round_up(dim, 128)
    L = A_SEQ + V_SEQ + 2
    depth = p["mixer"]["w1_a"].shape[0]

    # Fold the audio/video transform linears with linear1 (trace-time weight
    # composition; identical math).
    aw = p["audio_w"] @ p["lin1_w"]
    ab = p["audio_b"] @ p["lin1_w"] + p["lin1_b"]
    vw = p["video_w"] @ p["lin1_w"]
    vb = p["video_b"] @ p["lin1_w"] + p["lin1_b"]

    # One pallas_linear call per (modality, direction): no axis-0 concat copies
    # of the wide f32 inputs; results are already lane-padded to DP with zeros.
    a_f = pallas_linear(audio[:, :clip].reshape(-1, A_IN), aw, ab
                        ).reshape(B, clip, A_SEQ, DP)
    a_b = pallas_linear(inv_audio[:, :clip].reshape(-1, A_IN), aw, ab
                        ).reshape(B, clip, A_SEQ, DP)
    v_f = pallas_linear(video[:, :clip].reshape(-1, V_IN), vw, vb
                        ).reshape(B, clip, V_SEQ, DP)
    v_b = pallas_linear(inv_video[:, :clip].reshape(-1, V_IN), vw, vb
                        ).reshape(B, clip, V_SEQ, DP)

    cls_row = jnp.broadcast_to(jnp.pad(p["cls_token"], ((0, 0), (0, DP - dim))),
                               (B, clip, 1, DP))
    hs_row = jnp.broadcast_to(jnp.pad(p["hidden_state"], ((0, 0), (0, DP - dim))),
                              (B, clip, 1, DP))

    # The mixer is a pure per-token channel MLP (Conv1d k=1 after transpose,
    # then Linear FF): rows never interact, so the recurrent hidden-state row
    # cannot influence the cls row (or any data row), and out_hs is never read
    # by the output head.  All clips x both directions therefore fold into ONE
    # launch, with the initial hidden_state parameter standing in for the
    # (unused) recurrent hidden-state row of clips j > 0.
    seq_f = jnp.concatenate([hs_row, a_f, v_f, cls_row], axis=2)   # (B,clip,L,DP)
    seq_b = jnp.concatenate([cls_row, a_b, v_b, hs_row], axis=2)
    seq = jnp.concatenate([seq_f, seq_b], axis=0).reshape(-1, DP)  # (2*B*clip*L, DP)

    mixed = pallas_mixer(seq, _pad_mixer_weights(p["mixer"], dim, DP), depth, dim)
    mixed = mixed.reshape(2, B, clip, L, DP)
    cls_f = mixed[0, :, :, L - 1, :dim]                            # (B, clip, dim)
    cls_b = mixed[1, :, :, 0, :dim]

    # hidden_linear + masked per-sample mean + output head: micro-matmuls, left
    # to XLA (a dedicated pallas_call would cost more than the compute).
    cls_f = cls_f @ p["hid_w"] + p["hid_b"]
    cls_b = cls_b @ p["hid_w"] + p["hid_b"]

    lens_c = jnp.minimum(lens, clip)
    idx = jnp.arange(clip, dtype=jnp.int32)
    fwd_mask = (idx[None, :] < lens_c[:, None]).astype(jnp.float32)
    bwd_mask = (idx[None, :] >= (clip - lens_c)[:, None]).astype(jnp.float32)
    denom = jnp.maximum(lens_c, 1).astype(jnp.float32)[:, None]
    fwd_mean = (cls_f * fwd_mask[..., None]).sum(axis=1) / denom
    bwd_mean = (cls_b * bwd_mask[..., None]).sum(axis=1) / denom
    final = (fwd_mean + bwd_mean) * 0.5                            # (B, dim)

    out = final @ p["out_w"] + p["out_b"]                          # (B, num_scores)
    if out.shape[1] == 1:
        out = jnp.squeeze(out, axis=1)
    return out
    # TODO(synk): self.layer_norm is defined in __init__ but never used in
    # forward; nn.Dropout is an inference no-op.


def scoring_head_forward_pallas(p, audio, video, inv_audio, inv_video,
                                audio_len, video_len):
    lens = jnp.minimum(jnp.asarray(audio_len, jnp.int32),
                       jnp.asarray(video_len, jnp.int32))
    return _scoring_head_impl(p, audio, video, inv_audio, inv_video, lens)


# ------------------------- reference (pure JAX, f32) --------------------------

def _ref_mixer(x, mp):
    depth = mp["w1_a"].shape[0]
    for d in range(depth):
        xn = _layernorm_ref(x, mp["ln_a_g"][d], mp["ln_a_b"][d])
        h = _gelu_ref(xn @ mp["w1_a"][d] + mp["b1_a"][d])
        x = h @ mp["w2_a"][d] + mp["b2_a"][d] + xn
        xn2 = _layernorm_ref(x, mp["ln_b_g"][d], mp["ln_b_b"][d])
        h2 = _gelu_ref(xn2 @ mp["w1_b"][d] + mp["b1_b"][d])
        x = h2 @ mp["w2_b"][d] + mp["b2_b"][d] + x
    return x


def scoring_head_forward_ref(p, audio, video, inv_audio, inv_video,
                             audio_len, video_len):
    B, aclip = audio.shape[:2]
    vclip = video.shape[1]
    clip = min(aclip, vclip)
    dim = p["cls_token"].shape[-1]

    def model_fwd(x, hidden_state, first_frame, back):
        x = x @ p["lin1_w"] + p["lin1_b"]
        Bx = x.shape[0]
        cls = jnp.broadcast_to(p["cls_token"][None], (Bx, 1, dim))
        if first_frame:
            hidden_state = jnp.broadcast_to(p["hidden_state"][None], (Bx, 1, dim))
        cat = (jnp.concatenate([cls, x, hidden_state], axis=1) if back
               else jnp.concatenate([hidden_state, x, cls], axis=1))
        out = _ref_mixer(cat, p["mixer"])
        if back:
            out_cls, out_hs = out[:, 0:1], out[:, -1:]
        else:
            out_hs, out_cls = out[:, 0:1], out[:, -1:]
        out_cls = out_cls @ p["hid_w"] + p["hid_b"]
        return out_hs, out_cls

    hidden_states, back_hidden_states = [], []
    hs = bhs = None
    for j in range(clip):
        a = audio[:, j] @ p["audio_w"] + p["audio_b"]
        v = video[:, j] @ p["video_w"] + p["video_b"]
        feat = jnp.concatenate([a, v], axis=1)
        ba = inv_audio[:, j] @ p["audio_w"] + p["audio_b"]
        bv = inv_video[:, j] @ p["video_w"] + p["video_b"]
        bfeat = jnp.concatenate([ba, bv], axis=1)
        hs, cls_ = model_fwd(feat, hs, j == 0, False)
        bhs, bcls = model_fwd(bfeat, bhs, j == 0, True)
        hidden_states.append(cls_)
        back_hidden_states.insert(0, bcls)

    finals = []
    for i in range(B):
        li = int(min(int(audio_len[i]), int(video_len[i])))
        cl = jnp.concatenate(hidden_states[:li], axis=1)[i:i + 1]
        bk = jnp.concatenate(back_hidden_states[:li], axis=1)[i:i + 1]
        finals.append((jnp.mean(cl, axis=1) + jnp.mean(bk, axis=1)) / 2.0)
    final = jnp.concatenate(finals, axis=0)
    out = final @ p["out_w"] + p["out_b"]
    return jnp.squeeze(out, axis=1)


# ------------------------------ parameter init --------------------------------

def init_params(key, depth, input_dim, dim, num_scores, audio_in=768, video_in=4096):
    h = dim * 4
    ks = iter(jax.random.split(key, 64))

    def rnd(shape, scale=0.05):
        return scale * jax.random.normal(next(ks), shape, jnp.float32)

    mixer = {
        "ln_a_g": jnp.ones((depth, 1, dim), jnp.float32),
        "ln_a_b": jnp.zeros((depth, 1, dim), jnp.float32),
        "w1_a": rnd((depth, dim, h)), "b1_a": rnd((depth, 1, h)),
        "w2_a": rnd((depth, h, dim)), "b2_a": rnd((depth, 1, dim)),
        "ln_b_g": jnp.ones((depth, 1, dim), jnp.float32),
        "ln_b_b": jnp.zeros((depth, 1, dim), jnp.float32),
        "w1_b": rnd((depth, dim, h)), "b1_b": rnd((depth, 1, h)),
        "w2_b": rnd((depth, h, dim)), "b2_b": rnd((depth, 1, dim)),
    }
    return {
        "hidden_state": rnd((1, dim), 1.0),
        "cls_token": rnd((1, dim), 1.0),
        "lin1_w": rnd((input_dim, dim)), "lin1_b": rnd((1, dim)),
        "hid_w": rnd((dim, dim)), "hid_b": rnd((1, dim)),
        "out_w": rnd((dim, num_scores)), "out_b": rnd((1, num_scores)),
        "audio_w": rnd((audio_in, input_dim)), "audio_b": rnd((1, input_dim)),
        "video_w": rnd((video_in, input_dim)), "video_b": rnd((1, input_dim)),
        "mixer": mixer,
    }


# ----------------------------------- main --------------------------------------

if __name__ == "__main__":
    key = jax.random.PRNGKey(0)
    B, CLIP = 2, 2
    A_SEQ, V_SEQ = 3, 2
    AUDIO_IN, VIDEO_IN = 768, 4096       # fixed by the module's transform linears
    INPUT_DIM, DIM, DEPTH, NUM_SCORES = 16, 32, 2, 1

    k0, k1, k2, k3, kp = jax.random.split(key, 5)
    audio = jax.random.normal(k0, (B, CLIP, A_SEQ, AUDIO_IN), jnp.float32)
    video = jax.random.normal(k1, (B, CLIP, V_SEQ, VIDEO_IN), jnp.float32)
    inv_audio = jax.random.normal(k2, (B, CLIP, A_SEQ, AUDIO_IN), jnp.float32)
    inv_video = jax.random.normal(k3, (B, CLIP, V_SEQ, VIDEO_IN), jnp.float32)
    audio_len = [2, 1]
    video_len = [2, 2]

    params = init_params(kp, DEPTH, INPUT_DIM, DIM, NUM_SCORES, AUDIO_IN, VIDEO_IN)

    out = scoring_head_forward_pallas(params, audio, video, inv_audio, inv_video,
                                      audio_len, video_len)
    out = jax.block_until_ready(out)
    assert out.shape == (B,), out.shape

    ref = jax.block_until_ready(
        scoring_head_forward_ref(params, audio, video, inv_audio, inv_video,
                                 audio_len, video_len))
    # bf16 matmul operands (f32 accumulate) vs pure-f32 reference -> loosened tol.
    assert jnp.allclose(out, ref, rtol=5e-2, atol=2e-2), (out, ref)

    print("KERNEL_OK")
</pallas_src>

<mosaic_0001>
module attributes {stable_mosaic.version = 11 : i64} {
  func.func @_linear_kernel(%arg0: i32, %arg1: i32, %arg2: memref<8x512xf32, #tpu.memory_space<vmem>>, %arg3: memref<512x128xbf16, #tpu.memory_space<vmem>>, %arg4: memref<1x128xf32, #tpu.memory_space<vmem>>, %arg5: memref<8x128xf32, #tpu.memory_space<vmem>>, %arg6: memref<8x128xf32, #tpu.memory_space<vmem>>) attributes {dimension_semantics = [#tpu.dimension_semantics<parallel>, #tpu.dimension_semantics<arbitrary>], iteration_bounds = array<i64: 1, 8>, scalar_prefetch = 0 : i64, scratch_operands = 1 : i64, tpu.core_type = #tpu.core_type<tc>, window_params = [{transform_indices = @transform_0, window_bounds = array<i64: 8, 512>}, {transform_indices = @transform_1, window_bounds = array<i64: 512, 128>}, {pipeline_mode = #tpu.pipeline_mode<synchronous>, transform_indices = @transform_2, window_bounds = array<i64: 1, 128>}, {transform_indices = @transform_3, window_bounds = array<i64: 8, 128>}]} {
    %c0_i32 = arith.constant 0 : i32
    %0 = arith.cmpi eq, %arg1, %c0_i32 : i32
    %1 = arith.extui %0 : i1 to i32
    %c0_i32_0 = arith.constant 0 : i32
    %2 = arith.cmpi ne, %1, %c0_i32_0 : i32
    scf.if %2 {
      %cst_9 = arith.constant 0.000000e+00 : f32
      %13 = vector.broadcast %cst_9 : f32 to vector<8x128xf32>
      %c0_10 = arith.constant 0 : index
      %c0_11 = arith.constant 0 : index
      %14 = vector.load %arg6[%c0_10, %c0_11] : memref<8x128xf32, #tpu.memory_space<vmem>>, vector<8x128xf32>
      tpu.vector_store %arg6[%c0_10, %c0_11], %13 {strides = array<i32>} : memref<8x128xf32, #tpu.memory_space<vmem>>, vector<8x128xf32>,
    } else {
    }
    %c0 = arith.constant 0 : index
    %c0_1 = arith.constant 0 : index
    %3 = vector.load %arg6[%c0, %c0_1] : memref<8x128xf32, #tpu.memory_space<vmem>>, vector<8x128xf32>
    %c0_2 = arith.constant 0 : index
    %c0_3 = arith.constant 0 : index
    %4 = vector.load %arg2[%c0_2, %c0_3] : memref<8x512xf32, #tpu.memory_space<vmem>>, vector<8x512xf32>
    %5 = arith.truncf %4 : vector<8x512xf32> to vector<8x512xbf16>
    %c0_4 = arith.constant 0 : index
    %c0_5 = arith.constant 0 : index
    %6 = vector.load %arg3[%c0_4, %c0_5] : memref<512x128xbf16, #tpu.memory_space<vmem>>, vector<512x128xbf16>
    %cst = arith.constant dense<0.000000e+00> : vector<8x128xf32>
    %7 = tpu.matmul %5, %6, %cst {dimension_numbers = #tpu.dot_dimension_numbers<[1], [0], [0], [1], [0, 0, 1, 1], [], []>} : vector<8x512xbf16>, vector<512x128xbf16>, vector<8x128xf32> -> vector<8x128xf32>
    %8 = arith.addf %3, %7 : vector<8x128xf32>
    %c0_6 = arith.constant 0 : index
    %c0_7 = arith.constant 0 : index
    %9 = vector.load %arg6[%c0_6, %c0_7] : memref<8x128xf32, #tpu.memory_space<vmem>>, vector<8x128xf32>
    tpu.vector_store %arg6[%c0_6, %c0_7], %8 {strides = array<i32>} : memref<8x128xf32, #tpu.memory_space<vmem>>, vector<8x128xf32>,
    %c7_i32 = arith.constant 7 : i32
    %10 = arith.cmpi eq, %arg1, %c7_i32 : i32
    %11 = arith.extui %10 : i1 to i32
    %c0_i32_8 = arith.constant 0 : i32
    %12 = arith.cmpi ne, %11, %c0_i32_8 : i32
    scf.if %12 {
      %c0_9 = arith.constant 0 : index
      %c0_10 = arith.constant 0 : index
      %13 = vector.load %arg6[%c0_9, %c0_10] : memref<8x128xf32, #tpu.memory_space<vmem>>, vector<8x128xf32>
      %c0_11 = arith.constant 0 : index
      %c0_12 = arith.constant 0 : index
      %14 = vector.load %arg4[%c0_11, %c0_12] : memref<1x128xf32, #tpu.memory_space<vmem>>, vector<1x128xf32>
      %15 = vector.broadcast %14 : vector<1x128xf32> to vector<8x128xf32>
      %16 = arith.addf %13, %15 : vector<8x128xf32>
      %c0_13 = arith.constant 0 : index
      %c0_14 = arith.constant 0 : index
      %17 = vector.load %arg5[%c0_13, %c0_14] : memref<8x128xf32, #tpu.memory_space<vmem>>, vector<8x128xf32>
      tpu.vector_store %arg5[%c0_13, %c0_14], %16 {strides = array<i32>} : memref<8x128xf32, #tpu.memory_space<vmem>>, vector<8x128xf32>,
    } else {
    }
    return
  }
  func.func @transform_0(%arg0: i32, %arg1: i32) -> (i32, i32) {
    %c0_i32 = arith.constant 0 : i32
    return %arg0, %arg1 : i32, i32
  }
  func.func @transform_1(%arg0: i32, %arg1: i32) -> (i32, i32) {
    %c0_i32 = arith.constant 0 : i32
    %c0_i32_0 = arith.constant 0 : i32
    return %arg1, %c0_i32 : i32, i32
  }
  func.func @transform_2(%arg0: i32, %arg1: i32) -> (i32, i32) {
    %c0_i32 = arith.constant 0 : i32
    %c0_i32_0 = arith.constant 0 : i32
    %c0_i32_1 = arith.constant 0 : i32
    return %c0_i32, %c0_i32_0 : i32, i32
  }
  func.func @transform_3(%arg0: i32, %arg1: i32) -> (i32, i32) {
    %c0_i32 = arith.constant 0 : i32
    %c0_i32_0 = arith.constant 0 : i32
    return %arg0, %c0_i32 : i32, i32
  }
}

module attributes {stable_mosaic.version = 11 : i64} {
  func.func @_linear_kernel(%arg0: i32, %arg1: i32, %arg2: memref<8x384xf32, #tpu.memory_space<vmem>>, %arg3: memref<384x128xbf16, #tpu.memory_space<vmem>>, %arg4: memref<1x128xf32, #tpu.memory_space<vmem>>, %arg5: memref<8x128xf32, #tpu.memory_space<vmem>>, %arg6: memref<8x128xf32, #tpu.memory_space<vmem>>) attributes {dimension_semantics = [#tpu.dimension_semantics<parallel>, #tpu.dimension_semantics<arbitrary>], iteration_bounds = array<i64: 2, 2>, scalar_prefetch = 0 : i64, scratch_operands = 1 : i64, tpu.core_type = #tpu.core_type<tc>, window_params = [{transform_indices = @transform_0, window_bounds = array<i64: 8, 384>}, {transform_indices = @transform_1, window_bounds = array<i64: 384, 128>}, {pipeline_mode = #tpu.pipeline_mode<synchronous>, transform_indices = @transform_2, window_bounds = array<i64: 1, 128>}, {transform_indices = @transform_3, window_bounds = array<i64: 8, 128>}]} {
    %c0_i32 = arith.constant 0 : i32
    %0 = arith.cmpi eq, %arg1, %c0_i32 : i32
    %1 = arith.extui %0 : i1 to i32
    %c0_i32_0 = arith.constant 0 : i32
    %2 = arith.cmpi ne, %1, %c0_i32_0 : i32
    scf.if %2 {
      %cst_9 = arith.constant 0.000000e+00 : f32
      %13 = vector.broadcast %cst_9 : f32 to vector<8x128xf32>
      %c0_10 = arith.constant 0 : index
      %c0_11 = arith.constant 0 : index
      %14 = vector.load %arg6[%c0_10, %c0_11] : memref<8x128xf32, #tpu.memory_space<vmem>>, vector<8x128xf32>
      tpu.vector_store %arg6[%c0_10, %c0_11], %13 {strides = array<i32>} : memref<8x128xf32, #tpu.memory_space<vmem>>, vector<8x128xf32>,
    } else {
    }
    %c0 = arith.constant 0 : index
    %c0_1 = arith.constant 0 : index
    %3 = vector.load %arg6[%c0, %c0_1] : memref<8x128xf32, #tpu.memory_space<vmem>>, vector<8x128xf32>
    %c0_2 = arith.constant 0 : index
    %c0_3 = arith.constant 0 : index
    %4 = vector.load %arg2[%c0_2, %c0_3] : memref<8x384xf32, #tpu.memory_space<vmem>>, vector<8x384xf32>
    %5 = arith.truncf %4 : vector<8x384xf32> to vector<8x384xbf16>
    %c0_4 = arith.constant 0 : index
    %c0_5 = arith.constant 0 : index
    %6 = vector.load %arg3[%c0_4, %c0_5] : memref<384x128xbf16, #tpu.memory_space<vmem>>, vector<384x128xbf16>
    %cst = arith.constant dense<0.000000e+00> : vector<8x128xf32>
    %7 = tpu.matmul %5, %6, %cst {dimension_numbers = #tpu.dot_dimension_numbers<[1], [0], [0], [1], [0, 0, 1, 1], [], []>} : vector<8x384xbf16>, vector<384x128xbf16>, vector<8x128xf32> -> vector<8x128xf32>
    %8 = arith.addf %3, %7 : vector<8x128xf32>
    %c0_6 = arith.constant 0 : index
    %c0_7 = arith.constant 0 : index
    %9 = vector.load %arg6[%c0_6, %c0_7] : memref<8x128xf32, #tpu.memory_space<vmem>>, vector<8x128xf32>
    tpu.vector_store %arg6[%c0_6, %c0_7], %8 {strides = array<i32>} : memref<8x128xf32, #tpu.memory_space<vmem>>, vector<8x128xf32>,
    %c1_i32 = arith.constant 1 : i32
    %10 = arith.cmpi eq, %arg1, %c1_i32 : i32
    %11 = arith.extui %10 : i1 to i32
    %c0_i32_8 = arith.constant 0 : i32
    %12 = arith.cmpi ne, %11, %c0_i32_8 : i32
    scf.if %12 {
      %c0_9 = arith.constant 0 : index
      %c0_10 = arith.constant 0 : index
      %13 = vector.load %arg6[%c0_9, %c0_10] : memref<8x128xf32, #tpu.memory_space<vmem>>, vector<8x128xf32>
      %c0_11 = arith.constant 0 : index
      %c0_12 = arith.constant 0 : index
      %14 = vector.load %arg4[%c0_11, %c0_12] : memref<1x128xf32, #tpu.memory_space<vmem>>, vector<1x128xf32>
      %15 = vector.broadcast %14 : vector<1x128xf32> to vector<8x128xf32>
      %16 = arith.addf %13, %15 : vector<8x128xf32>
      %c0_13 = arith.constant 0 : index
      %c0_14 = arith.constant 0 : index
      %17 = vector.load %arg5[%c0_13, %c0_14] : memref<8x128xf32, #tpu.memory_space<vmem>>, vector<8x128xf32>
      tpu.vector_store %arg5[%c0_13, %c0_14], %16 {strides = array<i32>} : memref<8x128xf32, #tpu.memory_space<vmem>>, vector<8x128xf32>,
    } else {
    }
    return
  }
  func.func @transform_0(%arg0: i32, %arg1: i32) -> (i32, i32) {
    %c0_i32 = arith.constant 0 : i32
    return %arg0, %arg1 : i32, i32
  }
  func.func @transform_1(%arg0: i32, %arg1: i32) -> (i32, i32) {
    %c0_i32 = arith.constant 0 : i32
    %c0_i32_0 = arith.constant 0 : i32
    return %arg1, %c0_i32 : i32, i32
  }
  func.func @transform_2(%arg0: i32, %arg1: i32) -> (i32, i32) {
    %c0_i32 = arith.constant 0 : i32
    %c0_i32_0 = arith.constant 0 : i32
    %c0_i32_1 = arith.constant 0 : i32
    return %c0_i32, %c0_i32_0 : i32, i32
  }
  func.func @transform_3(%arg0: i32, %arg1: i32) -> (i32, i32) {
    %c0_i32 = arith.constant 0 : i32
    %c0_i32_0 = arith.constant 0 : i32
    return %arg0, %c0_i32 : i32, i32
  }
}

module attributes {stable_mosaic.version = 11 : i64} {
  func.func @kernel(%arg0: i32, %arg1: memref<32x128xf32, #tpu.memory_space<vmem>>, %arg2: memref<2x1x128xf32, #tpu.memory_space<vmem>>, %arg3: memref<2x1x128xf32, #tpu.memory_space<vmem>>, %arg4: memref<2x128x128xbf16, #tpu.memory_space<vmem>>, %arg5: memref<2x1x128xf32, #tpu.memory_space<vmem>>, %arg6: memref<2x128x128xbf16, #tpu.memory_space<vmem>>, %arg7: memref<2x1x128xf32, #tpu.memory_space<vmem>>, %arg8: memref<2x1x128xf32, #tpu.memory_space<vmem>>, %arg9: memref<2x1x128xf32, #tpu.memory_space<vmem>>, %arg10: memref<2x128x128xbf16, #tpu.memory_space<vmem>>, %arg11: memref<2x1x128xf32, #tpu.memory_space<vmem>>, %arg12: memref<2x128x128xbf16, #tpu.memory_space<vmem>>, %arg13: memref<2x1x128xf32, #tpu.memory_space<vmem>>, %arg14: memref<32x128xf32, #tpu.memory_space<vmem>>) attributes {dimension_semantics = [#tpu.dimension_semantics<parallel>], iteration_bounds = array<i64: 2>, scalar_prefetch = 0 : i64, scratch_operands = 0 : i64, tpu.core_type = #tpu.core_type<tc>, window_params = [{transform_indices = @transform_0, window_bounds = array<i64: 32, 128>}, {pipeline_mode = #tpu.pipeline_mode<synchronous>, transform_indices = @transform_1, window_bounds = array<i64: 2, 1, 128>}, {pipeline_mode = #tpu.pipeline_mode<synchronous>, transform_indices = @transform_2, window_bounds = array<i64: 2, 1, 128>}, {pipeline_mode = #tpu.pipeline_mode<synchronous>, transform_indices = @transform_3, window_bounds = array<i64: 2, 128, 128>}, {pipeline_mode = #tpu.pipeline_mode<synchronous>, transform_indices = @transform_4, window_bounds = array<i64: 2, 1, 128>}, {pipeline_mode = #tpu.pipeline_mode<synchronous>, transform_indices = @transform_5, window_bounds = array<i64: 2, 128, 128>}, {pipeline_mode = #tpu.pipeline_mode<synchronous>, transform_indices = @transform_6, window_bounds = array<i64: 2, 1, 128>}, {pipeline_mode = #tpu.pipeline_mode<synchronous>, transform_indices = @transform_7, window_bounds = array<i64: 2, 1, 128>}, {pipeline_mode = #tpu.pipeline_mode<synchronous>, transform_indices = @transform_8, window_bounds = array<i64: 2, 1, 128>}, {pipeline_mode = #tpu.pipeline_mode<synchronous>, transform_indices = @transform_9, window_bounds = array<i64: 2, 128, 128>}, {pipeline_mode = #tpu.pipeline_mode<synchronous>, transform_indices = @transform_10, window_bounds = array<i64: 2, 1, 128>}, {pipeline_mode = #tpu.pipeline_mode<synchronous>, transform_indices = @transform_11, window_bounds = array<i64: 2, 128, 128>}, {pipeline_mode = #tpu.pipeline_mode<synchronous>, transform_indices = @transform_12, window_bounds = array<i64: 2, 1, 128>}, {transform_indices = @transform_13, window_bounds = array<i64: 32, 128>}]} {
    %0 = tpu.iota {dimensions = array<i32: 1>} : vector<1x128xi32>
    %c32_i32 = arith.constant 32 : i32
    %1 = vector.broadcast %c32_i32 : i32 to vector<1x128xi32>
    %2 = arith.cmpi slt, %0, %1 : vector<1x128xi32>
    %3 = arith.extui %2 : vector<1x128xi1> to vector<1x128xi32>
    %4 = arith.sitofp %3 : vector<1x128xi32> to vector<1x128xf32>
    %c0 = arith.constant 0 : index
    %c0_0 = arith.constant 0 : index
    %5 = vector.load %arg1[%c0, %c0_0] : memref<32x128xf32, #tpu.memory_space<vmem>>, vector<32x128xf32>
    %c0_1 = arith.constant 0 : index
    %c0_2 = arith.constant 0 : index
    %c0_3 = arith.constant 0 : index
    %6 = vector.load %arg2[%c0_1, %c0_2, %c0_3] : memref<2x1x128xf32, #tpu.memory_space<vmem>>, vector<1x1x128xf32>
    %7 = vector.shape_cast %6 : vector<1x1x128xf32> to vector<1x128xf32>
    %c0_4 = arith.constant 0 : index
    %c0_5 = arith.constant 0 : index
    %c0_6 = arith.constant 0 : index
    %8 = vector.load %arg3[%c0_4, %c0_5, %c0_6] : memref<2x1x128xf32, #tpu.memory_space<vmem>>, vector<1x1x128xf32>
    %9 = vector.shape_cast %8 : vector<1x1x128xf32> to vector<1x128xf32>
    %cst = arith.constant dense<0.000000e+00> : vector<32xf32>
    %10 = vector.multi_reduction <add>, %5, %cst [1] : vector<32x128xf32> to vector<32xf32>
    %11 = vector.shape_cast %10 : vector<32xf32> to vector<32x1xf32>
    %cst_7 = arith.constant 3.125000e-02 : f32
    %12 = vector.broadcast %cst_7 : f32 to vector<32x1xf32>
    %13 = arith.mulf %11, %12 : vector<32x1xf32>
    %14 = vector.broadcast %13 : vector<32x1xf32> to vector<32x128xf32>
    %15 = arith.subf %5, %14 : vector<32x128xf32>
    %16 = vector.broadcast %4 : vector<1x128xf32> to vector<32x128xf32>
    %17 = arith.mulf %15, %16 : vector<32x128xf32>
    %18 = arith.mulf %17, %17 : vector<32x128xf32>
    %cst_8 = arith.constant dense<0.000000e+00> : vector<32xf32>
    %19 = vector.multi_reduction <add>, %18, %cst_8 [1] : vector<32x128xf32> to vector<32xf32>
    %20 = vector.shape_cast %19 : vector<32xf32> to vector<32x1xf32>
    %cst_9 = arith.constant 3.125000e-02 : f32
    %21 = vector.broadcast %cst_9 : f32 to vector<32x1xf32>
    %22 = arith.mulf %20, %21 : vector<32x1xf32>
    %cst_10 = arith.constant 9.99999974E-6 : f32
    %23 = vector.broadcast %cst_10 : f32 to vector<32x1xf32>
    %24 = arith.addf %22, %23 : vector<32x1xf32>
    %25 = math.rsqrt %24 : vector<32x1xf32>
    %26 = vector.broadcast %25 : vector<32x1xf32> to vector<32x128xf32>
    %27 = arith.mulf %17, %26 : vector<32x128xf32>
    %28 = vector.broadcast %7 : vector<1x128xf32> to vector<32x128xf32>
    %29 = arith.mulf %27, %28 : vector<32x128xf32>
    %30 = vector.broadcast %9 : vector<1x128xf32> to vector<32x128xf32>
    %31 = arith.addf %29, %30 : vector<32x128xf32>
    %c0_11 = arith.constant 0 : index
    %c0_12 = arith.constant 0 : index
    %c0_13 = arith.constant 0 : index
    %32 = vector.load %arg4[%c0_11, %c0_12, %c0_13] : memref<2x128x128xbf16, #tpu.memory_space<vmem>>, vector<1x128x128xbf16>
    %33 = vector.shape_cast %32 : vector<1x128x128xbf16> to vector<128x128xbf16>
    %c0_14 = arith.constant 0 : index
    %c0_15 = arith.constant 0 : index
    %c0_16 = arith.constant 0 : index
    %34 = vector.load %arg5[%c0_14, %c0_15, %c0_16] : memref<2x1x128xf32, #tpu.memory_space<vmem>>, vector<1x1x128xf32>
    %35 = vector.shape_cast %34 : vector<1x1x128xf32> to vector<1x128xf32>
    %c0_17 = arith.constant 0 : index
    %c0_18 = arith.constant 0 : index
    %c0_19 = arith.constant 0 : index
    %36 = vector.load %arg6[%c0_17, %c0_18, %c0_19] : memref<2x128x128xbf16, #tpu.memory_space<vmem>>, vector<1x128x128xbf16>
    %37 = vector.shape_cast %36 : vector<1x128x128xbf16> to vector<128x128xbf16>
    %c0_20 = arith.constant 0 : index
    %c0_21 = arith.constant 0 : index
    %c0_22 = arith.constant 0 : index
    %38 = vector.load %arg7[%c0_20, %c0_21, %c0_22] : memref<2x1x128xf32, #tpu.memory_space<vmem>>, vector<1x1x128xf32>
    %39 = vector.shape_cast %38 : vector<1x1x128xf32> to vector<1x128xf32>
    %40 = arith.truncf %31 : vector<32x128xf32> to vector<32x128xbf16>
    %cst_23 = arith.constant dense<0.000000e+00> : vector<32x128xf32>
    %41 = tpu.matmul %40, %33, %cst_23 {dimension_numbers = #tpu.dot_dimension_numbers<[1], [0], [0], [1], [0, 0, 1, 1], [], []>} : vector<32x128xbf16>, vector<128x128xbf16>, vector<32x128xf32> -> vector<32x128xf32>
    %42 = vector.broadcast %35 : vector<1x128xf32> to vector<32x128xf32>
    %43 = arith.addf %41, %42 : vector<32x128xf32>
    %cst_24 = arith.constant 5.000000e-01 : f32
    %44 = vector.broadcast %cst_24 : f32 to vector<32x128xf32>
    %45 = arith.mulf %44, %43 : vector<32x128xf32>
    %cst_25 = arith.constant 0.707106769 : f32
    %46 = vector.broadcast %cst_25 : f32 to vector<32x128xf32>
    %47 = arith.mulf %43, %46 : vector<32x128xf32>
    %48 = math.absf %47 : vector<32x128xf32>
    %cst_26 = arith.constant 0.327591091 : f32
    %49 = vector.broadcast %cst_26 : f32 to vector<32x128xf32>
    %50 = arith.mulf %49, %48 : vector<32x128xf32>
    %cst_27 = arith.constant 1.000000e+00 : f32
    %51 = vector.broadcast %cst_27 : f32 to vector<32x128xf32>
    %52 = arith.addf %51, %50 : vector<32x128xf32>
    %cst_28 = arith.constant 1.000000e+00 : f32
    %53 = vector.broadcast %cst_28 : f32 to vector<32x128xf32>
    %54 = arith.divf %53, %52 : vector<32x128xf32>
    %cst_29 = arith.constant 1.06140542 : f32
    %55 = vector.broadcast %cst_29 : f32 to vector<32x128xf32>
    %56 = arith.mulf %55, %54 : vector<32x128xf32>
    %cst_30 = arith.constant -1.45315206 : f32
    %57 = vector.broadcast %cst_30 : f32 to vector<32x128xf32>
    %58 = arith.addf %56, %57 : vector<32x128xf32>
    %59 = arith.mulf %58, %54 : vector<32x128xf32>
    %cst_31 = arith.constant 1.42141378 : f32
    %60 = vector.broadcast %cst_31 : f32 to vector<32x128xf32>
    %61 = arith.addf %59, %60 : vector<32x128xf32>
    %62 = arith.mulf %61, %54 : vector<32x128xf32>
    %cst_32 = arith.constant -0.284496725 : f32
    %63 = vector.broadcast %cst_32 : f32 to vector<32x128xf32>
    %64 = arith.addf %62, %63 : vector<32x128xf32>
    %65 = arith.mulf %64, %54 : vector<32x128xf32>
    %cst_33 = arith.constant 0.254829586 : f32
    %66 = vector.broadcast %cst_33 : f32 to vector<32x128xf32>
    %67 = arith.addf %65, %66 : vector<32x128xf32>
    %68 = arith.mulf %67, %54 : vector<32x128xf32>
    %69 = arith.mulf %48, %48 : vector<32x128xf32>
    %cst_34 = arith.constant 0.000000e+00 : f32
    %70 = vector.broadcast %cst_34 : f32 to vector<32x128xf32>
    %71 = arith.subf %70, %69 : vector<32x128xf32>
    %72 = math.exp %71 : vector<32x128xf32>
    %73 = arith.mulf %68, %72 : vector<32x128xf32>
    %cst_35 = arith.constant 1.000000e+00 : f32
    %74 = vector.broadcast %cst_35 : f32 to vector<32x128xf32>
    %75 = arith.subf %74, %73 : vector<32x128xf32>
    %cst_36 = arith.constant 0.000000e+00 : f32
    %76 = vector.broadcast %cst_36 : f32 to vector<32x128xf32>
    %77 = arith.cmpf olt, %47, %76 : vector<32x128xf32>
    %cst_37 = arith.constant 0.000000e+00 : f32
    %78 = vector.broadcast %cst_37 : f32 to vector<32x128xf32>
    %79 = arith.subf %78, %75 : vector<32x128xf32>
    %80 = arith.select %77, %79, %75 : vector<32x128xi1>, vector<32x128xf32>
    %cst_38 = arith.constant 1.000000e+00 : f32
    %81 = vector.broadcast %cst_38 : f32 to vector<32x128xf32>
    %82 = arith.addf %81, %80 : vector<32x128xf32>
    %83 = arith.mulf %45, %82 : vector<32x128xf32>
    %84 = arith.truncf %83 : vector<32x128xf32> to vector<32x128xbf16>
    %cst_39 = arith.constant dense<0.000000e+00> : vector<32x128xf32>
    %85 = tpu.matmul %84, %37, %cst_39 {dimension_numbers = #tpu.dot_dimension_numbers<[1], [0], [0], [1], [0, 0, 1, 1], [], []>} : vector<32x128xbf16>, vector<128x128xbf16>, vector<32x128xf32> -> vector<32x128xf32>
    %86 = vector.broadcast %39 : vector<1x128xf32> to vector<32x128xf32>
    %87 = arith.addf %85, %86 : vector<32x128xf32>
    %88 = arith.addf %87, %31 : vector<32x128xf32>
    %c0_40 = arith.constant 0 : index
    %c0_41 = arith.constant 0 : index
    %c0_42 = arith.constant 0 : index
    %89 = vector.load %arg8[%c0_40, %c0_41, %c0_42] : memref<2x1x128xf32, #tpu.memory_space<vmem>>, vector<1x1x128xf32>
    %90 = vector.shape_cast %89 : vector<1x1x128xf32> to vector<1x128xf32>
    %c0_43 = arith.constant 0 : index
    %c0_44 = arith.constant 0 : index
    %c0_45 = arith.constant 0 : index
    %91 = vector.load %arg9[%c0_43, %c0_44, %c0_45] : memref<2x1x128xf32, #tpu.memory_space<vmem>>, vector<1x1x128xf32>
    %92 = vector.shape_cast %91 : vector<1x1x128xf32> to vector<1x128xf32>
    %cst_46 = arith.constant dense<0.000000e+00> : vector<32xf32>
    %93 = vector.multi_reduction <add>, %88, %cst_46 [1] : vector<32x128xf32> to vector<32xf32>
    %94 = vector.shape_cast %93 : vector<32xf32> to vector<32x1xf32>
    %cst_47 = arith.constant 3.125000e-02 : f32
    %95 = vector.broadcast %cst_47 : f32 to vector<32x1xf32>
    %96 = arith.mulf %94, %95 : vector<32x1xf32>
    %97 = vector.broadcast %96 : vector<32x1xf32> to vector<32x128xf32>
    %98 = arith.subf %88, %97 : vector<32x128xf32>
    %99 = vector.broadcast %4 : vector<1x128xf32> to vector<32x128xf32>
    %100 = arith.mulf %98, %99 : vector<32x128xf32>
    %101 = arith.mulf %100, %100 : vector<32x128xf32>
    %cst_48 = arith.constant dense<0.000000e+00> : vector<32xf32>
    %102 = vector.multi_reduction <add>, %101, %cst_48 [1] : vector<32x128xf32> to vector<32xf32>
    %103 = vector.shape_cast %102 : vector<32xf32> to vector<32x1xf32>
    %cst_49 = arith.constant 3.125000e-02 : f32
    %104 = vector.broadcast %cst_49 : f32 to vector<32x1xf32>
    %105 = arith.mulf %103, %104 : vector<32x1xf32>
    %cst_50 = arith.constant 9.99999974E-6 : f32
    %106 = vector.broadcast %cst_50 : f32 to vector<32x1xf32>
    %107 = arith.addf %105, %106 : vector<32x1xf32>
    %108 = math.rsqrt %107 : vector<32x1xf32>
    %109 = vector.broadcast %108 : vector<32x1xf32> to vector<32x128xf32>
    %110 = arith.mulf %100, %109 : vector<32x128xf32>
    %111 = vector.broadcast %90 : vector<1x128xf32> to vector<32x128xf32>
    %112 = arith.mulf %110, %111 : vector<32x128xf32>
    %113 = vector.broadcast %92 : vector<1x128xf32> to vector<32x128xf32>
    %114 = arith.addf %112, %113 : vector<32x128xf32>
    %c0_51 = arith.constant 0 : index
    %c0_52 = arith.constant 0 : index
    %c0_53 = arith.constant 0 : index
    %115 = vector.load %arg10[%c0_51, %c0_52, %c0_53] : memref<2x128x128xbf16, #tpu.memory_space<vmem>>, vector<1x128x128xbf16>
    %116 = vector.shape_cast %115 : vector<1x128x128xbf16> to vector<128x128xbf16>
    %c0_54 = arith.constant 0 : index
    %c0_55 = arith.constant 0 : index
    %c0_56 = arith.constant 0 : index
    %117 = vector.load %arg11[%c0_54, %c0_55, %c0_56] : memref<2x1x128xf32, #tpu.memory_space<vmem>>, vector<1x1x128xf32>
    %118 = vector.shape_cast %117 : vector<1x1x128xf32> to vector<1x128xf32>
    %c0_57 = arith.constant 0 : index
    %c0_58 = arith.constant 0 : index
    %c0_59 = arith.constant 0 : index
    %119 = vector.load %arg12[%c0_57, %c0_58, %c0_59] : memref<2x128x128xbf16, #tpu.memory_space<vmem>>, vector<1x128x128xbf16>
    %120 = vector.shape_cast %119 : vector<1x128x128xbf16> to vector<128x128xbf16>
    %c0_60 = arith.constant 0 : index
    %c0_61 = arith.constant 0 : index
    %c0_62 = arith.constant 0 : index
    %121 = vector.load %arg13[%c0_60, %c0_61, %c0_62] : memref<2x1x128xf32, #tpu.memory_space<vmem>>, vector<1x1x128xf32>
    %122 = vector.shape_cast %121 : vector<1x1x128xf32> to vector<1x128xf32>
    %123 = arith.truncf %114 : vector<32x128xf32> to vector<32x128xbf16>
    %cst_63 = arith.constant dense<0.000000e+00> : vector<32x128xf32>
    %124 = tpu.matmul %123, %116, %cst_63 {dimension_numbers = #tpu.dot_dimension_numbers<[1], [0], [0], [1], [0, 0, 1, 1], [], []>} : vector<32x128xbf16>, vector<128x128xbf16>, vector<32x128xf32> -> vector<32x128xf32>
    %125 = vector.broadcast %118 : vector<1x128xf32> to vector<32x128xf32>
    %126 = arith.addf %124, %125 : vector<32x128xf32>
    %cst_64 = arith.constant 5.000000e-01 : f32
    %127 = vector.broadcast %cst_64 : f32 to vector<32x128xf32>
    %128 = arith.mulf %127, %126 : vector<32x128xf32>
    %cst_65 = arith.constant 0.707106769 : f32
    %129 = vector.broadcast %cst_65 : f32 to vector<32x128xf32>
    %130 = arith.mulf %126, %129 : vector<32x128xf32>
    %131 = math.absf %130 : vector<32x128xf32>
    %cst_66 = arith.constant 0.327591091 : f32
    %132 = vector.broadcast %cst_66 : f32 to vector<32x128xf32>
    %133 = arith.mulf %132, %131 : vector<32x128xf32>
    %cst_67 = arith.constant 1.000000e+00 : f32
    %134 = vector.broadcast %cst_67 : f32 to vector<32x128xf32>
    %135 = arith.addf %134, %133 : vector<32x128xf32>
    %cst_68 = arith.constant 1.000000e+00 : f32
    %136 = vector.broadcast %cst_68 : f32 to vector<32x128xf32>
    %137 = arith.divf %136, %135 : vector<32x128xf32>
    %cst_69 = arith.constant 1.06140542 : f32
    %138 = vector.broadcast %cst_69 : f32 to vector<32x128xf32>
    %139 = arith.mulf %138, %137 : vector<32x128xf32>
    %cst_70 = arith.constant -1.45315206 : f32
    %140 = vector.broadcast %cst_70 : f32 to vector<32x128xf32>
    %141 = arith.addf %139, %140 : vector<32x128xf32>
    %142 = arith.mulf %141, %137 : vector<32x128xf32>
    %cst_71 = arith.constant 1.42141378 : f32
    %143 = vector.broadcast %cst_71 : f32 to vector<32x128xf32>
    %144 = arith.addf %142, %143 : vector<32x128xf32>
    %145 = arith.mulf %144, %137 : vector<32x128xf32>
    %cst_72 = arith.constant -0.284496725 : f32
    %146 = vector.broadcast %cst_72 : f32 to vector<32x128xf32>
    %147 = arith.addf %145, %146 : vector<32x128xf32>
    %148 = arith.mulf %147, %137 : vector<32x128xf32>
    %cst_73 = arith.constant 0.254829586 : f32
    %149 = vector.broadcast %cst_73 : f32 to vector<32x128xf32>
    %150 = arith.addf %148, %149 : vector<32x128xf32>
    %151 = arith.mulf %150, %137 : vector<32x128xf32>
    %152 = arith.mulf %131, %131 : vector<32x128xf32>
    %cst_74 = arith.constant 0.000000e+00 : f32
    %153 = vector.broadcast %cst_74 : f32 to vector<32x128xf32>
    %154 = arith.subf %153, %152 : vector<32x128xf32>
    %155 = math.exp %154 : vector<32x128xf32>
    %156 = arith.mulf %151, %155 : vector<32x128xf32>
    %cst_75 = arith.constant 1.000000e+00 : f32
    %157 = vector.broadcast %cst_75 : f32 to vector<32x128xf32>
    %158 = arith.subf %157, %156 : vector<32x128xf32>
    %cst_76 = arith.constant 0.000000e+00 : f32
    %159 = vector.broadcast %cst_76 : f32 to vector<32x128xf32>
    %160 = arith.cmpf olt, %130, %159 : vector<32x128xf32>
    %cst_77 = arith.constant 0.000000e+00 : f32
    %161 = vector.broadcast %cst_77 : f32 to vector<32x128xf32>
    %162 = arith.subf %161, %158 : vector<32x128xf32>
    %163 = arith.select %160, %162, %158 : vector<32x128xi1>, vector<32x128xf32>
    %cst_78 = arith.constant 1.000000e+00 : f32
    %164 = vector.broadcast %cst_78 : f32 to vector<32x128xf32>
    %165 = arith.addf %164, %163 : vector<32x128xf32>
    %166 = arith.mulf %128, %165 : vector<32x128xf32>
    %167 = arith.truncf %166 : vector<32x128xf32> to vector<32x128xbf16>
    %cst_79 = arith.constant dense<0.000000e+00> : vector<32x128xf32>
    %168 = tpu.matmul %167, %120, %cst_79 {dimension_numbers = #tpu.dot_dimension_numbers<[1], [0], [0], [1], [0, 0, 1, 1], [], []>} : vector<32x128xbf16>, vector<128x128xbf16>, vector<32x128xf32> -> vector<32x128xf32>
    %169 = vector.broadcast %122 : vector<1x128xf32> to vector<32x128xf32>
    %170 = arith.addf %168, %169 : vector<32x128xf32>
    %171 = arith.addf %170, %88 : vector<32x128xf32>
    %c1 = arith.constant 1 : index
    %c0_80 = arith.constant 0 : index
    %c0_81 = arith.constant 0 : index
    %172 = vector.load %arg2[%c1, %c0_80, %c0_81] : memref<2x1x128xf32, #tpu.memory_space<vmem>>, vector<1x1x128xf32>
    %173 = vector.shape_cast %172 : vector<1x1x128xf32> to vector<1x128xf32>
    %c1_82 = arith.constant 1 : index
    %c0_83 = arith.constant 0 : index
    %c0_84 = arith.constant 0 : index
    %174 = vector.load %arg3[%c1_82, %c0_83, %c0_84] : memref<2x1x128xf32, #tpu.memory_space<vmem>>, vector<1x1x128xf32>
    %175 = vector.shape_cast %174 : vector<1x1x128xf32> to vector<1x128xf32>
    %cst_85 = arith.constant dense<0.000000e+00> : vector<32xf32>
    %176 = vector.multi_reduction <add>, %171, %cst_85 [1] : vector<32x128xf32> to vector<32xf32>
    %177 = vector.shape_cast %176 : vector<32xf32> to vector<32x1xf32>
    %cst_86 = arith.constant 3.125000e-02 : f32
    %178 = vector.broadcast %cst_86 : f32 to vector<32x1xf32>
    %179 = arith.mulf %177, %178 : vector<32x1xf32>
    %180 = vector.broadcast %179 : vector<32x1xf32> to vector<32x128xf32>
    %181 = arith.subf %171, %180 : vector<32x128xf32>
    %182 = vector.broadcast %4 : vector<1x128xf32> to vector<32x128xf32>
    %183 = arith.mulf %181, %182 : vector<32x128xf32>
    %184 = arith.mulf %183, %183 : vector<32x128xf32>
    %cst_87 = arith.constant dense<0.000000e+00> : vector<32xf32>
    %185 = vector.multi_reduction <add>, %184, %cst_87 [1] : vector<32x128xf32> to vector<32xf32>
    %186 = vector.shape_cast %185 : vector<32xf32> to vector<32x1xf32>
    %cst_88 = arith.constant 3.125000e-02 : f32
    %187 = vector.broadcast %cst_88 : f32 to vector<32x1xf32>
    %188 = arith.mulf %186, %187 : vector<32x1xf32>
    %cst_89 = arith.constant 9.99999974E-6 : f32
    %189 = vector.broadcast %cst_89 : f32 to vector<32x1xf32>
    %190 = arith.addf %188, %189 : vector<32x1xf32>
    %191 = math.rsqrt %190 : vector<32x1xf32>
    %192 = vector.broadcast %191 : vector<32x1xf32> to vector<32x128xf32>
    %193 = arith.mulf %183, %192 : vector<32x128xf32>
    %194 = vector.broadcast %173 : vector<1x128xf32> to vector<32x128xf32>
    %195 = arith.mulf %193, %194 : vector<32x128xf32>
    %196 = vector.broadcast %175 : vector<1x128xf32> to vector<32x128xf32>
    %197 = arith.addf %195, %196 : vector<32x128xf32>
    %c1_90 = arith.constant 1 : index
    %c0_91 = arith.constant 0 : index
    %c0_92 = arith.constant 0 : index
    %198 = vector.load %arg4[%c1_90, %c0_91, %c0_92] : memref<2x128x128xbf16, #tpu.memory_space<vmem>>, vector<1x128x128xbf16>
    %199 = vector.shape_cast %198 : vector<1x128x128xbf16> to vector<128x128xbf16>
    %c1_93 = arith.constant 1 : index
    %c0_94 = arith.constant 0 : index
    %c0_95 = arith.constant 0 : index
    %200 = vector.load %arg5[%c1_93, %c0_94, %c0_95] : memref<2x1x128xf32, #tpu.memory_space<vmem>>, vector<1x1x128xf32>
    %201 = vector.shape_cast %200 : vector<1x1x128xf32> to vector<1x128xf32>
    %c1_96 = arith.constant 1 : index
    %c0_97 = arith.constant 0 : index
    %c0_98 = arith.constant 0 : index
    %202 = vector.load %arg6[%c1_96, %c0_97, %c0_98] : memref<2x128x128xbf16, #tpu.memory_space<vmem>>, vector<1x128x128xbf16>
    %203 = vector.shape_cast %202 : vector<1x128x128xbf16> to vector<128x128xbf16>
    %c1_99 = arith.constant 1 : index
    %c0_100 = arith.constant 0 : index
    %c0_101 = arith.constant 0 : index
    %204 = vector.load %arg7[%c1_99, %c0_100, %c0_101] : memref<2x1x128xf32, #tpu.memory_space<vmem>>, vector<1x1x128xf32>
    %205 = vector.shape_cast %204 : vector<1x1x128xf32> to vector<1x128xf32>
    %206 = arith.truncf %197 : vector<32x128xf32> to vector<32x128xbf16>
    %cst_102 = arith.constant dense<0.000000e+00> : vector<32x128xf32>
    %207 = tpu.matmul %206, %199, %cst_102 {dimension_numbers = #tpu.dot_dimension_numbers<[1], [0], [0], [1], [0, 0, 1, 1], [], []>} : vector<32x128xbf16>, vector<128x128xbf16>, vector<32x128xf32> -> vector<32x128xf32>
    %208 = vector.broadcast %201 : vector<1x128xf32> to vector<32x128xf32>
    %209 = arith.addf %207, %208 : vector<32x128xf32>
    %cst_103 = arith.constant 5.000000e-01 : f32
    %210 = vector.broadcast %cst_103 : f32 to vector<32x128xf32>
    %211 = arith.mulf %210, %209 : vector<32x128xf32>
    %cst_104 = arith.constant 0.707106769 : f32
    %212 = vector.broadcast %cst_104 : f32 to vector<32x128xf32>
    %213 = arith.mulf %209, %212 : vector<32x128xf32>
    %214 = math.absf %213 : vector<32x128xf32>
    %cst_105 = arith.constant 0.327591091 : f32
    %215 = vector.broadcast %cst_105 : f32 to vector<32x128xf32>
    %216 = arith.mulf %215, %214 : vector<32x128xf32>
    %cst_106 = arith.constant 1.000000e+00 : f32
    %217 = vector.broadcast %cst_106 : f32 to vector<32x128xf32>
    %218 = arith.addf %217, %216 : vector<32x128xf32>
    %cst_107 = arith.constant 1.000000e+00 : f32
    %219 = vector.broadcast %cst_107 : f32 to vector<32x128xf32>
    %220 = arith.divf %219, %218 : vector<32x128xf32>
    %cst_108 = arith.constant 1.06140542 : f32
    %221 = vector.broadcast %cst_108 : f32 to vector<32x128xf32>
    %222 = arith.mulf %221, %220 : vector<32x128xf32>
    %cst_109 = arith.constant -1.45315206 : f32
    %223 = vector.broadcast %cst_109 : f32 to vector<32x128xf32>
    %224 = arith.addf %222, %223 : vector<32x128xf32>
    %225 = arith.mulf %224, %220 : vector<32x128xf32>
    %cst_110 = arith.constant 1.42141378 : f32
    %226 = vector.broadcast %cst_110 : f32 to vector<32x128xf32>
    %227 = arith.addf %225, %226 : vector<32x128xf32>
    %228 = arith.mulf %227, %220 : vector<32x128xf32>
    %cst_111 = arith.constant -0.284496725 : f32
    %229 = vector.broadcast %cst_111 : f32 to vector<32x128xf32>
    %230 = arith.addf %228, %229 : vector<32x128xf32>
    %231 = arith.mulf %230, %220 : vector<32x128xf32>
    %cst_112 = arith.constant 0.254829586 : f32
    %232 = vector.broadcast %cst_112 : f32 to vector<32x128xf32>
    %233 = arith.addf %231, %232 : vector<32x128xf32>
    %234 = arith.mulf %233, %220 : vector<32x128xf32>
    %235 = arith.mulf %214, %214 : vector<32x128xf32>
    %cst_113 = arith.constant 0.000000e+00 : f32
    %236 = vector.broadcast %cst_113 : f32 to vector<32x128xf32>
    %237 = arith.subf %236, %235 : vector<32x128xf32>
    %238 = math.exp %237 : vector<32x128xf32>
    %239 = arith.mulf %234, %238 : vector<32x128xf32>
    %cst_114 = arith.constant 1.000000e+00 : f32
    %240 = vector.broadcast %cst_114 : f32 to vector<32x128xf32>
    %241 = arith.subf %240, %239 : vector<32x128xf32>
    %cst_115 = arith.constant 0.000000e+00 : f32
    %242 = vector.broadcast %cst_115 : f32 to vector<32x128xf32>
    %243 = arith.cmpf olt, %213, %242 : vector<32x128xf32>
    %cst_116 = arith.constant 0.000000e+00 : f32
    %244 = vector.broadcast %cst_116 : f32 to vector<32x128xf32>
    %245 = arith.subf %244, %241 : vector<32x128xf32>
    %246 = arith.select %243, %245, %241 : vector<32x128xi1>, vector<32x128xf32>
    %cst_117 = arith.constant 1.000000e+00 : f32
    %247 = vector.broadcast %cst_117 : f32 to vector<32x128xf32>
    %248 = arith.addf %247, %246 : vector<32x128xf32>
    %249 = arith.mulf %211, %248 : vector<32x128xf32>
    %250 = arith.truncf %249 : vector<32x128xf32> to vector<32x128xbf16>
    %cst_118 = arith.constant dense<0.000000e+00> : vector<32x128xf32>
    %251 = tpu.matmul %250, %203, %cst_118 {dimension_numbers = #tpu.dot_dimension_numbers<[1], [0], [0], [1], [0, 0, 1, 1], [], []>} : vector<32x128xbf16>, vector<128x128xbf16>, vector<32x128xf32> -> vector<32x128xf32>
    %252 = vector.broadcast %205 : vector<1x128xf32> to vector<32x128xf32>
    %253 = arith.addf %251, %252 : vector<32x128xf32>
    %254 = arith.addf %253, %197 : vector<32x128xf32>
    %c1_119 = arith.constant 1 : index
    %c0_120 = arith.constant 0 : index
    %c0_121 = arith.constant 0 : index
    %255 = vector.load %arg8[%c1_119, %c0_120, %c0_121] : memref<2x1x128xf32, #tpu.memory_space<vmem>>, vector<1x1x128xf32>
    %256 = vector.shape_cast %255 : vector<1x1x128xf32> to vector<1x128xf32>
    %c1_122 = arith.constant 1 : index
    %c0_123 = arith.constant 0 : index
    %c0_124 = arith.constant 0 : index
    %257 = vector.load %arg9[%c1_122, %c0_123, %c0_124] : memref<2x1x128xf32, #tpu.memory_space<vmem>>, vector<1x1x128xf32>
    %258 = vector.shape_cast %257 : vector<1x1x128xf32> to vector<1x128xf32>
    %cst_125 = arith.constant dense<0.000000e+00> : vector<32xf32>
    %259 = vector.multi_reduction <add>, %254, %cst_125 [1] : vector<32x128xf32> to vector<32xf32>
    %260 = vector.shape_cast %259 : vector<32xf32> to vector<32x1xf32>
    %cst_126 = arith.constant 3.125000e-02 : f32
    %261 = vector.broadcast %cst_126 : f32 to vector<32x1xf32>
    %262 = arith.mulf %260, %261 : vector<32x1xf32>
    %263 = vector.broadcast %262 : vector<32x1xf32> to vector<32x128xf32>
    %264 = arith.subf %254, %263 : vector<32x128xf32>
    %265 = vector.broadcast %4 : vector<1x128xf32> to vector<32x128xf32>
    %266 = arith.mulf %264, %265 : vector<32x128xf32>
    %267 = arith.mulf %266, %266 : vector<32x128xf32>
    %cst_127 = arith.constant dense<0.000000e+00> : vector<32xf32>
    %268 = vector.multi_reduction <add>, %267, %cst_127 [1] : vector<32x128xf32> to vector<32xf32>
    %269 = vector.shape_cast %268 : vector<32xf32> to vector<32x1xf32>
    %cst_128 = arith.constant 3.125000e-02 : f32
    %270 = vector.broadcast %cst_128 : f32 to vector<32x1xf32>
    %271 = arith.mulf %269, %270 : vector<32x1xf32>
    %cst_129 = arith.constant 9.99999974E-6 : f32
    %272 = vector.broadcast %cst_129 : f32 to vector<32x1xf32>
    %273 = arith.addf %271, %272 : vector<32x1xf32>
    %274 = math.rsqrt %273 : vector<32x1xf32>
    %275 = vector.broadcast %274 : vector<32x1xf32> to vector<32x128xf32>
    %276 = arith.mulf %266, %275 : vector<32x128xf32>
    %277 = vector.broadcast %256 : vector<1x128xf32> to vector<32x128xf32>
    %278 = arith.mulf %276, %277 : vector<32x128xf32>
    %279 = vector.broadcast %258 : vector<1x128xf32> to vector<32x128xf32>
    %280 = arith.addf %278, %279 : vector<32x128xf32>
    %c1_130 = arith.constant 1 : index
    %c0_131 = arith.constant 0 : index
    %c0_132 = arith.constant 0 : index
    %281 = vector.load %arg10[%c1_130, %c0_131, %c0_132] : memref<2x128x128xbf16, #tpu.memory_space<vmem>>, vector<1x128x128xbf16>
    %282 = vector.shape_cast %281 : vector<1x128x128xbf16> to vector<128x128xbf16>
    %c1_133 = arith.constant 1 : index
    %c0_134 = arith.constant 0 : index
    %c0_135 = arith.constant 0 : index
    %283 = vector.load %arg11[%c1_133, %c0_134, %c0_135] : memref<2x1x128xf32, #tpu.memory_space<vmem>>, vector<1x1x128xf32>
    %284 = vector.shape_cast %283 : vector<1x1x128xf32> to vector<1x128xf32>
    %c1_136 = arith.constant 1 : index
    %c0_137 = arith.constant 0 : index
    %c0_138 = arith.constant 0 : index
    %285 = vector.load %arg12[%c1_136, %c0_137, %c0_138] : memref<2x128x128xbf16, #tpu.memory_space<vmem>>, vector<1x128x128xbf16>
    %286 = vector.shape_cast %285 : vector<1x128x128xbf16> to vector<128x128xbf16>
    %c1_139 = arith.constant 1 : index
    %c0_140 = arith.constant 0 : index
    %c0_141 = arith.constant 0 : index
    %287 = vector.load %arg13[%c1_139, %c0_140, %c0_141] : memref<2x1x128xf32, #tpu.memory_space<vmem>>, vector<1x1x128xf32>
    %288 = vector.shape_cast %287 : vector<1x1x128xf32> to vector<1x128xf32>
    %289 = arith.truncf %280 : vector<32x128xf32> to vector<32x128xbf16>
    %cst_142 = arith.constant dense<0.000000e+00> : vector<32x128xf32>
    %290 = tpu.matmul %289, %282, %cst_142 {dimension_numbers = #tpu.dot_dimension_numbers<[1], [0], [0], [1], [0, 0, 1, 1], [], []>} : vector<32x128xbf16>, vector<128x128xbf16>, vector<32x128xf32> -> vector<32x128xf32>
    %291 = vector.broadcast %284 : vector<1x128xf32> to vector<32x128xf32>
    %292 = arith.addf %290, %291 : vector<32x128xf32>
    %cst_143 = arith.constant 5.000000e-01 : f32
    %293 = vector.broadcast %cst_143 : f32 to vector<32x128xf32>
    %294 = arith.mulf %293, %292 : vector<32x128xf32>
    %cst_144 = arith.constant 0.707106769 : f32
    %295 = vector.broadcast %cst_144 : f32 to vector<32x128xf32>
    %296 = arith.mulf %292, %295 : vector<32x128xf32>
    %297 = math.absf %296 : vector<32x128xf32>
    %cst_145 = arith.constant 0.327591091 : f32
    %298 = vector.broadcast %cst_145 : f32 to vector<32x128xf32>
    %299 = arith.mulf %298, %297 : vector<32x128xf32>
    %cst_146 = arith.constant 1.000000e+00 : f32
    %300 = vector.broadcast %cst_146 : f32 to vector<32x128xf32>
    %301 = arith.addf %300, %299 : vector<32x128xf32>
    %cst_147 = arith.constant 1.000000e+00 : f32
    %302 = vector.broadcast %cst_147 : f32 to vector<32x128xf32>
    %303 = arith.divf %302, %301 : vector<32x128xf32>
    %cst_148 = arith.constant 1.06140542 : f32
    %304 = vector.broadcast %cst_148 : f32 to vector<32x128xf32>
    %305 = arith.mulf %304, %303 : vector<32x128xf32>
    %cst_149 = arith.constant -1.45315206 : f32
    %306 = vector.broadcast %cst_149 : f32 to vector<32x128xf32>
    %307 = arith.addf %305, %306 : vector<32x128xf32>
    %308 = arith.mulf %307, %303 : vector<32x128xf32>
    %cst_150 = arith.constant 1.42141378 : f32
    %309 = vector.broadcast %cst_150 : f32 to vector<32x128xf32>
    %310 = arith.addf %308, %309 : vector<32x128xf32>
    %311 = arith.mulf %310, %303 : vector<32x128xf32>
    %cst_151 = arith.constant -0.284496725 : f32
    %312 = vector.broadcast %cst_151 : f32 to vector<32x128xf32>
    %313 = arith.addf %311, %312 : vector<32x128xf32>
    %314 = arith.mulf %313, %303 : vector<32x128xf32>
    %cst_152 = arith.constant 0.254829586 : f32
    %315 = vector.broadcast %cst_152 : f32 to vector<32x128xf32>
    %316 = arith.addf %314, %315 : vector<32x128xf32>
    %317 = arith.mulf %316, %303 : vector<32x128xf32>
    %318 = arith.mulf %297, %297 : vector<32x128xf32>
    %cst_153 = arith.constant 0.000000e+00 : f32
    %319 = vector.broadcast %cst_153 : f32 to vector<32x128xf32>
    %320 = arith.subf %319, %318 : vector<32x128xf32>
    %321 = math.exp %320 : vector<32x128xf32>
    %322 = arith.mulf %317, %321 : vector<32x128xf32>
    %cst_154 = arith.constant 1.000000e+00 : f32
    %323 = vector.broadcast %cst_154 : f32 to vector<32x128xf32>
    %324 = arith.subf %323, %322 : vector<32x128xf32>
    %cst_155 = arith.constant 0.000000e+00 : f32
    %325 = vector.broadcast %cst_155 : f32 to vector<32x128xf32>
    %326 = arith.cmpf olt, %296, %325 : vector<32x128xf32>
    %cst_156 = arith.constant 0.000000e+00 : f32
    %327 = vector.broadcast %cst_156 : f32 to vector<32x128xf32>
    %328 = arith.subf %327, %324 : vector<32x128xf32>
    %329 = arith.select %326, %328, %324 : vector<32x128xi1>, vector<32x128xf32>
    %cst_157 = arith.constant 1.000000e+00 : f32
    %330 = vector.broadcast %cst_157 : f32 to vector<32x128xf32>
    %331 = arith.addf %330, %329 : vector<32x128xf32>
    %332 = arith.mulf %294, %331 : vector<32x128xf32>
    %333 = arith.truncf %332 : vector<32x128xf32> to vector<32x128xbf16>
    %cst_158 = arith.constant dense<0.000000e+00> : vector<32x128xf32>
    %334 = tpu.matmul %333, %286, %cst_158 {dimension_numbers = #tpu.dot_dimension_numbers<[1], [0], [0], [1], [0, 0, 1, 1], [], []>} : vector<32x128xbf16>, vector<128x128xbf16>, vector<32x128xf32> -> vector<32x128xf32>
    %335 = vector.broadcast %288 : vector<1x128xf32> to vector<32x128xf32>
    %336 = arith.addf %334, %335 : vector<32x128xf32>
    %337 = arith.addf %336, %254 : vector<32x128xf32>
    %c0_159 = arith.constant 0 : index
    %c0_160 = arith.constant 0 : index
    %338 = vector.load %arg14[%c0_159, %c0_160] : memref<32x128xf32, #tpu.memory_space<vmem>>, vector<32x128xf32>
    tpu.vector_store %arg14[%c0_159, %c0_160], %337 {strides = array<i32>} : memref<32x128xf32, #tpu.memory_space<vmem>>, vector<32x128xf32>,
    return
  }
  func.func @transform_0(%arg0: i32) -> (i32, i32) {
    %c0_i32 = arith.constant 0 : i32
    %c0_i32_0 = arith.constant 0 : i32
    return %arg0, %c0_i32 : i32, i32
  }
  func.func @transform_1(%arg0: i32) -> (i32, i32, i32) {
    %c0_i32 = arith.constant 0 : i32
    %c0_i32_0 = arith.constant 0 : i32
    %c0_i32_1 = arith.constant 0 : i32
    %c0_i32_2 = arith.constant 0 : i32
    return %c0_i32, %c0_i32_0, %c0_i32_1 : i32, i32, i32
  }
  func.func @transform_2(%arg0: i32) -> (i32, i32, i32) {
    %c0_i32 = arith.constant 0 : i32
    %c0_i32_0 = arith.constant 0 : i32
    %c0_i32_1 = arith.constant 0 : i32
    %c0_i32_2 = arith.constant 0 : i32
    return %c0_i32, %c0_i32_0, %c0_i32_1 : i32, i32, i32
  }
  func.func @transform_3(%arg0: i32) -> (i32, i32, i32) {
    %c0_i32 = arith.constant 0 : i32
    %c0_i32_0 = arith.constant 0 : i32
    %c0_i32_1 = arith.constant 0 : i32
    %c0_i32_2 = arith.constant 0 : i32
    return %c0_i32, %c0_i32_0, %c0_i32_1 : i32, i32, i32
  }
  func.func @transform_4(%arg0: i32) -> (i32, i32, i32) {
    %c0_i32 = arith.constant 0 : i32
    %c0_i32_0 = arith.constant 0 : i32
    %c0_i32_1 = arith.constant 0 : i32
    %c0_i32_2 = arith.constant 0 : i32
    return %c0_i32, %c0_i32_0, %c0_i32_1 : i32, i32, i32
  }
  func.func @transform_5(%arg0: i32) -> (i32, i32, i32) {
    %c0_i32 = arith.constant 0 : i32
    %c0_i32_0 = arith.constant 0 : i32
    %c0_i32_1 = arith.constant 0 : i32
    %c0_i32_2 = arith.constant 0 : i32
    return %c0_i32, %c0_i32_0, %c0_i32_1 : i32, i32, i32
  }
  func.func @transform_6(%arg0: i32) -> (i32, i32, i32) {
    %c0_i32 = arith.constant 0 : i32
    %c0_i32_0 = arith.constant 0 : i32
    %c0_i32_1 = arith.constant 0 : i32
    %c0_i32_2 = arith.constant 0 : i32
    return %c0_i32, %c0_i32_0, %c0_i32_1 : i32, i32, i32
  }
  func.func @transform_7(%arg0: i32) -> (i32, i32, i32) {
    %c0_i32 = arith.constant 0 : i32
    %c0_i32_0 = arith.constant 0 : i32
    %c0_i32_1 = arith.constant 0 : i32
    %c0_i32_2 = arith.constant 0 : i32
    return %c0_i32, %c0_i32_0, %c0_i32_1 : i32, i32, i32
  }
  func.func @transform_8(%arg0: i32) -> (i32, i32, i32) {
    %c0_i32 = arith.constant 0 : i32
    %c0_i32_0 = arith.constant 0 : i32
    %c0_i32_1 = arith.constant 0 : i32
    %c0_i32_2 = arith.constant 0 : i32
    return %c0_i32, %c0_i32_0, %c0_i32_1 : i32, i32, i32
  }
  func.func @transform_9(%arg0: i32) -> (i32, i32, i32) {
    %c0_i32 = arith.constant 0 : i32
    %c0_i32_0 = arith.constant 0 : i32
    %c0_i32_1 = arith.constant 0 : i32
    %c0_i32_2 = arith.constant 0 : i32
    return %c0_i32, %c0_i32_0, %c0_i32_1 : i32, i32, i32
  }
  func.func @transform_10(%arg0: i32) -> (i32, i32, i32) {
    %c0_i32 = arith.constant 0 : i32
    %c0_i32_0 = arith.constant 0 : i32
    %c0_i32_1 = arith.constant 0 : i32
    %c0_i32_2 = arith.constant 0 : i32
    return %c0_i32, %c0_i32_0, %c0_i32_1 : i32, i32, i32
  }
  func.func @transform_11(%arg0: i32) -> (i32, i32, i32) {
    %c0_i32 = arith.constant 0 : i32
    %c0_i32_0 = arith.constant 0 : i32
    %c0_i32_1 = arith.constant 0 : i32
    %c0_i32_2 = arith.constant 0 : i32
    return %c0_i32, %c0_i32_0, %c0_i32_1 : i32, i32, i32
  }
  func.func @transform_12(%arg0: i32) -> (i32, i32, i32) {
    %c0_i32 = arith.constant 0 : i32
    %c0_i32_0 = arith.constant 0 : i32
    %c0_i32_1 = arith.constant 0 : i32
    %c0_i32_2 = arith.constant 0 : i32
    return %c0_i32, %c0_i32_0, %c0_i32_1 : i32, i32, i32
  }
  func.func @transform_13(%arg0: i32) -> (i32, i32) {
    %c0_i32 = arith.constant 0 : i32
    %c0_i32_0 = arith.constant 0 : i32
    return %arg0, %c0_i32 : i32, i32
  }
}

</mosaic_0001>

<bundles_post_ra>
// kernel: _scoring_head_impl.7
= control target key start
LH: loop header
LB: loop body
LE: loop exit
PB: predicated region body
PF: predicated region fallthrough
CT: control target
= control target key end

     0   :  { %s875_s12 = smov 0   ;;  %s877_s13 = smov 0   ;;  %s960_s0 = inlined_call_operand.vmem [shape: f32[8,4096], index: 0, kind: input, shape index: {}]   ;;  %s961_s1 = inlined_call_operand.vmem [shape: bf16[4096,128], index: 1, kind: input, shape index: {}]   ;;  %s962_s2 = inlined_call_operand.vmem [shape: f32[1,128], index: 2, kind: input, shape index: {}]   ;;  %s963_s3 = inlined_call_operand.vmem [shape: f32[8,128], index: 3, kind: output, shape index: {}]  }
   0x1   :  { %s879_s14 = smov 0  }
   0x2 LB: > { %s22_s15 = sadd.s32 1, %s848_s13  ;;  %p634_p0 = scmp.ge.s32.totalorder %s852_s14, 1  ;;  %s852_s14 = sphi %s879_s14, %s13_s14   ;;  %s848_s13 = sphi %s877_s13, %s965_s13   ;;  %s844_s12 = sphi %s875_s12, %s964_s12  }
   0x3   : > { %p23_p1 = scmp.ge.s32.totalorder %s22_s15, 8  ;;  %p167_p2 = scmp.lt.s32.totalorder %s852_s14, 9 }
   0x5   : > { %s967_s15 = smov (%p23_p1, %s22_s15), 0  ;;  %p168_p3 = pnand %p634_p0, %p167_p2 }
   0x6   : > { %s635_s16 = sshll.u32 (!%p168_p3), %s844_s12, 2  ;;  %s637_s17 = sshll.u32 (!%p168_p3), %s844_s12, 6 }
   0x7   : > { %171 = sbr.rel (%p168_p3) target bundleno = 205 (0xcd), region = 32  ;;  %p202_p4 = scmp.lt.s32.totalorder (!%p168_p3), %s635_s16, 31 }
   0x8   : > { %p210_p5 = scmp.lt.s32.totalorder (!%p168_p3), %s637_s17, 511  ;;  %p639_p6 = scmp.ne.s32.totalorder (!%p168_p3), %s844_s12, 0 }
   0xc   : > { %s969_s16 = smov (!%p202_p4, %s635_s16), 31  ;;  %s971_s17 = smov (!%p210_p5, %s637_s17), 511 }
   0xd   : > { %s636_s18 = sshll.u32 %s969_s16, 3  ;;  %s638_s22 = sshll.u32 %s971_s17, 2 }
   0xe   : > { %s900_s21 = scalar_lea.vmem %s960_s0, %s636_s18  ;;  %s905_s25 = scalar_lea.vmem %s961_s1, %s638_s22 }
   0xf   : > { %222 = sbr.rel (%p639_p6) target bundleno = 22 (0x16), region = 36 }
  0x14   : > { %v854_v0 = vmov 0.0  }
  0x15   : > { %223 = vst [vmem:[#allocation2] sm:$0xff] %v854_v0 }
  0x16 PF: > { %v779_v1 = vld [vmem:[%s905_s25 + $0x38] sm:$0xff]  ;;  %v778_v5 = vld [vmem:[%s905_s25 + $0x30] sm:$0xff]  ;;  %v777_v9 = vld [vmem:[%s905_s25 + $0x28] sm:$0xff]  ;;  %p768_p7 = scmp.ne.s32.totalorder %s844_s12, 7 }
  0x17   : > { %v787_v2 = vld [vmem:[%s905_s25 + $0x78] sm:$0xff]  ;;  %489 = vmatpush.bf16.msra.mxu0 %v779_v1  ;;  %v786_v6 = vld [vmem:[%s905_s25 + $0x70] sm:$0xff]  ;;  %v785_v10 = vld [vmem:[%s905_s25 + $0x68] sm:$0xff] }
  0x18   : > { %v795_v3 = vld [vmem:[%s905_s25 + $0xb8] sm:$0xff]  ;;  %502 = vmatpush.bf16.msra.mxu1 %v787_v2  ;;  %v794_v7 = vld [vmem:[%s905_s25 + $0xb0] sm:$0xff]  ;;  %v793_v11 = vld [vmem:[%s905_s25 + $0xa8] sm:$0xff] }
  0x19   : > { %v803_v4 = vld [vmem:[%s905_s25 + $0xf8] sm:$0xff]  ;;  %515 = vmatpush.bf16.msra.mxu2 %v795_v3  ;;  %v802_v8 = vld [vmem:[%s905_s25 + $0xf0] sm:$0xff]  ;;  %v801_v12 = vld [vmem:[%s905_s25 + $0xe8] sm:$0xff] }
  0x1a   : > { %528 = vmatpush.bf16.msra.mxu3 %v803_v4  ;;  %v776_v13 = vld [vmem:[%s905_s25 + $0x20] sm:$0xff]  ;;  %v775_v17 = vld [vmem:[%s905_s25 + $0x18] sm:$0xff]  ;;  %v774_v21 = vld [vmem:[%s905_s25 + $0x10] sm:$0xff] }
  0x1b   : > { %490 = vmatpush.bf16.msra.mxu0 %v778_v5  ;;  %v784_v14 = vld [vmem:[%s905_s25 + $0x60] sm:$0xff]  ;;  %v783_v18 = vld [vmem:[%s905_s25 + $0x58] sm:$0xff]  ;;  %v782_v22 = vld [vmem:[%s905_s25 + $0x50] sm:$0xff] }
  0x1c   : > { %503 = vmatpush.bf16.msra.mxu1 %v786_v6  ;;  %v792_v15 = vld [vmem:[%s905_s25 + $0xa0] sm:$0xff]  ;;  %v791_v19 = vld [vmem:[%s905_s25 + $0x98] sm:$0xff]  ;;  %v790_v23 = vld [vmem:[%s905_s25 + $0x90] sm:$0xff] }
  0x1d   : > { %516 = vmatpush.bf16.msra.mxu2 %v794_v7  ;;  %v800_v16 = vld [vmem:[%s905_s25 + $0xe0] sm:$0xff]  ;;  %v799_v20 = vld [vmem:[%s905_s25 + $0xd8] sm:$0xff]  ;;  %v798_v24 = vld [vmem:[%s905_s25 + $0xd0] sm:$0xff] }
  0x1e   : > { %529 = vmatpush.bf16.msra.mxu3 %v802_v8  ;;  %v773_v25 = vld [vmem:[%s905_s25 + $0x8] sm:$0xff]  ;;  %v772_v29 = vld [vmem:[%s905_s25] sm:$0xff]  ;;  %v227_v35 = vld [vmem:[%s900_s21 + $0x10] sm:$0xff] }
  0x1f   : > { %491 = vmatpush.bf16.msra.mxu0 %v777_v9  ;;  %v781_v26 = vld [vmem:[%s905_s25 + $0x48] sm:$0xff]  ;;  %v780_v30 = vld [vmem:[%s905_s25 + $0x40] sm:$0xff]  ;;  %v228_v36 = vld [vmem:[%s900_s21 + $0x18] sm:$0xff]  ;;  %v231_v39 = vpack.c.bf16 %v227_v35, %v227_v35 }
  0x20   : > { %504 = vmatpush.bf16.msra.mxu1 %v785_v10  ;;  %v789_v27 = vld [vmem:[%s905_s25 + $0x88] sm:$0xff]  ;;  %v788_v31 = vld [vmem:[%s905_s25 + $0x80] sm:$0xff]  ;;  %v232_v40 = vpack.c.bf16 %v228_v36, %v228_v36 }
  0x21   : > { %517 = vmatpush.bf16.msra.mxu2 %v793_v11  ;;  %v797_v28 = vld [vmem:[%s905_s25 + $0xc8] sm:$0xff]  ;;  %v225_v32 = vld [vmem:[%s900_s21] sm:$0xff] }
  0x22   : > { %530 = vmatpush.bf16.msra.mxu3 %v801_v12  ;;  %v226_v33 = vld [vmem:[%s900_s21 + $0x8] sm:$0xff]  ;;  %v796_v34 = vld [vmem:[%s905_s25 + $0xc0] sm:$0xff]  ;;  %v229_v37 = vpack.c.bf16 %v225_v32, %v225_v32 }
  0x23   : > { %492 = vmatpush.bf16.msra.mxu0 %v776_v13  ;;  %v230_v38 = vpack.c.bf16 %v226_v33, %v226_v33  ;;  %v224_v49 = vld [vmem:[#allocation2] sm:$0xff] }
  0x24   : > { %505 = vmatpush.bf16.msra.mxu1 %v784_v14 }
  0x25   : > { %518 = vmatpush.bf16.msra.mxu2 %v792_v15 }
  0x26   : > { %531 = vmatpush.bf16.msra.mxu3 %v800_v16 }
  0x27   : > { %493 = vmatpush.bf16.msra.mxu0 %v775_v17 }
  0x28   : > { %506 = vmatpush.bf16.msra.mxu1 %v783_v18 }
  0x29   : > { %519 = vmatpush.bf16.msra.mxu2 %v791_v19 }
  0x2a   : > { %532 = vmatpush.bf16.msra.mxu3 %v799_v20 }
  0x2b   : > { %494 = vmatpush.bf16.msra.mxu0 %v774_v21 }
  0x2c   : > { %507 = vmatpush.bf16.msra.mxu1 %v782_v22 }
  0x2d   : > { %520 = vmatpush.bf16.msra.mxu2 %v790_v23 }
  0x2e   : > { %533 = vmatpush.bf16.msra.mxu3 %v798_v24 }
  0x2f   : > { %495 = vmatpush.bf16.msra.mxu0 %v773_v25 }
  0x30   : > { %508 = vmatpush.bf16.msra.mxu1 %v781_v26 }
  0x31   : > { %521 = vmatpush.bf16.msra.mxu2 %v789_v27 }
  0x32   : > { %534 = vmatpush.bf16.msra.mxu3 %v797_v28 }
  0x33   : > { %496 = vmatpush.bf16.msra.mxu0 %v772_v29 }
  0x34   : > { %509 = vmatpush.bf16.msra.mxu1 %v780_v30 }
  0x35   : > { %522 = vmatpush.bf16.msra.mxu2 %v788_v31 }
  0x36   : > { %535 = vmatpush.bf16.msra.mxu3 %v796_v34  ;;  %497 = vmatmul.bf16.vlgmr.msra.gmra.mxu0 %v229_v37 }
  0x37   : > { %510 = vmatmul.bf16.vlgmr.msra.gmra.mxu1 %v230_v38 }
  0x38   : > { %523 = vmatmul.bf16.vlgmr.msra.gmra.mxu2 %v231_v39 }
  0x39   : > { %536 = vmatmul.bf16.vlgmr.msra.gmra.mxu3 %v232_v40 }
  0xb3   : > { %v498_v41 = vpop.f32.mrf.mxu0 }
  0xb4   : > { %v511_v42 = vpop.f32.mrf.mxu1 }
  0xb5   : > { %v512_v43 = vadd.f32 %v511_v42, %v498_v41 }
  0xbb   : > { %v524_v44 = vpop.f32.mrf.mxu2  ;;  %v500_v47 = vpop.f32.mrf.mxu0 }
  0xbc   : > { %v537_v45 = vpop.f32.mrf.mxu3  ;;  %v525_v46 = vadd.f32 %v524_v44, %v512_v43  ;;  %v513_v48 = vpop.f32.mrf.mxu1 }
  0xbe   : > { %v538_v50 = vadd.f32 %v537_v45, %v525_v46 }
  0xc0   : > { %v541_v51 = vadd.f32 %v538_v50, %v224_v49  ;;  %546 = sbr.rel (%p768_p7) target bundleno = 205 (0xcd), region = 40 }
  0xc2   : > { %542 = vst [vmem:[#allocation2] sm:$0xff] %v541_v51 }
  0xc3   : > { %v526_v52 = vpop.f32.mrf.mxu2 }
  0xc4   : > { %v539_v53 = vpop.f32.mrf.mxu3 }
  0xc5   : > { %v829_v55 = vld [vmem:[%s962_s2] ss:$0 sm:$0xff] }
  0xc9   : > { %v547_v54 = vld [vmem:[#allocation2] sm:$0xff] }
  0xca   : > { %v552_v56 = vadd.f32 %v829_v55, %v547_v54 }
  0xcc   : > { %553 = vst [vmem:[%s963_s3] sm:$0xff] %v552_v56 }
  0xcd PF: > { %s13_s14 = sadd.s32 1, %s852_s14   ;;  %s964_s12 = smov %s848_s13 }
  0xce   : > { %p10_p8 = scmp.ge.s32.totalorder %s13_s14, 10   ;;  %s965_s13 = smov %s967_s15 }
  0xd0   :  { %12 = sbr.rel (!%p10_p8) target bundleno = 2 (0x2), region = 73 }

// kernel: _scoring_head_impl.5
= control target key start
LH: loop header
LB: loop body
LE: loop exit
PB: predicated region body
PF: predicated region fallthrough
CT: control target
= control target key end

     0   :  { %s793_s12 = smov 0   ;;  %s795_s13 = smov 0   ;;  %s890_s0 = inlined_call_operand.vmem [shape: f32[16,768], index: 0, kind: input, shape index: {}]   ;;  %s891_s1 = inlined_call_operand.vmem [shape: bf16[768,128], index: 1, kind: input, shape index: {}]   ;;  %s892_s2 = inlined_call_operand.vmem [shape: f32[1,128], index: 2, kind: input, shape index: {}]   ;;  %s893_s3 = inlined_call_operand.vmem [shape: f32[16,128], index: 3, kind: output, shape index: {}]  }
   0x1   :  { %s797_s14 = smov 0   ;;  %s799_s15 = smov 0  }
   0x2   :  { %s801_s16 = smov 0  }
   0x3 LB: > { %s22_s17 = sadd.s32 1, %s762_s14  ;;  %s25_s18 = sadd.s32 1, %s766_s15  ;;  %s770_s16 = sphi %s801_s16, %s13_s16   ;;  %s766_s15 = sphi %s799_s15, %s897_s15   ;;  %s762_s14 = sphi %s797_s14, %s896_s14   ;;  %s758_s13 = sphi %s795_s13, %s895_s13   ;;  %s754_s12 = sphi %s793_s12, %s894_s12  }
   0x4   : > { %p23_p0 = scmp.ge.s32.totalorder %s22_s17, 2  ;;  %p561_p1 = scmp.ge.s32.totalorder %s770_s16, 1 }
   0x5   : > { %p167_p2 = scmp.lt.s32.totalorder %s770_s16, 5 }
   0x6   : > { %s899_s17 = smov (%p23_p0, %s22_s17), 0  ;;  %s901_s18 = smov (!%p23_p0, %s25_s18), %s766_s15 }
   0x7   : > { %p168_p3 = pnand %p561_p1, %p167_p2  ;;  %p27_p4 = scmp.ge.s32.totalorder %s901_s18, 2 }
   0x8   : > { %s199_s19 = smul.u32 (!%p168_p3), 3, %s754_s12  ;;  %p200_p5 = scmp.lt.s32.totalorder (!%p168_p3), %s758_s13, 1 }
   0x9   : > { %s903_s18 = smov (%p27_p4, %s901_s18), 0  ;;  %171 = sbr.rel (%p168_p3) target bundleno = 207 (0xcf), region = 32 }
   0xa   : > { %s209_s20 = smul.u32 (!%p168_p3), 48, %s754_s12  ;;  %p202_p6 = scmp.lt.s32.totalorder (!%p168_p3), %s199_s19, 5 }
   0xb   : > { %p565_p8 = scmp.ne.s32.totalorder (!%p168_p3), %s754_s12, 0 }
   0xc   : > { %p210_p7 = scmp.lt.s32.totalorder (!%p168_p3), %s209_s20, 95 }
   0xe   : > { %s905_s13 = smov (!%p200_p5, %s758_s13), 1  ;;  %s907_s19 = smov (!%p202_p6, %s199_s19), 5 }
   0xf   : > { %s689_s21 = smul.u32 6, %s905_s13  ;;  %s564_s22 = sshll.u32 %s905_s13, 3 }
  0x10   : > { %s909_s20 = smov (!%p210_p7, %s209_s20), 95  ;;  %s830_s26 = scalar_lea.vmem %s893_s3, %s564_s22 }
  0x11   : > { %s205_s23 = sadd.s32 %s689_s21, %s907_s19  ;;  %s563_s28 = sshll.u32 %s909_s20, 2 }
  0x12   : > { %s562_s27 = sshll.u32 %s205_s23, 3  ;;  %s840_s7 = scalar_lea.vmem %s891_s1, %s563_s28 }
  0x13   : > { %s835_s4 = scalar_lea.vmem %s890_s0, %s562_s27  ;;  %222 = sbr.rel (%p565_p8) target bundleno = 26 (0x1a), region = 36 }
  0x18   : > { %v772_v0 = vmov 0.0  }
  0x19   : > { %223 = vst [vmem:[#allocation2] sm:$0xff] %v772_v0 }
  0x1a PF: > { %v672_v1 = vld [vmem:[%s840_s7 + $0x38] sm:$0xff]  ;;  %v671_v4 = vld [vmem:[%s840_s7 + $0x30] sm:$0xff]  ;;  %v670_v7 = vld [vmem:[%s840_s7 + $0x28] sm:$0xff]  ;;  %p662_p9 = scmp.ne.s32.totalorder %s754_s12, 1 }
  0x1b   : > { %v680_v2 = vld [vmem:[%s840_s7 + $0x78] sm:$0xff]  ;;  %423 = vmatpush.bf16.msra.mxu0 %v672_v1  ;;  %v679_v5 = vld [vmem:[%s840_s7 + $0x70] sm:$0xff]  ;;  %v678_v8 = vld [vmem:[%s840_s7 + $0x68] sm:$0xff] }
  0x1c   : > { %v688_v3 = vld [vmem:[%s840_s7 + $0xb8] sm:$0xff]  ;;  %436 = vmatpush.bf16.msra.mxu1 %v680_v2  ;;  %v687_v6 = vld [vmem:[%s840_s7 + $0xb0] sm:$0xff]  ;;  %v686_v9 = vld [vmem:[%s840_s7 + $0xa8] sm:$0xff] }
  0x1d   : > { %449 = vmatpush.bf16.msra.mxu2 %v688_v3  ;;  %v669_v10 = vld [vmem:[%s840_s7 + $0x20] sm:$0xff]  ;;  %v668_v13 = vld [vmem:[%s840_s7 + $0x18] sm:$0xff]  ;;  %v667_v16 = vld [vmem:[%s840_s7 + $0x10] sm:$0xff] }
  0x1e   : > { %v677_v11 = vld [vmem:[%s840_s7 + $0x60] sm:$0xff]  ;;  %v676_v14 = vld [vmem:[%s840_s7 + $0x58] sm:$0xff]  ;;  %v675_v17 = vld [vmem:[%s840_s7 + $0x50] sm:$0xff] }
  0x1f   : > { %424 = vmatpush.bf16.msra.mxu0 %v671_v4  ;;  %v685_v12 = vld [vmem:[%s840_s7 + $0xa0] sm:$0xff]  ;;  %v684_v15 = vld [vmem:[%s840_s7 + $0x98] sm:$0xff]  ;;  %v683_v18 = vld [vmem:[%s840_s7 + $0x90] sm:$0xff] }
  0x20   : > { %437 = vmatpush.bf16.msra.mxu1 %v679_v5  ;;  %v666_v19 = vld [vmem:[%s840_s7 + $0x8] sm:$0xff]  ;;  %v665_v22 = vld [vmem:[%s840_s7] sm:$0xff]  ;;  %v227_v27 = vld [vmem:[%s835_s4 + $0x10] sm:$0xff] }
  0x21   : > { %450 = vmatpush.bf16.msra.mxu2 %v687_v6  ;;  %v674_v20 = vld [vmem:[%s840_s7 + $0x48] sm:$0xff]  ;;  %v673_v23 = vld [vmem:[%s840_s7 + $0x40] sm:$0xff]  ;;  %v230_v30 = vpack.c.bf16 %v227_v27, %v227_v27 }
  0x22   : > { %v682_v21 = vld [vmem:[%s840_s7 + $0x88] sm:$0xff]  ;;  %v225_v24 = vld [vmem:[%s835_s4] sm:$0xff] }
  0x23   : > { %425 = vmatpush.bf16.msra.mxu0 %v670_v7  ;;  %v226_v25 = vld [vmem:[%s835_s4 + $0x8] sm:$0xff]  ;;  %v681_v26 = vld [vmem:[%s840_s7 + $0x80] sm:$0xff]  ;;  %v228_v28 = vpack.c.bf16 %v225_v24, %v225_v24 }
  0x24   : > { %438 = vmatpush.bf16.msra.mxu1 %v678_v8  ;;  %v229_v29 = vpack.c.bf16 %v226_v25, %v226_v25  ;;  %v224_v34 = vld [vmem:[#allocation2] sm:$0xff] }
  0x25   : > { %451 = vmatpush.bf16.msra.mxu2 %v686_v9 }
  0x27   : > { %426 = vmatpush.bf16.msra.mxu0 %v669_v10 }
  0x28   : > { %439 = vmatpush.bf16.msra.mxu1 %v677_v11 }
  0x29   : > { %452 = vmatpush.bf16.msra.mxu2 %v685_v12 }
  0x2b   : > { %427 = vmatpush.bf16.msra.mxu0 %v668_v13 }
  0x2c   : > { %440 = vmatpush.bf16.msra.mxu1 %v676_v14 }
  0x2d   : > { %453 = vmatpush.bf16.msra.mxu2 %v684_v15 }
  0x2f   : > { %428 = vmatpush.bf16.msra.mxu0 %v667_v16 }
  0x30   : > { %441 = vmatpush.bf16.msra.mxu1 %v675_v17 }
  0x31   : > { %454 = vmatpush.bf16.msra.mxu2 %v683_v18 }
  0x33   : > { %429 = vmatpush.bf16.msra.mxu0 %v666_v19 }
  0x34   : > { %442 = vmatpush.bf16.msra.mxu1 %v674_v20 }
  0x35   : > { %455 = vmatpush.bf16.msra.mxu2 %v682_v21 }
  0x37   : > { %430 = vmatpush.bf16.msra.mxu0 %v665_v22 }
  0x38   : > { %443 = vmatpush.bf16.msra.mxu1 %v673_v23 }
  0x39   : > { %456 = vmatpush.bf16.msra.mxu2 %v681_v26 }
  0x3a   : > { %431 = vmatmul.bf16.vlgmr.msra.gmra.mxu0 %v228_v28 }
  0x3b   : > { %444 = vmatmul.bf16.vlgmr.msra.gmra.mxu1 %v229_v29 }
  0x3c   : > { %457 = vmatmul.bf16.vlgmr.msra.gmra.mxu2 %v230_v30 }
  0xb7   : > { %v432_v31 = vpop.f32.mrf.mxu0 }
  0xb8   : > { %v445_v32 = vpop.f32.mrf.mxu1 }
  0xb9   : > { %v446_v33 = vadd.f32 %v445_v32, %v432_v31 }
  0xbf   : > { %v458_v35 = vpop.f32.mrf.mxu2  ;;  %v434_v37 = vpop.f32.mrf.mxu0 }
  0xc0   : > { %v459_v36 = vadd.f32 %v458_v35, %v446_v33  ;;  %v447_v38 = vpop.f32.mrf.mxu1 }
  0xc2   : > { %v462_v39 = vadd.f32 %v459_v36, %v224_v34 }
  0xc3   : > { %467 = sbr.rel (%p662_p9) target bundleno = 207 (0xcf), region = 40 }
  0xc4   : > { %463 = vst [vmem:[#allocation2] sm:$0xff] %v462_v39 }
  0xc7   : > { %v460_v40 = vpop.f32.mrf.mxu2 }
  0xc8   : > { %v731_v42 = vld [vmem:[%s892_s2] ss:$0 sm:$0xff] }
  0xcb   : > { %v468_v41 = vld [vmem:[#allocation2] sm:$0xff] }
  0xcc   : > { %v473_v43 = vadd.f32 %v731_v42, %v468_v41 }
  0xce   : > { %474 = vst [vmem:[%s830_s26] sm:$0xff] %v473_v43 }
  0xcf PF: > { %s13_s16 = sadd.s32 1, %s770_s16   ;;  %s894_s12 = smov %s762_s14 }
  0xd0   : > { %p10_p10 = scmp.ge.s32.totalorder %s13_s16, 6   ;;  %s895_s13 = smov %s766_s15 }
  0xd1   : > { %s896_s14 = smov %s899_s17  ;;  %s897_s15 = smov %s903_s18 }
  0xd2   :  { %12 = sbr.rel (!%p10_p10) target bundleno = 3 (0x3), region = 73 }

// kernel: _scoring_head_impl.9
= control target key start
LH: loop header
LB: loop body
LE: loop exit
PB: predicated region body
PF: predicated region fallthrough
CT: control target
= control target key end

     0   :  { %s2897_s25 = smov 0   ;;  %s3509_s0 = inlined_call_operand.vmem [shape: f32[64,128], index: 0, kind: input, shape index: {}]   ;;  %s3510_s1 = inlined_call_operand.vmem [shape: f32[2,1,128], index: 1, kind: input, shape index: {}]   ;;  %s3511_s2 = inlined_call_operand.vmem [shape: f32[2,1,128], index: 2, kind: input, shape index: {}]   ;;  %s3512_s3 = inlined_call_operand.vmem [shape: bf16[2,128,128], index: 3, kind: input, shape index: {}]   ;;  %s3513_s4 = inlined_call_operand.vmem [shape: f32[2,1,128], index: 4, kind: input, shape index: {}]   ;;  %s3514_s5 = inlined_call_operand.vmem [shape: bf16[2,128,128], index: 5, kind: input, shape index: {}]   ;;  %s3515_s6 = inlined_call_operand.vmem [shape: f32[2,1,128], index: 6, kind: input, shape index: {}]   ;;  %s3516_s7 = inlined_call_operand.vmem [shape: f32[2,1,128], index: 7, kind: input, shape index: {}]   ;;  %s3517_s8 = inlined_call_operand.vmem [shape: f32[2,1,128], index: 8, kind: input, shape index: {}]   ;;  %s3518_s9 = inlined_call_operand.vmem [shape: bf16[2,128,128], index: 9, kind: input, shape index: {}]   ;;  %s3519_s10 = inlined_call_operand.vmem [shape: f32[2,1,128], index: 10, kind: input, shape index: {}]   ;;  %s3520_s11 = inlined_call_operand.vmem [shape: bf16[2,128,128], index: 11, kind: input, shape index: {}]   ;;  %s3521_s12 = inlined_call_operand.vmem [shape: f32[2,1,128], index: 12, kind: input, shape index: {}]   ;;  %s3522_s13 = inlined_call_operand.vmem [shape: f32[64,128], index: 13, kind: output, shape index: {}]  }
   0x1 LB: > { %s2293_s26 = sadd.s32 4294967295, %s2824_s25   ;;  %p2297_p0 = scmp.ge.s32.totalorder %s2824_s25, 1  ;;  %s2824_s25 = sphi %s2897_s25, %s23_s25  }
   0x2   : > { %p388_p1 = scmp.lt.s32.totalorder %s2824_s25, 3 }
   0x4   : > { %p389_p2 = pnand %p2297_p0, %p388_p1 }
   0x5   : > { %s2298_s27 = sshll.u32 (!%p389_p2), %s2293_s26, 2 }
   0x6   : > { %392 = sbr.rel (%p389_p2) target bundleno = 2465 (0x9a1), region = 72  ;;  %p433_p3 = scmp.lt.s32.totalorder (!%p389_p2), %s2298_s27, 7 }
   0xb   : > { %s3524_s27 = smov (!%p433_p3, %s2298_s27), 7  ;;  %v444_v4 = vlaneseq  ;;  %v2826_v10 = vmov 0.0   ;;  %v2640_v28 = vld [vmem:[%s3512_s3 + $0x38] sm:$0xff]  ;;  %v2639_v29 = vld [vmem:[%s3512_s3 + $0x30] sm:$0xff]  ;;  %v2638_v30 = vld [vmem:[%s3512_s3 + $0x28] sm:$0xff] }
   0xc   : > { %s2299_s28 = sshll.u32 %s3524_s27, 3  ;;  %640 = vmatpush.bf16.msra.mxu0 %v2640_v28  ;;  %v2637_v31 = vld [vmem:[%s3512_s3 + $0x20] sm:$0xff]  ;;  %v2636_v32 = vld [vmem:[%s3512_s3 + $0x18] sm:$0xff]  ;;  %v2635_v33 = vld [vmem:[%s3512_s3 + $0x10] sm:$0xff] }
   0xd   : > { %s436_s14 = scalar_lea.vmem %s3509_s0, %s2299_s28  ;;  %v445_v5 = vand.u32 127, %v444_v4  ;;  %v2634_v34 = vld [vmem:[%s3512_s3 + $0x8] sm:$0xff]  ;;  %v2633_v38 = vld [vmem:[%s3512_s3] sm:$0xff]  ;;  %s442_s23 = scalar_lea.vmem %s3522_s13, %s2299_s28 }
   0xe   : > { %v451_v0 = vld [vmem:[%s436_s14 + $0x10] sm:$0xff]  ;;  %v449_v1 = vld [vmem:[%s436_s14] sm:$0xff]  ;;  %v452_v2 = vld [vmem:[%s436_s14 + $0x18] sm:$0xff] }
   0xf   : > { %459 = vadd.xlane.f32.xlu1 %v451_v0  ;;  %455 = vadd.xlane.f32.xlu0 %v449_v1  ;;  %v450_v3 = vld [vmem:[%s436_s14 + $0x8] sm:$0xff]  ;;  %vm446_vm0 = vcmp.lt.s32.totalorder %v445_v5, 32  ;;  %v2706_v4 = vld [vmem:[%s3510_s1] ss:$0 sm:$0xff] }
  0x10   : > { %v2913_v11 = vsel %vm446_vm0, 1.0, %v2826_v10  ;;  %641 = vmatpush.bf16.msra.mxu0 %v2639_v29 }
  0x14   : > { %642 = vmatpush.bf16.msra.mxu0 %v2638_v30 }
  0x17   : > { %461 = vadd.xlane.f32.xlu1 %v452_v2  ;;  %457 = vadd.xlane.f32.xlu0 %v450_v3 }
  0x18   : > { %643 = vmatpush.bf16.msra.mxu0 %v2637_v31  ;;  %v2708_v31 = vld [vmem:[%s3513_s4] ss:$0 sm:$0xff] }
  0x1c   : > { %644 = vmatpush.bf16.msra.mxu0 %v2636_v32 }
  0x20   : > { %645 = vmatpush.bf16.msra.mxu0 %v2635_v33 }
  0x24   : > { %646 = vmatpush.bf16.msra.mxu0 %v2634_v34  ;;  %v2648_v34 = vld [vmem:[%s3514_s5 + $0x38] sm:$0xff] }
  0x25   : > { %872 = vmatpush.bf16.msra.mxu1 %v2648_v34 }
  0x28   : > { %647 = vmatpush.bf16.msra.mxu0 %v2633_v38 }
  0x82   : > { %v460_v6 = vpop.xlane.xlu1 %459  ;;  %v456_v7 = vpop.xlane.xlu0 %455 }
  0x83   : > { %v465_v8 = vmul.f32 0.03125, %v460_v6  ;;  %v463_v9 = vmul.f32 0.03125, %v456_v7 }
  0x85   : > { %v469_v12 = vsub.f32 %v451_v0, %v465_v8  ;;  %v467_v13 = vsub.f32 %v449_v1, %v463_v9 }
  0x87   : > { %v2916_v14 = vmul.f32 %v2913_v11, %v469_v12  ;;  %v2919_v15 = vmul.f32 %v2913_v11, %v467_v13  ;;  %v2707_v12 = vld [vmem:[%s3511_s2] ss:$0 sm:$0xff] }
  0x89   : > { %v477_v16 = vmul.f32 %v2916_v14, %v2916_v14  ;;  %v475_v17 = vmul.f32 %v2919_v15, %v2919_v15 }
  0x8a   : > { %v462_v18 = vpop.xlane.xlu1 %461  ;;  %v458_v19 = vpop.xlane.xlu0 %457 }
  0x8b   : > { %v466_v20 = vmul.f32 0.03125, %v462_v18  ;;  %v464_v21 = vmul.f32 0.03125, %v458_v19  ;;  %483 = vadd.xlane.f32.xlu0 %v477_v16  ;;  %479 = vadd.xlane.f32.xlu2 %v475_v17 }
  0x8d   : > { %v470_v22 = vsub.f32 %v452_v2, %v466_v20  ;;  %v468_v23 = vsub.f32 %v450_v3, %v464_v21 }
  0x8f   : > { %v2926_v24 = vmul.f32 %v2913_v11, %v470_v22  ;;  %v2929_v25 = vmul.f32 %v2913_v11, %v468_v23 }
  0x91   : > { %v478_v26 = vmul.f32 %v2926_v24, %v2926_v24  ;;  %v476_v27 = vmul.f32 %v2929_v25, %v2929_v25 }
  0x93   : > { %485 = vadd.xlane.f32.xlu1 %v478_v26  ;;  %481 = vadd.xlane.f32.xlu2 %v476_v27 }
  0xfe   : > { %v480_v35 = vpop.xlane.xlu2 %479  ;;  %v484_v37 = vpop.xlane.xlu0 %483 }
  0xff   : > { %v487_v36 = vmul.f32 0.03125, %v480_v35  ;;  %v489_v40 = vmul.f32 0.03125, %v484_v37 }
 0x101   : > { %v491_v39 = vadd.f32 1e-05, %v487_v36  ;;  %v493_v41 = vadd.f32 1e-05, %v489_v40 }
 0x103   : > { %2722 = vrsqrt.f32 %v491_v39  ;;  %vm501_vm2 = vweird.f32 %v491_v39  ;;  %vm521_vm9 = vweird.f32 %v493_v41 }
 0x104   : > { %2724 = vrsqrt.f32 %v493_v41 }
 0x106   : > { %v486_v42 = vpop.xlane.xlu1 %485  ;;  %v482_v43 = vpop.xlane.xlu2 %481 }
 0x107   : > { %v490_v44 = vmul.f32 0.03125, %v486_v42  ;;  %v488_v45 = vmul.f32 0.03125, %v482_v43 }
 0x109   : > { %v2723_v46 = vpop.eup %2722  ;;  %v494_v47 = vadd.f32 1e-05, %v490_v44  ;;  %v492_v48 = vadd.f32 1e-05, %v488_v45 }
 0x10a   : > { %v496_v49 = vmul.f32 %v2723_v46, %v491_v39  ;;  %v2725_v52 = vpop.eup %2724  ;;  %vm502_vm1 = vweird.f32 %v2723_v46  ;;  %v2647_v39 = vld [vmem:[%s3514_s5 + $0x30] sm:$0xff] }
 0x10b   : > { %2726 = vrsqrt.f32 %v494_v47  ;;  %v516_v58 = vmul.f32 %v2725_v52, %v493_v41  ;;  %vm503_vm3 = vmor %vm501_vm2, %vm502_vm1  ;;  %vm511_vm5 = vweird.f32 %v492_v48  ;;  %vm531_vm7 = vweird.f32 %v494_v47  ;;  %873 = vmatpush.bf16.msra.mxu1 %v2647_v39  ;;  %v2646_v41 = vld [vmem:[%s3514_s5 + $0x28] sm:$0xff] }
 0x10c   : > { %v497_v50 = vmul.f32 %v2723_v46, %v496_v49  ;;  %2728 = vrsqrt.f32 %v492_v48  ;;  %vm522_vm10 = vweird.f32 %v2725_v52 }
 0x10d   : > { %v517_v62 = vmul.f32 %v2725_v52, %v516_v58  ;;  %vm523_vm12 = vmor %vm521_vm9, %vm522_vm10 }
 0x10e   : > { %v498_v51 = vmul.f32 0.5, %v497_v50 }
 0x10f   : > { %v518_v5 = vmul.f32 0.5, %v517_v62  ;;  %874 = vmatpush.bf16.msra.mxu1 %v2646_v41 }
 0x110   : > { %v499_v53 = vsub.f32 1.5, %v498_v51  ;;  %v2644_v51 = vld [vmem:[%s3514_s5 + $0x18] sm:$0xff] }
 0x111   : > { %v2727_v54 = vpop.eup %2726  ;;  %v519_v13 = vsub.f32 1.5, %v518_v5 }
 0x112   : > { %v2729_v55 = vpop.eup %2728  ;;  %v526_v56 = vmul.f32 %v2727_v54, %v494_v47  ;;  %v500_v57 = vmul.f32 %v2723_v46, %v499_v53  ;;  %vm532_vm8 = vweird.f32 %v2727_v54  ;;  %v2645_v47 = vld [vmem:[%s3514_s5 + $0x20] sm:$0xff] }
 0x113   : > { %v506_v59 = vmul.f32 %v2729_v55, %v492_v48  ;;  %vm512_vm4 = vweird.f32 %v2729_v55  ;;  %vm533_vm11 = vmor %vm531_vm7, %vm532_vm8  ;;  %v520_v19 = vmul.f32 %v2725_v52, %v519_v13  ;;  %875 = vmatpush.bf16.msra.mxu1 %v2645_v47 }
 0x114   : > { %v527_v60 = vmul.f32 %v2727_v54, %v526_v56  ;;  %v504_v0 = vsel %vm503_vm3, %v2723_v46, %v500_v57  ;;  %vm513_vm6 = vmor %vm511_vm5, %vm512_vm4  ;;  %v2643_v57 = vld [vmem:[%s3514_s5 + $0x10] sm:$0xff] }
 0x115   : > { %v507_v61 = vmul.f32 %v2729_v55, %v506_v59  ;;  %v535_v3 = vmul.f32 %v504_v0, %v2919_v15  ;;  %v524_v22 = vsel %vm523_vm12, %v2725_v52, %v520_v19 }
 0x116   : > { %v528_v1 = vmul.f32 0.5, %v527_v60 }
 0x117   : > { %v508_v63 = vmul.f32 0.5, %v507_v61  ;;  %v542_v10 = vmul.f32 %v2706_v4, %v535_v3  ;;  %876 = vmatpush.bf16.msra.mxu1 %v2644_v51  ;;  %v2642_v3 = vld [vmem:[%s3514_s5 + $0x8] sm:$0xff] }
 0x118   : > { %v529_v7 = vsub.f32 1.5, %v528_v1 }
 0x119   : > { %v509_v2 = vsub.f32 1.5, %v508_v63  ;;  %v2967_v17 = vadd.f32 %v2707_v12, %v542_v10 }
 0x11a   : > { %v530_v16 = vmul.f32 %v2727_v54, %v529_v7 }
 0x11b   : > { %v510_v6 = vmul.f32 %v2729_v55, %v509_v2  ;;  %877 = vmatpush.bf16.msra.mxu1 %v2643_v57 }
 0x11c   : > { %v534_v21 = vsel %vm533_vm11, %v2727_v54, %v530_v16 }
 0x11d   : > { %v514_v8 = vsel %vm513_vm6, %v2729_v55, %v510_v6  ;;  %v538_v23 = vmul.f32 %v534_v21, %v2926_v24 }
 0x11e   : > { %v536_v9 = vmul.f32 %v514_v8, %v2929_v25  ;;  %v537_v25 = vmul.f32 %v524_v22, %v2916_v14 }
 0x11f   : > { %v545_v26 = vmul.f32 %v2706_v4, %v538_v23  ;;  %878 = vmatpush.bf16.msra.mxu1 %v2642_v3 }
 0x120   : > { %v543_v15 = vmul.f32 %v2706_v4, %v536_v9  ;;  %v544_v27 = vmul.f32 %v2706_v4, %v537_v25 }
 0x121   : > { %v2975_v28 = vadd.f32 %v2707_v12, %v545_v26 }
 0x122   : > { %v2969_v18 = vadd.f32 %v2707_v12, %v543_v15  ;;  %v2977_v29 = vadd.f32 %v2707_v12, %v544_v27  ;;  %v2641_v15 = vld [vmem:[%s3514_s5] sm:$0xff] }
 0x123   : > { %879 = vmatpush.bf16.msra.mxu1 %v2641_v15 }
 0x124   : > { %v587_v20 = vpack.c.bf16 %v2969_v18, %v2967_v17  ;;  %v588_v30 = vpack.c.bf16 %v2975_v28, %v2977_v29 }
 0x126   : > { %648 = vmatmul.bf16.vlgmr.msra.gmra.mxu0 %v587_v20 }
 0x136   : > { %653 = vmatmul.bf16.gmra.mxu0 %v588_v30 }
 0x1a3   : > { %v649_v32 = vpop.f32.mrf.mxu0 }
 0x1a4   : > { %v2984_v33 = vadd.f32 %v2708_v31, %v649_v32 }
 0x1a6   : > { %v2987_v24 = vmul.f32 0.70710677, %v2984_v33 }
 0x1a8   : > { %v667_v14 = vand.u32 2147483647, %v2987_v24 }
 0x1aa   : > { %v671_v35 = vmul.f32 0.3275911, %v667_v14  ;;  %v775_v4 = vmul.f32 %v667_v14, %v667_v14 }
 0x1ab   : > { %v651_v36 = vpop.f32.mrf.mxu0 }
 0x1ac   : > { %v675_v37 = vadd.f32 1.0, %v671_v35  ;;  %v2993_v38 = vadd.f32 %v2708_v31, %v651_v36  ;;  %v779_v16 = vsub.f32 0.0, %v775_v4 }
 0x1ae   : > { %2730 = vrcp.f32 %v675_v37  ;;  %v2999_v40 = vmul.f32 0.70710677, %v2993_v38  ;;  %v690_v55 = vand.u32 2147483648, %v675_v37  ;;  %vm684_vm14 = vweird.f32 %v675_v37 }
 0x1af   : > { %v688_v59 = vand.u32 2147483647, %v675_v37 }
 0x1b0   : > { %v3005_v42 = vand.u32 2147483647, %v2999_v40  ;;  %v691_v1 = vor.u32 1.1754944e-38, %v690_v55 }
 0x1b1   : > { %vm689_vm0 = vcmp.eq.f32.partialorder %v688_v59, 8.507059e+37 }
 0x1b2   : > { %v672_v43 = vmul.f32 0.3275911, %v3005_v42  ;;  %v776_v35 = vmul.f32 %v3005_v42, %v3005_v42 }
 0x1b3   : > { %v654_v44 = vpop.f32.mrf.mxu0 }
 0x1b4   : > { %v2731_v45 = vpop.eup %2730  ;;  %v3008_v46 = vadd.f32 %v2708_v31, %v654_v44  ;;  %v676_v49 = vadd.f32 1.0, %v672_v43 }
 0x1b5   : > { %v680_v48 = vmul.f32 %v2731_v45, %v675_v37  ;;  %vm685_vm13 = vweird.f32 %v2731_v45 }
 0x1b6   : > { %v3014_v50 = vmul.f32 0.70710677, %v3008_v46  ;;  %2732 = vrcp.f32 %v676_v49  ;;  %vm686_vm15 = vmor %vm684_vm14, %vm685_vm13  ;;  %v705_v8 = vand.u32 2147483648, %v676_v49  ;;  %v703_v12 = vand.u32 2147483647, %v676_v49 }
 0x1b7   : > { %v681_v52 = vsub.f32 1.0, %v680_v48  ;;  %vm699_vm2 = vweird.f32 %v676_v49  ;;  %v780_v48 = vsub.f32 0.0, %v776_v35  ;;  %vm799_vm13 = vcmp.lt.f32.partialorder %v2987_v24, 0.0 }
 0x1b8   : > { %v3020_v53 = vand.u32 2147483647, %v3014_v50  ;;  %v706_v23 = vor.u32 1.1754944e-38, %v705_v8  ;;  %vm704_vm4 = vcmp.eq.f32.partialorder %v703_v12, 8.507059e+37  ;;  %vm800_vm14 = vcmp.lt.f32.partialorder %v2999_v40, 0.0 }
 0x1b9   : > { %v682_v54 = vmul.f32 %v2731_v45, %v681_v52  ;;  %v660_v24 = vmul.f32 0.5, %v2993_v38 }
 0x1ba   : > { %v673_v56 = vmul.f32 0.3275911, %v3020_v53  ;;  %v777_v55 = vmul.f32 %v3020_v53, %v3020_v53 }
 0x1bb   : > { %v683_v58 = vadd.f32 %v2731_v45, %v682_v54  ;;  %v656_v60 = vpop.f32.mrf.mxu0 }
 0x1bc   : > { %v677_v61 = vadd.f32 1.0, %v673_v56  ;;  %v3026_v62 = vadd.f32 %v2708_v31, %v656_v60  ;;  %v2733_v63 = vpop.eup %2732  ;;  %v783_v31 = vmul.f32 1.442695, %v779_v16  ;;  %v785_v60 = vmul.f32 1.442695, %v780_v48 }
 0x1bd   : > { %v687_v0 = vsel %vm686_vm15, %v2731_v45, %v683_v58  ;;  %v695_v2 = vmul.f32 %v2733_v63, %v676_v49  ;;  %vm700_vm1 = vweird.f32 %v2733_v63  ;;  %v781_v3 = vsub.f32 0.0, %v777_v55 }
 0x1be   : > { %2734 = vrcp.f32 %v677_v61  ;;  %v3032_v6 = vmul.f32 0.70710677, %v3026_v62  ;;  %v692_v7 = vsel %vm689_vm0, %v691_v1, %v687_v0  ;;  %vm701_vm3 = vmor %vm699_vm2, %vm700_vm1  ;;  %v718_v36 = vand.u32 2147483647, %v677_v61 }
 0x1bf   : > { %v696_v5 = vsub.f32 1.0, %v695_v2  ;;  %v739_v9 = vmul.f32 1.0614054, %v692_v7  ;;  %v720_v37 = vand.u32 2147483648, %v677_v61  ;;  %vm714_vm6 = vweird.f32 %v677_v61 }
 0x1c0   : > { %v3035_v13 = vand.u32 2147483647, %v3032_v6  ;;  %vm719_vm8 = vcmp.eq.f32.partialorder %v718_v36, 8.507059e+37  ;;  %v659_v55 = vmul.f32 0.5, %v2984_v33  ;;  %vm801_vm15 = vcmp.lt.f32.partialorder %v3014_v50, 0.0 }
 0x1c1   : > { %v697_v10 = vmul.f32 %v2733_v63, %v696_v5  ;;  %v743_v19 = vadd.f32 -1.4531521, %v739_v9  ;;  %v721_v49 = vor.u32 1.1754944e-38, %v720_v37  ;;  %vm802_vm0 = vcmp.lt.f32.partialorder %v3032_v6, 0.0  ;;  %v2709_v50 = vld [vmem:[%s3515_s6] ss:$0 sm:$0xff] }
 0x1c2   : > { %v674_v22 = vmul.f32 0.3275911, %v3035_v13 }
 0x1c3   : > { %v698_v21 = vadd.f32 %v2733_v63, %v697_v10  ;;  %v747_v26 = vmul.f32 %v743_v19, %v692_v7 }
 0x1c4   : > { %v2735_v20 = vpop.eup %2734  ;;  %v678_v27 = vadd.f32 1.0, %v674_v22  ;;  %v787_v22 = vmul.f32 1.442695, %v781_v3 }
 0x1c5   : > { %v710_v25 = vmul.f32 %v2735_v20, %v677_v61  ;;  %v702_v30 = vsel %vm701_vm3, %v2733_v63, %v698_v21  ;;  %v751_v34 = vadd.f32 1.4214138, %v747_v26  ;;  %vm715_vm5 = vweird.f32 %v2735_v20 }
 0x1c6   : > { %v707_v14 = vsel %vm704_vm4, %v706_v23, %v702_v30  ;;  %2736 = vrcp.f32 %v678_v27  ;;  %vm716_vm7 = vmor %vm714_vm6, %vm715_vm5  ;;  %v733_v4 = vand.u32 2147483647, %v678_v27  ;;  %v735_v5 = vand.u32 2147483648, %v678_v27 }
 0x1c7   : > { %v711_v32 = vsub.f32 1.0, %v710_v25  ;;  %v740_v41 = vmul.f32 1.0614054, %v707_v14  ;;  %v755_v43 = vmul.f32 %v751_v34, %v692_v7  ;;  %2738 = vpow2.f32 %v783_v31 }
 0x1c8   : > { %2740 = vpow2.f32 %v785_v60  ;;  %vm729_vm10 = vweird.f32 %v678_v27  ;;  %vm734_vm12 = vcmp.eq.f32.partialorder %v733_v4, 8.507059e+37  ;;  %v778_v25 = vmul.f32 %v3035_v13, %v3035_v13 }
 0x1c9   : > { %v712_v39 = vmul.f32 %v2735_v20, %v711_v32  ;;  %v744_v45 = vadd.f32 -1.4531521, %v740_v41  ;;  %v759_v47 = vadd.f32 -0.28449672, %v755_v43  ;;  %2742 = vpow2.f32 %v787_v22 }
 0x1cb   : > { %v713_v44 = vadd.f32 %v2735_v20, %v712_v39  ;;  %v748_v51 = vmul.f32 %v744_v45, %v707_v14  ;;  %v763_v52 = vmul.f32 %v759_v47, %v692_v7  ;;  %v782_v39 = vsub.f32 0.0, %v778_v25 }
 0x1cc   : > { %v2737_v42 = vpop.eup %2736 }
 0x1cd   : > { %v717_v54 = vsel %vm716_vm7, %v2735_v20, %v713_v44  ;;  %v725_v57 = vmul.f32 %v2737_v42, %v678_v27  ;;  %v752_v58 = vadd.f32 1.4214138, %v748_v51  ;;  %v767_v59 = vadd.f32 0.2548296, %v763_v52  ;;  %v2739_v2 = vpop.eup %2738 }
 0x1ce   : > { %v722_v56 = vsel %vm719_vm8, %v721_v49, %v717_v54  ;;  %vm730_vm9 = vweird.f32 %v2737_v42  ;;  %v736_v20 = vor.u32 1.1754944e-38, %v735_v5  ;;  %v2741_v35 = vpop.eup %2740 }
 0x1cf   : > { %v741_v61 = vmul.f32 1.0614054, %v722_v56  ;;  %v726_v63 = vsub.f32 1.0, %v725_v57  ;;  %v756_v0 = vmul.f32 %v752_v58, %v707_v14  ;;  %v771_v1 = vmul.f32 %v767_v59, %v692_v7  ;;  %vm731_vm11 = vmor %vm729_vm10, %vm730_vm9  ;;  %v2743_v52 = vpop.eup %2742 }
 0x1d1   : > { %v745_v8 = vadd.f32 -1.4531521, %v741_v61  ;;  %v727_v9 = vmul.f32 %v2737_v42, %v726_v63  ;;  %v760_v10 = vadd.f32 -0.28449672, %v756_v0  ;;  %v791_v12 = vmul.f32 %v2739_v2, %v771_v1 }
 0x1d3   : > { %v749_v53 = vmul.f32 %v745_v8, %v722_v56  ;;  %v728_v15 = vadd.f32 %v2737_v42, %v727_v9  ;;  %v764_v16 = vmul.f32 %v760_v10, %v707_v14  ;;  %v795_v19 = vsub.f32 1.0, %v791_v12 }
 0x1d4   : > { %v661_v10 = vmul.f32 0.5, %v3008_v46  ;;  %v662_v12 = vmul.f32 0.5, %v3026_v62 }
 0x1d5   : > { %v753_v21 = vadd.f32 1.4214138, %v749_v53  ;;  %v768_v7 = vadd.f32 0.2548296, %v764_v16  ;;  %v732_v23 = vsel %vm731_vm11, %v2737_v42, %v728_v15  ;;  %v803_v32 = vsub.f32 0.0, %v795_v19 }
 0x1d6   : > { %v737_v26 = vsel %vm734_vm12, %v736_v20, %v732_v23 }
 0x1d7   : > { %v757_v30 = vmul.f32 %v753_v21, %v722_v56  ;;  %v772_v31 = vmul.f32 %v768_v7, %v707_v14  ;;  %v742_v34 = vmul.f32 1.0614054, %v737_v26  ;;  %v807_v44 = vsel %vm799_vm13, %v803_v32, %v795_v19 }
 0x1d8   : > { %v789_v14 = vmul.f32 1.442695, %v782_v39  ;;  %v811_v49 = vadd.f32 1.0, %v807_v44 }
 0x1d9   : > { %v761_v36 = vadd.f32 -0.28449672, %v757_v30  ;;  %v792_v27 = vmul.f32 %v2741_v35, %v772_v31  ;;  %v746_v37 = vadd.f32 -1.4531521, %v742_v34 }
 0x1da   : > { %2744 = vpow2.f32 %v789_v14  ;;  %v815_v60 = vmul.f32 %v811_v49, %v659_v55  ;;  %v2652_v55 = vld [vmem:[%s3518_s9 + $0x18] sm:$0xff] }
 0x1db   : > { %v765_v41 = vmul.f32 %v761_v36, %v722_v56  ;;  %v796_v43 = vsub.f32 1.0, %v792_v27  ;;  %v750_v45 = vmul.f32 %v746_v37, %v737_v26 }
 0x1dd   : > { %v769_v47 = vadd.f32 0.2548296, %v765_v41  ;;  %v804_v48 = vsub.f32 0.0, %v796_v43  ;;  %v754_v13 = vadd.f32 1.4214138, %v750_v45 }
 0x1df   : > { %v773_v51 = vmul.f32 %v769_v47, %v722_v56  ;;  %v808_v54 = vsel %vm800_vm14, %v804_v48, %v796_v43  ;;  %v758_v42 = vmul.f32 %v754_v13, %v737_v26 }
 0x1e0   : > { %v812_v57 = vadd.f32 1.0, %v808_v54  ;;  %v2745_v3 = vpop.eup %2744  ;;  %v2654_v54 = vld [vmem:[%s3518_s9 + $0x28] sm:$0xff] }
 0x1e1   : > { %v793_v58 = vmul.f32 %v2743_v52, %v773_v51  ;;  %v762_v59 = vadd.f32 -0.28449672, %v758_v42  ;;  %v2656_v51 = vld [vmem:[%s3518_s9 + $0x38] sm:$0xff]  ;;  %v2655_v52 = vld [vmem:[%s3518_s9 + $0x30] sm:$0xff]  ;;  %v2653_v42 = vld [vmem:[%s3518_s9 + $0x20] sm:$0xff] }
 0x1e2   : > { %v816_v61 = vmul.f32 %v812_v57, %v660_v24  ;;  %1082 = vmatpush.bf16.msra.mxu2 %v2656_v51  ;;  %v2651_v24 = vld [vmem:[%s3518_s9 + $0x10] sm:$0xff]  ;;  %v2650_v57 = vld [vmem:[%s3518_s9 + $0x8] sm:$0xff] }
 0x1e3   : > { %v766_v63 = vmul.f32 %v762_v59, %v737_v26  ;;  %v797_v0 = vsub.f32 1.0, %v793_v58 }
 0x1e4   : > { %v819_v1 = vpack.c.bf16 %v816_v61, %v815_v60  ;;  %v2649_v61 = vld [vmem:[%s3518_s9] sm:$0xff] }
 0x1e5   : > { %v770_v40 = vadd.f32 0.2548296, %v766_v63  ;;  %v805_v56 = vsub.f32 0.0, %v797_v0 }
 0x1e6   : > { %880 = vmatmul.bf16.vlgmr.msra.gmra.mxu1 %v819_v1  ;;  %1083 = vmatpush.bf16.msra.mxu2 %v2655_v52 }
 0x1e7   : > { %v774_v2 = vmul.f32 %v770_v40, %v737_v26  ;;  %v809_v5 = vsel %vm801_vm15, %v805_v56, %v797_v0 }
 0x1e8   : > { %v813_v8 = vadd.f32 1.0, %v809_v5 }
 0x1e9   : > { %v794_v4 = vmul.f32 %v2745_v3, %v774_v2 }
 0x1ea   : > { %v817_v15 = vmul.f32 %v813_v8, %v661_v10  ;;  %1084 = vmatpush.bf16.msra.mxu2 %v2654_v54 }
 0x1eb   : > { %v798_v33 = vsub.f32 1.0, %v794_v4 }
 0x1ed   : > { %v806_v38 = vsub.f32 0.0, %v798_v33 }
 0x1ee   : > { %1085 = vmatpush.bf16.msra.mxu2 %v2653_v42 }
 0x1ef   : > { %v810_v9 = vsel %vm802_vm0, %v806_v38, %v798_v33 }
 0x1f0   : > { %v814_v53 = vadd.f32 1.0, %v810_v9 }
 0x1f2   : > { %v818_v16 = vmul.f32 %v814_v53, %v662_v12  ;;  %1086 = vmatpush.bf16.msra.mxu2 %v2652_v55 }
 0x1f4   : > { %v820_v19 = vpack.c.bf16 %v818_v16, %v817_v15 }
 0x1f6   : > { %885 = vmatmul.bf16.gmra.mxu1 %v820_v19  ;;  %1087 = vmatpush.bf16.msra.mxu2 %v2651_v24 }
 0x1fa   : > { %1088 = vmatpush.bf16.msra.mxu2 %v2650_v57 }
 0x1fe   : > { %1089 = vmatpush.bf16.msra.mxu2 %v2649_v61 }
 0x263   : > { %v881_v20 = vpop.f32.mrf.mxu1 }
 0x264   : > { %v882_v21 = vadd.f32 %v2709_v50, %v881_v20 }
 0x266   : > { %v3059_v22 = vadd.f32 %v882_v21, %v2967_v17 }
 0x268   : > { %897 = vadd.xlane.f32.xlu2 %v3059_v22 }
 0x26b   : > { %v883_v6 = vpop.f32.mrf.mxu1 }
 0x26c   : > { %v884_v46 = vadd.f32 %v2709_v50, %v883_v6 }
 0x26e   : > { %v3063_v62 = vadd.f32 %v884_v46, %v2969_v18  ;;  %v2710_v46 = vld [vmem:[%s3516_s7] ss:$0 sm:$0xff] }
 0x270   : > { %899 = vadd.xlane.f32.xlu0 %v3063_v62 }
 0x273   : > { %v886_v7 = vpop.f32.mrf.mxu1 }
 0x274   : > { %v887_v23 = vadd.f32 %v2709_v50, %v886_v7 }
 0x276   : > { %v3067_v25 = vadd.f32 %v887_v23, %v2977_v29 }
 0x278   : > { %901 = vadd.xlane.f32.xlu1 %v3067_v25 }
 0x27b   : > { %v888_v26 = vpop.f32.mrf.mxu1 }
 0x27c   : > { %v889_v30 = vadd.f32 %v2709_v50, %v888_v26 }
 0x27e   : > { %v3071_v17 = vadd.f32 %v889_v30, %v2975_v28 }
 0x280   : > { %903 = vadd.xlane.f32.xlu2 %v3071_v17 }
 0x2db   : > { %v898_v31 = vpop.xlane.xlu2 %897 }
 0x2dc   : > { %v905_v32 = vmul.f32 0.03125, %v898_v31 }
 0x2de   : > { %v909_v18 = vsub.f32 %v3059_v22, %v905_v32 }
 0x2e0   : > { %v3076_v34 = vmul.f32 %v2913_v11, %v909_v18  ;;  %v2711_v18 = vld [vmem:[%s3517_s8] ss:$0 sm:$0xff] }
 0x2e2   : > { %v917_v29 = vmul.f32 %v3076_v34, %v3076_v34 }
 0x2e3   : > { %v900_v35 = vpop.xlane.xlu0 %899 }
 0x2e4   : > { %v906_v36 = vmul.f32 0.03125, %v900_v35  ;;  %921 = vadd.xlane.f32.xlu0 %v917_v29 }
 0x2e6   : > { %v910_v27 = vsub.f32 %v3063_v62, %v906_v36 }
 0x2e8   : > { %v3082_v28 = vmul.f32 %v2913_v11, %v910_v27 }
 0x2ea   : > { %v918_v37 = vmul.f32 %v3082_v28, %v3082_v28 }
 0x2eb   : > { %v902_v39 = vpop.xlane.xlu1 %901 }
 0x2ec   : > { %v907_v41 = vmul.f32 0.03125, %v902_v39  ;;  %923 = vadd.xlane.f32.xlu1 %v918_v37 }
 0x2ee   : > { %v911_v43 = vsub.f32 %v3067_v25, %v907_v41 }
 0x2f0   : > { %v3088_v44 = vmul.f32 %v2913_v11, %v911_v43 }
 0x2f2   : > { %v919_v45 = vmul.f32 %v3088_v44, %v3088_v44 }
 0x2f3   : > { %v904_v47 = vpop.xlane.xlu2 %903 }
 0x2f4   : > { %v908_v48 = vmul.f32 0.03125, %v904_v47  ;;  %925 = vadd.xlane.f32.xlu2 %v919_v45 }
 0x2f6   : > { %v912_v13 = vsub.f32 %v3071_v17, %v908_v48 }
 0x2f8   : > { %v3094_v14 = vmul.f32 %v2913_v11, %v912_v13 }
 0x2fa   : > { %v920_v49 = vmul.f32 %v3094_v14, %v3094_v14 }
 0x2fc   : > { %927 = vadd.xlane.f32.xlu0 %v920_v49 }
 0x357   : > { %v922_v58 = vpop.xlane.xlu0 %921 }
 0x358   : > { %v929_v59 = vmul.f32 0.03125, %v922_v58  ;;  %v2712_v58 = vld [vmem:[%s3519_s10] ss:$0 sm:$0xff] }
 0x35a   : > { %v933_v60 = vadd.f32 1e-05, %v929_v59 }
 0x35c   : > { %2746 = vrsqrt.f32 %v933_v60  ;;  %vm943_vm2 = vweird.f32 %v933_v60 }
 0x35f   : > { %v924_v63 = vpop.xlane.xlu1 %923 }
 0x360   : > { %v930_v0 = vmul.f32 0.03125, %v924_v63 }
 0x362   : > { %v2747_v1 = vpop.eup %2746  ;;  %v934_v40 = vadd.f32 1e-05, %v930_v0 }
 0x363   : > { %v938_v2 = vmul.f32 %v2747_v1, %v933_v60  ;;  %vm944_vm1 = vweird.f32 %v2747_v1 }
 0x364   : > { %2748 = vrsqrt.f32 %v934_v40  ;;  %vm945_vm3 = vmor %vm943_vm2, %vm944_vm1  ;;  %vm953_vm5 = vweird.f32 %v934_v40 }
 0x365   : > { %v939_v56 = vmul.f32 %v2747_v1, %v938_v2  ;;  %v2663_v2 = vld [vmem:[%s3520_s11 + $0x30] sm:$0xff] }
 0x367   : > { %v940_v3 = vmul.f32 0.5, %v939_v56  ;;  %v926_v4 = vpop.xlane.xlu2 %925 }
 0x368   : > { %v931_v33 = vmul.f32 0.03125, %v926_v4 }
 0x369   : > { %v941_v5 = vsub.f32 1.5, %v940_v3  ;;  %v2662_v3 = vld [vmem:[%s3520_s11 + $0x28] sm:$0xff] }
 0x36a   : > { %v2749_v38 = vpop.eup %2748  ;;  %v935_v8 = vadd.f32 1e-05, %v931_v33 }
 0x36b   : > { %v942_v9 = vmul.f32 %v2747_v1, %v941_v5  ;;  %v948_v10 = vmul.f32 %v2749_v38, %v934_v40  ;;  %vm954_vm4 = vweird.f32 %v2749_v38 }
 0x36c   : > { %2750 = vrsqrt.f32 %v935_v8  ;;  %vm955_vm6 = vmor %vm953_vm5, %vm954_vm4  ;;  %vm963_vm8 = vweird.f32 %v935_v8 }
 0x36d   : > { %v949_v12 = vmul.f32 %v2749_v38, %v948_v10  ;;  %v946_v16 = vsel %vm945_vm3, %v2747_v1, %v942_v9  ;;  %v2661_v9 = vld [vmem:[%s3520_s11 + $0x20] sm:$0xff] }
 0x36e   : > { %v977_v6 = vmul.f32 %v946_v16, %v3076_v34 }
 0x36f   : > { %v950_v53 = vmul.f32 0.5, %v949_v12  ;;  %v928_v15 = vpop.xlane.xlu0 %927 }
 0x370   : > { %v932_v19 = vmul.f32 0.03125, %v928_v15  ;;  %v984_v32 = vmul.f32 %v2710_v46, %v977_v6  ;;  %v2660_v15 = vld [vmem:[%s3520_s11 + $0x18] sm:$0xff]  ;;  %v2659_v6 = vld [vmem:[%s3520_s11 + $0x10] sm:$0xff] }
 0x371   : > { %v951_v50 = vsub.f32 1.5, %v950_v53 }
 0x372   : > { %v2751_v20 = vpop.eup %2750  ;;  %v936_v21 = vadd.f32 1e-05, %v932_v19  ;;  %v991_v27 = vadd.f32 %v2711_v18, %v984_v32 }
 0x373   : > { %v952_v7 = vmul.f32 %v2749_v38, %v951_v50  ;;  %v958_v23 = vmul.f32 %v2751_v20, %v935_v8  ;;  %vm964_vm7 = vweird.f32 %v2751_v20 }
 0x374   : > { %2752 = vrsqrt.f32 %v936_v21  ;;  %vm965_vm9 = vmor %vm963_vm8, %vm964_vm7  ;;  %vm973_vm11 = vweird.f32 %v936_v21 }
 0x375   : > { %v959_v26 = vmul.f32 %v2751_v20, %v958_v23  ;;  %v956_v30 = vsel %vm955_vm6, %v2749_v38, %v952_v7 }
 0x376   : > { %v978_v31 = vmul.f32 %v956_v30, %v3082_v28 }
 0x377   : > { %v960_v29 = vmul.f32 0.5, %v959_v26 }
 0x378   : > { %v985_v34 = vmul.f32 %v2710_v46, %v978_v31 }
 0x379   : > { %v961_v35 = vsub.f32 1.5, %v960_v29 }
 0x37a   : > { %v2753_v36 = vpop.eup %2752  ;;  %v992_v37 = vadd.f32 %v2711_v18, %v985_v34  ;;  %v2658_v34 = vld [vmem:[%s3520_s11 + $0x8] sm:$0xff] }
 0x37b   : > { %v962_v39 = vmul.f32 %v2751_v20, %v961_v35  ;;  %v968_v41 = vmul.f32 %v2753_v36, %v936_v21  ;;  %vm974_vm10 = vweird.f32 %v2753_v36 }
 0x37c   : > { %v1029_v43 = vpack.c.bf16 %v992_v37, %v991_v27  ;;  %vm975_vm12 = vmor %vm973_vm11, %vm974_vm10 }
 0x37d   : > { %v969_v45 = vmul.f32 %v2753_v36, %v968_v41  ;;  %v966_v47 = vsel %vm965_vm9, %v2751_v20, %v962_v39 }
 0x37e   : > { %1090 = vmatmul.bf16.vlgmr.msra.gmra.mxu2 %v1029_v43  ;;  %v979_v13 = vmul.f32 %v966_v47, %v3088_v44  ;;  %v2657_v47 = vld [vmem:[%s3520_s11] sm:$0xff] }
 0x37f   : > { %v970_v28 = vmul.f32 0.5, %v969_v45 }
 0x380   : > { %v986_v54 = vmul.f32 %v2710_v46, %v979_v13 }
 0x381   : > { %v971_v48 = vsub.f32 1.5, %v970_v28 }
 0x382   : > { %v993_v55 = vadd.f32 %v2711_v18, %v986_v54 }
 0x383   : > { %v972_v49 = vmul.f32 %v2753_v36, %v971_v48 }
 0x385   : > { %v976_v51 = vsel %vm975_vm12, %v2753_v36, %v972_v49 }
 0x386   : > { %v980_v52 = vmul.f32 %v976_v51, %v3094_v14  ;;  %v2664_v14 = vld [vmem:[%s3520_s11 + $0x38] sm:$0xff] }
 0x387   : > { %1314 = vmatpush.bf16.msra.mxu3 %v2664_v14 }
 0x388   : > { %v987_v42 = vmul.f32 %v2710_v46, %v980_v52 }
 0x38a   : > { %v994_v24 = vadd.f32 %v2711_v18, %v987_v42 }
 0x38b   : > { %1315 = vmatpush.bf16.msra.mxu3 %v2663_v2 }
 0x38c   : > { %v1030_v57 = vpack.c.bf16 %v994_v24, %v993_v55 }
 0x38e   : > { %1095 = vmatmul.bf16.gmra.mxu2 %v1030_v57 }
 0x38f   : > { %1316 = vmatpush.bf16.msra.mxu3 %v2662_v3 }
 0x393   : > { %1317 = vmatpush.bf16.msra.mxu3 %v2661_v9 }
 0x397   : > { %1318 = vmatpush.bf16.msra.mxu3 %v2660_v15 }
 0x39b   : > { %1319 = vmatpush.bf16.msra.mxu3 %v2659_v6 }
 0x39f   : > { %1320 = vmatpush.bf16.msra.mxu3 %v2658_v34 }
 0x3a3   : > { %1321 = vmatpush.bf16.msra.mxu3 %v2657_v47 }
 0x401   : > { %v1091_v59 = vpop.f32.mrf.mxu2 }
 0x402   : > { %v3135_v60 = vadd.f32 %v2712_v58, %v1091_v59 }
 0x404   : > { %v3138_v44 = vmul.f32 0.70710677, %v3135_v60 }
 0x406   : > { %v1109_v61 = vand.u32 2147483647, %v3138_v44 }
 0x408   : > { %v1113_v63 = vmul.f32 0.3275911, %v1109_v61  ;;  %v1217_v35 = vmul.f32 %v1109_v61, %v1109_v61 }
 0x409   : > { %v1093_v0 = vpop.f32.mrf.mxu2 }
 0x40a   : > { %v1117_v1 = vadd.f32 1.0, %v1113_v63  ;;  %v3144_v40 = vadd.f32 %v2712_v58, %v1093_v0  ;;  %v1221_v48 = vsub.f32 0.0, %v1217_v35 }
 0x40c   : > { %2754 = vrcp.f32 %v1117_v1  ;;  %v3150_v56 = vmul.f32 0.70710677, %v3144_v40  ;;  %v1132_v20 = vand.u32 2147483648, %v1117_v1  ;;  %vm1126_vm14 = vweird.f32 %v1117_v1 }
 0x40d   : > { %v1130_v7 = vand.u32 2147483647, %v1117_v1 }
 0x40e   : > { %v3156_v4 = vand.u32 2147483647, %v3150_v56  ;;  %v1133_v18 = vor.u32 1.1754944e-38, %v1132_v20 }
 0x40f   : > { %vm1131_vm0 = vcmp.eq.f32.partialorder %v1130_v7, 8.507059e+37 }
 0x410   : > { %v1114_v33 = vmul.f32 0.3275911, %v3156_v4  ;;  %v1218_v63 = vmul.f32 %v3156_v4, %v3156_v4 }
 0x411   : > { %v1096_v5 = vpop.f32.mrf.mxu2 }
 0x412   : > { %v2755_v38 = vpop.eup %2754  ;;  %v3159_v8 = vadd.f32 %v2712_v58, %v1096_v5  ;;  %v1118_v12 = vadd.f32 1.0, %v1114_v33 }
 0x413   : > { %v1122_v10 = vmul.f32 %v2755_v38, %v1117_v1  ;;  %vm1127_vm13 = vweird.f32 %v2755_v38 }
 0x414   : > { %v3165_v53 = vmul.f32 0.70710677, %v3159_v8  ;;  %2756 = vrcp.f32 %v1118_v12  ;;  %vm1128_vm15 = vmor %vm1126_vm14, %vm1127_vm13  ;;  %v1147_v39 = vand.u32 2147483648, %v1118_v12  ;;  %v1145_v45 = vand.u32 2147483647, %v1118_v12 }
 0x415   : > { %v1123_v16 = vsub.f32 1.0, %v1122_v10  ;;  %vm1141_vm2 = vweird.f32 %v1118_v12  ;;  %v1222_v10 = vsub.f32 0.0, %v1218_v63  ;;  %vm1241_vm13 = vcmp.lt.f32.partialorder %v3138_v44, 0.0 }
 0x416   : > { %v3171_v19 = vand.u32 2147483647, %v3165_v53  ;;  %v1148_v54 = vor.u32 1.1754944e-38, %v1147_v39  ;;  %vm1146_vm4 = vcmp.eq.f32.partialorder %v1145_v45, 8.507059e+37  ;;  %vm1242_vm14 = vcmp.lt.f32.partialorder %v3150_v56, 0.0 }
 0x417   : > { %v1124_v50 = vmul.f32 %v2755_v38, %v1123_v16  ;;  %v1102_v44 = vmul.f32 0.5, %v3144_v40 }
 0x418   : > { %v1115_v21 = vmul.f32 0.3275911, %v3171_v19  ;;  %v1219_v20 = vmul.f32 %v3171_v19, %v3171_v19 }
 0x419   : > { %v1125_v46 = vadd.f32 %v2755_v38, %v1124_v50  ;;  %v1098_v23 = vpop.f32.mrf.mxu2 }
 0x41a   : > { %v1119_v26 = vadd.f32 1.0, %v1115_v21  ;;  %v3177_v30 = vadd.f32 %v2712_v58, %v1098_v23  ;;  %v2757_v31 = vpop.eup %2756  ;;  %v1225_v58 = vmul.f32 1.442695, %v1221_v48  ;;  %v1227_v23 = vmul.f32 1.442695, %v1222_v10 }
 0x41b   : > { %v1129_v32 = vsel %vm1128_vm15, %v2755_v38, %v1125_v46  ;;  %v1137_v29 = vmul.f32 %v2757_v31, %v1118_v12  ;;  %vm1142_vm1 = vweird.f32 %v2757_v31  ;;  %v1223_v34 = vsub.f32 0.0, %v1219_v20 }
 0x41c   : > { %2758 = vrcp.f32 %v1119_v26  ;;  %v3183_v27 = vmul.f32 0.70710677, %v3177_v30  ;;  %v1134_v37 = vsel %vm1131_vm0, %v1133_v18, %v1129_v32  ;;  %vm1143_vm3 = vmor %vm1141_vm2, %vm1142_vm1  ;;  %v1160_v0 = vand.u32 2147483647, %v1119_v26 }
 0x41d   : > { %v1138_v36 = vsub.f32 1.0, %v1137_v29  ;;  %v1181_v41 = vmul.f32 1.0614054, %v1134_v37  ;;  %v1162_v1 = vand.u32 2147483648, %v1119_v26  ;;  %vm1156_vm6 = vweird.f32 %v1119_v26 }
 0x41e   : > { %v3186_v28 = vand.u32 2147483647, %v3183_v27  ;;  %vm1161_vm8 = vcmp.eq.f32.partialorder %v1160_v0, 8.507059e+37  ;;  %v1101_v20 = vmul.f32 0.5, %v3135_v60  ;;  %vm1243_vm15 = vcmp.lt.f32.partialorder %v3165_v53, 0.0 }
 0x41f   : > { %v1139_v43 = vmul.f32 %v2757_v31, %v1138_v36  ;;  %v1185_v13 = vadd.f32 -1.4531521, %v1181_v41  ;;  %v1163_v12 = vor.u32 1.1754944e-38, %v1162_v1  ;;  %vm1244_vm0 = vcmp.lt.f32.partialorder %v3183_v27, 0.0  ;;  %v2713_v53 = vld [vmem:[%s3521_s12] ss:$0 sm:$0xff] }
 0x420   : > { %v1116_v52 = vmul.f32 0.3275911, %v3186_v28 }
 0x421   : > { %v1140_v51 = vadd.f32 %v2757_v31, %v1139_v43  ;;  %v1189_v55 = vmul.f32 %v1185_v13, %v1134_v37 }
 0x422   : > { %v2759_v49 = vpop.eup %2758  ;;  %v1120_v24 = vadd.f32 1.0, %v1116_v52  ;;  %v1229_v52 = vmul.f32 1.442695, %v1223_v34 }
 0x423   : > { %v1152_v42 = vmul.f32 %v2759_v49, %v1119_v26  ;;  %v1144_v57 = vsel %vm1143_vm3, %v2757_v31, %v1140_v51  ;;  %v1193_v14 = vadd.f32 1.4214138, %v1189_v55  ;;  %vm1157_vm5 = vweird.f32 %v2759_v49 }
 0x424   : > { %v1149_v61 = vsel %vm1146_vm4, %v1148_v54, %v1144_v57  ;;  %2760 = vrcp.f32 %v1120_v24  ;;  %vm1158_vm7 = vmor %vm1156_vm6, %vm1157_vm5  ;;  %v1175_v35 = vand.u32 2147483647, %v1120_v24  ;;  %v1177_v36 = vand.u32 2147483648, %v1120_v24 }
 0x425   : > { %v1153_v59 = vsub.f32 1.0, %v1152_v42  ;;  %v1182_v3 = vmul.f32 1.0614054, %v1149_v61  ;;  %v1197_v33 = vmul.f32 %v1193_v14, %v1134_v37  ;;  %2762 = vpow2.f32 %v1225_v58 }
 0x426   : > { %2764 = vpow2.f32 %v1227_v23  ;;  %vm1171_vm10 = vweird.f32 %v1120_v24  ;;  %vm1176_vm12 = vcmp.eq.f32.partialorder %v1175_v35, 8.507059e+37  ;;  %v1220_v42 = vmul.f32 %v3186_v28, %v3186_v28 }
 0x427   : > { %v1154_v2 = vmul.f32 %v2759_v49, %v1153_v59  ;;  %v1186_v38 = vadd.f32 -1.4531521, %v1182_v3  ;;  %v1201_v9 = vadd.f32 -0.28449672, %v1197_v33  ;;  %2766 = vpow2.f32 %v1229_v52 }
 0x429   : > { %v1155_v5 = vadd.f32 %v2759_v49, %v1154_v2  ;;  %v1190_v15 = vmul.f32 %v1186_v38, %v1149_v61  ;;  %v1205_v16 = vmul.f32 %v1201_v9, %v1134_v37  ;;  %v1224_v2 = vsub.f32 0.0, %v1220_v42 }
 0x42a   : > { %v2761_v4 = vpop.eup %2760 }
 0x42b   : > { %v1159_v50 = vsel %vm1158_vm7, %v2759_v49, %v1155_v5  ;;  %v1167_v6 = vmul.f32 %v2761_v4, %v1120_v24  ;;  %v1194_v46 = vadd.f32 1.4214138, %v1190_v15  ;;  %v1209_v7 = vadd.f32 0.2548296, %v1205_v16  ;;  %v2763_v29 = vpop.eup %2762 }
 0x42c   : > { %v1164_v21 = vsel %vm1161_vm8, %v1163_v12, %v1159_v50  ;;  %vm1172_vm9 = vweird.f32 %v2761_v4  ;;  %v1178_v49 = vor.u32 1.1754944e-38, %v1177_v36  ;;  %v2765_v63 = vpop.eup %2764 }
 0x42d   : > { %v1183_v26 = vmul.f32 1.0614054, %v1164_v21  ;;  %v1168_v31 = vsub.f32 1.0, %v1167_v6  ;;  %v1198_v32 = vmul.f32 %v1194_v46, %v1149_v61  ;;  %v1213_v18 = vmul.f32 %v1209_v7, %v1134_v37  ;;  %vm1173_vm11 = vmor %vm1171_vm10, %vm1172_vm9  ;;  %v2767_v16 = vpop.eup %2766 }
 0x42f   : > { %v1187_v39 = vadd.f32 -1.4531521, %v1183_v26  ;;  %v1169_v41 = vmul.f32 %v2761_v4, %v1168_v31  ;;  %v1202_v43 = vadd.f32 -0.28449672, %v1198_v32  ;;  %v1233_v45 = vmul.f32 %v2763_v29, %v1213_v18 }
 0x431   : > { %v1191_v19 = vmul.f32 %v1187_v39, %v1164_v21  ;;  %v1170_v47 = vadd.f32 %v2761_v4, %v1169_v41  ;;  %v1206_v48 = vmul.f32 %v1202_v43, %v1149_v61  ;;  %v1237_v13 = vsub.f32 1.0, %v1233_v45 }
 0x432   : > { %v1103_v43 = vmul.f32 0.5, %v3159_v8  ;;  %v1104_v45 = vmul.f32 0.5, %v3177_v30 }
 0x433   : > { %v1195_v51 = vadd.f32 1.4214138, %v1191_v19  ;;  %v1210_v37 = vadd.f32 0.2548296, %v1206_v48  ;;  %v1174_v54 = vsel %vm1173_vm11, %v2761_v4, %v1170_v47  ;;  %v1245_v59 = vsub.f32 0.0, %v1237_v13 }
 0x434   : > { %v1179_v55 = vsel %vm1176_vm12, %v1178_v49, %v1174_v54 }
 0x435   : > { %v1199_v57 = vmul.f32 %v1195_v51, %v1164_v21  ;;  %v1214_v58 = vmul.f32 %v1210_v37, %v1149_v61  ;;  %v1184_v14 = vmul.f32 1.0614054, %v1179_v55  ;;  %v1249_v5 = vsel %vm1241_vm13, %v1245_v59, %v1237_v13 }
 0x436   : > { %v1231_v61 = vmul.f32 1.442695, %v1224_v2  ;;  %v1253_v12 = vadd.f32 1.0, %v1249_v5 }
 0x437   : > { %v1203_v0 = vadd.f32 -0.28449672, %v1199_v57  ;;  %v1234_v24 = vmul.f32 %v2765_v63, %v1214_v58  ;;  %v1188_v1 = vadd.f32 -1.4531521, %v1184_v14 }
 0x438   : > { %2768 = vpow2.f32 %v1231_v61  ;;  %v1257_v23 = vmul.f32 %v1253_v12, %v1101_v20  ;;  %v2668_v20 = vld [vmem:[%s3512_s3 + $0x58] sm:$0xff] }
 0x439   : > { %v1207_v3 = vmul.f32 %v1203_v0, %v1164_v21  ;;  %v1238_v33 = vsub.f32 1.0, %v1234_v24  ;;  %v1192_v38 = vmul.f32 %v1188_v1, %v1179_v55 }
 0x43b   : > { %v1211_v9 = vadd.f32 0.2548296, %v1207_v3  ;;  %v1246_v10 = vsub.f32 0.0, %v1238_v33  ;;  %v1196_v28 = vadd.f32 1.4214138, %v1192_v38 }
 0x43d   : > { %v1215_v15 = vmul.f32 %v1211_v9, %v1164_v21  ;;  %v1250_v50 = vsel %vm1242_vm14, %v1246_v10, %v1238_v33  ;;  %v1200_v4 = vmul.f32 %v1196_v28, %v1179_v55 }
 0x43e   : > { %v1254_v6 = vadd.f32 1.0, %v1250_v50  ;;  %v2769_v34 = vpop.eup %2768  ;;  %v2670_v50 = vld [vmem:[%s3512_s3 + $0x68] sm:$0xff] }
 0x43f   : > { %v1235_v46 = vmul.f32 %v2767_v16, %v1215_v15  ;;  %v1204_v7 = vadd.f32 -0.28449672, %v1200_v4  ;;  %v2672_v15 = vld [vmem:[%s3512_s3 + $0x78] sm:$0xff]  ;;  %v2671_v16 = vld [vmem:[%s3512_s3 + $0x70] sm:$0xff]  ;;  %v2669_v4 = vld [vmem:[%s3512_s3 + $0x60] sm:$0xff] }
 0x440   : > { %v1258_v26 = vmul.f32 %v1254_v6, %v1102_v44  ;;  %1530 = vmatpush.bf16.msrb.mxu0 %v2672_v15  ;;  %v2667_v44 = vld [vmem:[%s3512_s3 + $0x50] sm:$0xff]  ;;  %v2666_v6 = vld [vmem:[%s3512_s3 + $0x48] sm:$0xff] }
 0x441   : > { %v1208_v31 = vmul.f32 %v1204_v7, %v1179_v55  ;;  %v1239_v32 = vsub.f32 1.0, %v1235_v46 }
 0x442   : > { %v1261_v18 = vpack.c.bf16 %v1258_v26, %v1257_v23  ;;  %v2665_v26 = vld [vmem:[%s3512_s3 + $0x40] sm:$0xff] }
 0x443   : > { %v1212_v56 = vadd.f32 0.2548296, %v1208_v31  ;;  %v1247_v21 = vsub.f32 0.0, %v1239_v32 }
 0x444   : > { %1322 = vmatmul.bf16.vlgmr.msra.gmra.mxu3 %v1261_v18  ;;  %1531 = vmatpush.bf16.msrb.mxu0 %v2671_v16 }
 0x445   : > { %v1216_v29 = vmul.f32 %v1212_v56, %v1179_v55  ;;  %v1251_v36 = vsel %vm1243_vm15, %v1247_v21, %v1239_v32 }
 0x446   : > { %v1255_v39 = vadd.f32 1.0, %v1251_v36 }
 0x447   : > { %v1236_v35 = vmul.f32 %v2769_v34, %v1216_v29 }
 0x448   : > { %v1259_v47 = vmul.f32 %v1255_v39, %v1103_v43  ;;  %1532 = vmatpush.bf16.msrb.mxu0 %v2670_v50 }
 0x449   : > { %v1240_v60 = vsub.f32 1.0, %v1236_v35 }
 0x44b   : > { %v1248_v40 = vsub.f32 0.0, %v1240_v60 }
 0x44c   : > { %1533 = vmatpush.bf16.msrb.mxu0 %v2669_v4 }
 0x44d   : > { %v1252_v41 = vsel %vm1244_vm0, %v1248_v40, %v1240_v60 }
 0x44e   : > { %v1256_v19 = vadd.f32 1.0, %v1252_v41 }
 0x450   : > { %v1260_v48 = vmul.f32 %v1256_v19, %v1104_v45  ;;  %1534 = vmatpush.bf16.msrb.mxu0 %v2668_v20 }
 0x452   : > { %v1262_v13 = vpack.c.bf16 %v1260_v48, %v1259_v47 }
 0x454   : > { %1327 = vmatmul.bf16.gmra.mxu3 %v1262_v13  ;;  %1535 = vmatpush.bf16.msrb.mxu0 %v2667_v44 }
 0x458   : > { %1536 = vmatpush.bf16.msrb.mxu0 %v2666_v6  ;;  %v2680_v6 = vld [vmem:[%s3514_s5 + $0x78] sm:$0xff] }
 0x459   : > { %1762 = vmatpush.bf16.msrb.mxu1 %v2680_v6 }
 0x45c   : > { %1537 = vmatpush.bf16.msrb.mxu0 %v2665_v26 }
 0x4c7   : > { %v1323_v49 = vpop.f32.mrf.mxu3 }
 0x4c8   : > { %v1324_v51 = vadd.f32 %v2713_v53, %v1323_v49 }
 0x4ca   : > { %v1333_v52 = vadd.f32 %v1324_v51, %v3059_v22 }
 0x4cc   : > { %1341 = vadd.xlane.f32.xlu1 %v1333_v52 }
 0x4cf   : > { %v1325_v27 = vpop.f32.mrf.mxu3 }
 0x4d0   : > { %v1326_v37 = vadd.f32 %v2713_v53, %v1325_v27  ;;  %v2714_v27 = vld [vmem:[%s3510_s1 + $0x1] ss:$0 sm:$0xff] }
 0x4d2   : > { %v1334_v8 = vadd.f32 %v1326_v37, %v3063_v62 }
 0x4d4   : > { %1343 = vadd.xlane.f32.xlu2 %v1334_v8 }
 0x4d7   : > { %v1328_v30 = vpop.f32.mrf.mxu3 }
 0x4d8   : > { %v1329_v54 = vadd.f32 %v2713_v53, %v1328_v30 }
 0x4da   : > { %v1335_v42 = vadd.f32 %v1329_v54, %v3067_v25 }
 0x4dc   : > { %1345 = vadd.xlane.f32.xlu0 %v1335_v42 }
 0x4df   : > { %v1330_v55 = vpop.f32.mrf.mxu3 }
 0x4e0   : > { %v1331_v57 = vadd.f32 %v2713_v53, %v1330_v55 }
 0x4e2   : > { %v1336_v58 = vadd.f32 %v1331_v57, %v3071_v17  ;;  %v2715_v57 = vld [vmem:[%s3511_s2 + $0x1] ss:$0 sm:$0xff] }
 0x4e4   : > { %1347 = vadd.xlane.f32.xlu1 %v1336_v58 }
 0x53f   : > { %v1342_v59 = vpop.xlane.xlu1 %1341 }
 0x540   : > { %v1349_v14 = vmul.f32 0.03125, %v1342_v59 }
 0x542   : > { %v1353_v63 = vsub.f32 %v1333_v52, %v1349_v14 }
 0x544   : > { %v3214_v22 = vmul.f32 %v2913_v11, %v1353_v63 }
 0x546   : > { %v1361_v62 = vmul.f32 %v3214_v22, %v3214_v22 }
 0x547   : > { %v1344_v0 = vpop.xlane.xlu2 %1343 }
 0x548   : > { %v1350_v24 = vmul.f32 0.03125, %v1344_v0  ;;  %1365 = vadd.xlane.f32.xlu2 %v1361_v62 }
 0x54a   : > { %v1354_v1 = vsub.f32 %v1334_v8, %v1350_v24 }
 0x54c   : > { %v3219_v25 = vmul.f32 %v2913_v11, %v1354_v1 }
 0x54e   : > { %v1362_v17 = vmul.f32 %v3219_v25, %v3219_v25 }
 0x54f   : > { %v1346_v2 = vpop.xlane.xlu0 %1345 }
 0x550   : > { %v1351_v3 = vmul.f32 0.03125, %v1346_v2  ;;  %1367 = vadd.xlane.f32.xlu0 %v1362_v17 }
 0x552   : > { %v1355_v33 = vsub.f32 %v1335_v42, %v1351_v3 }
 0x554   : > { %v3224_v5 = vmul.f32 %v2913_v11, %v1355_v33 }
 0x556   : > { %v1363_v38 = vmul.f32 %v3224_v5, %v3224_v5 }
 0x557   : > { %v1348_v9 = vpop.xlane.xlu1 %1347 }
 0x558   : > { %v1352_v10 = vmul.f32 0.03125, %v1348_v9  ;;  %1369 = vadd.xlane.f32.xlu1 %v1363_v38 }
 0x55a   : > { %v1356_v28 = vsub.f32 %v1336_v58, %v1352_v10 }
 0x55c   : > { %v3229_v61 = vmul.f32 %v2913_v11, %v1356_v28 }
 0x55e   : > { %v1364_v12 = vmul.f32 %v3229_v61, %v3229_v61 }
 0x560   : > { %1371 = vadd.xlane.f32.xlu2 %v1364_v12 }
 0x5bb   : > { %v1366_v46 = vpop.xlane.xlu2 %1365 }
 0x5bc   : > { %v1373_v7 = vmul.f32 0.03125, %v1366_v46 }
 0x5be   : > { %v1377_v23 = vadd.f32 1e-05, %v1373_v7 }
 0x5c0   : > { %2770 = vrsqrt.f32 %v1377_v23  ;;  %vm1387_vm2 = vweird.f32 %v1377_v23 }
 0x5c3   : > { %v1368_v31 = vpop.xlane.xlu0 %1367 }
 0x5c4   : > { %v1374_v32 = vmul.f32 0.03125, %v1368_v31  ;;  %v2679_v31 = vld [vmem:[%s3514_s5 + $0x70] sm:$0xff] }
 0x5c5   : > { %1763 = vmatpush.bf16.msrb.mxu1 %v2679_v31 }
 0x5c6   : > { %v2771_v18 = vpop.eup %2770  ;;  %v1378_v56 = vadd.f32 1e-05, %v1374_v32 }
 0x5c7   : > { %v1382_v29 = vmul.f32 %v2771_v18, %v1377_v23  ;;  %vm1388_vm1 = vweird.f32 %v2771_v18 }
 0x5c8   : > { %2772 = vrsqrt.f32 %v1378_v56  ;;  %vm1389_vm3 = vmor %vm1387_vm2, %vm1388_vm1  ;;  %vm1397_vm5 = vweird.f32 %v1378_v56 }
 0x5c9   : > { %v1383_v21 = vmul.f32 %v2771_v18, %v1382_v29 }
 0x5cb   : > { %v1384_v34 = vmul.f32 0.5, %v1383_v21  ;;  %v1370_v35 = vpop.xlane.xlu1 %1369 }
 0x5cc   : > { %v1375_v60 = vmul.f32 0.03125, %v1370_v35 }
 0x5cd   : > { %v1385_v36 = vsub.f32 1.5, %v1384_v34 }
 0x5ce   : > { %v2773_v40 = vpop.eup %2772  ;;  %v1379_v39 = vadd.f32 1e-05, %v1375_v60  ;;  %v2677_v60 = vld [vmem:[%s3514_s5 + $0x60] sm:$0xff] }
 0x5cf   : > { %v1386_v41 = vmul.f32 %v2771_v18, %v1385_v36  ;;  %v1392_v43 = vmul.f32 %v2773_v40, %v1378_v56  ;;  %vm1398_vm4 = vweird.f32 %v2773_v40 }
 0x5d0   : > { %2774 = vrsqrt.f32 %v1379_v39  ;;  %vm1399_vm6 = vmor %vm1397_vm5, %vm1398_vm4  ;;  %vm1407_vm8 = vweird.f32 %v1379_v39 }
 0x5d1   : > { %v1393_v45 = vmul.f32 %v2773_v40, %v1392_v43  ;;  %v1390_v19 = vsel %vm1389_vm3, %v2771_v18, %v1386_v41  ;;  %v2678_v18 = vld [vmem:[%s3514_s5 + $0x68] sm:$0xff] }
 0x5d2   : > { %v1421_v51 = vmul.f32 %v1390_v19, %v3214_v22  ;;  %1764 = vmatpush.bf16.msrb.mxu1 %v2678_v18 }
 0x5d3   : > { %v1394_v47 = vmul.f32 0.5, %v1393_v45  ;;  %v1372_v48 = vpop.xlane.xlu2 %1371 }
 0x5d4   : > { %v1376_v13 = vmul.f32 0.03125, %v1372_v48  ;;  %v1428_v55 = vmul.f32 %v2714_v27, %v1421_v51  ;;  %v2676_v48 = vld [vmem:[%s3514_s5 + $0x58] sm:$0xff] }
 0x5d5   : > { %v1395_v53 = vsub.f32 1.5, %v1394_v47 }
 0x5d6   : > { %v2775_v49 = vpop.eup %2774  ;;  %v1380_v52 = vadd.f32 1e-05, %v1376_v13  ;;  %v3265_v22 = vadd.f32 %v2715_v57, %v1428_v55  ;;  %1765 = vmatpush.bf16.msrb.mxu1 %v2677_v60 }
 0x5d7   : > { %v1396_v37 = vmul.f32 %v2773_v40, %v1395_v53  ;;  %v1402_v8 = vmul.f32 %v2775_v49, %v1379_v39  ;;  %vm1408_vm7 = vweird.f32 %v2775_v49 }
 0x5d8   : > { %2776 = vrsqrt.f32 %v1380_v52  ;;  %vm1409_vm9 = vmor %vm1407_vm8, %vm1408_vm7  ;;  %vm1417_vm11 = vweird.f32 %v1380_v52 }
 0x5d9   : > { %v1400_v30 = vsel %vm1399_vm6, %v2773_v40, %v1396_v37  ;;  %v1403_v54 = vmul.f32 %v2775_v49, %v1402_v8  ;;  %v2675_v37 = vld [vmem:[%s3514_s5 + $0x50] sm:$0xff] }
 0x5da   : > { %v1422_v42 = vmul.f32 %v1400_v30, %v3219_v25  ;;  %1766 = vmatpush.bf16.msrb.mxu1 %v2676_v48 }
 0x5db   : > { %v1404_v58 = vmul.f32 0.5, %v1403_v54 }
 0x5dc   : > { %v1429_v59 = vmul.f32 %v2714_v27, %v1422_v42 }
 0x5dd   : > { %v1405_v14 = vsub.f32 1.5, %v1404_v58 }
 0x5de   : > { %v2777_v63 = vpop.eup %2776  ;;  %v3267_v62 = vadd.f32 %v2715_v57, %v1429_v59  ;;  %1767 = vmatpush.bf16.msrb.mxu1 %v2675_v37 }
 0x5df   : > { %v1406_v0 = vmul.f32 %v2775_v49, %v1405_v14  ;;  %v1412_v24 = vmul.f32 %v2777_v63, %v1380_v52  ;;  %vm1418_vm10 = vweird.f32 %v2777_v63 }
 0x5e0   : > { %v1477_v1 = vpack.c.bf16 %v3267_v62, %v3265_v22  ;;  %vm1419_vm12 = vmor %vm1417_vm11, %vm1418_vm10 }
 0x5e1   : > { %v1413_v25 = vmul.f32 %v2777_v63, %v1412_v24  ;;  %v1410_v2 = vsel %vm1409_vm9, %v2775_v49, %v1406_v0  ;;  %v2674_v24 = vld [vmem:[%s3514_s5 + $0x48] sm:$0xff] }
 0x5e2   : > { %1538 = vmatmul.bf16.vlgmr.msrb.gmra.mxu0 %v1477_v1  ;;  %v1423_v33 = vmul.f32 %v1410_v2, %v3224_v5  ;;  %v2716_v5 = vld [vmem:[%s3513_s4 + $0x1] ss:$0 sm:$0xff]  ;;  %1768 = vmatpush.bf16.msrb.mxu1 %v2674_v24 }
 0x5e3   : > { %v1414_v17 = vmul.f32 0.5, %v1413_v25 }
 0x5e4   : > { %v1430_v28 = vmul.f32 %v2714_v27, %v1423_v33 }
 0x5e5   : > { %v1415_v3 = vsub.f32 1.5, %v1414_v17 }
 0x5e6   : > { %v3273_v15 = vadd.f32 %v2715_v57, %v1430_v28 }
 0x5e7   : > { %v1416_v38 = vmul.f32 %v2777_v63, %v1415_v3  ;;  %v2673_v3 = vld [vmem:[%s3514_s5 + $0x40] sm:$0xff] }
 0x5e8   : > { %1769 = vmatpush.bf16.msrb.mxu1 %v2673_v3 }
 0x5e9   : > { %v1420_v9 = vsel %vm1419_vm12, %v2777_v63, %v1416_v38 }
 0x5ea   : > { %v1424_v10 = vmul.f32 %v1420_v9, %v3229_v61 }
 0x5ec   : > { %v1431_v12 = vmul.f32 %v2714_v27, %v1424_v10 }
 0x5ee   : > { %v3275_v16 = vadd.f32 %v2715_v57, %v1431_v12 }
 0x5f0   : > { %v1478_v50 = vpack.c.bf16 %v3275_v16, %v3273_v15 }
 0x5f2   : > { %1543 = vmatmul.bf16.gmra.mxu0 %v1478_v50 }
 0x65f   : > { %v1539_v4 = vpop.f32.mrf.mxu0 }
 0x660   : > { %v3282_v20 = vadd.f32 %v2716_v5, %v1539_v4 }
 0x662   : > { %v3285_v44 = vmul.f32 0.70710677, %v3282_v20 }
 0x664   : > { %v1557_v61 = vand.u32 2147483647, %v3285_v44 }
 0x666   : > { %v1561_v46 = vmul.f32 0.3275911, %v1557_v61  ;;  %v1665_v54 = vmul.f32 %v1557_v61, %v1557_v61 }
 0x667   : > { %v1541_v7 = vpop.f32.mrf.mxu0 }
 0x668   : > { %v1565_v23 = vadd.f32 1.0, %v1561_v46  ;;  %v3291_v26 = vadd.f32 %v2716_v5, %v1541_v7  ;;  %v1669_v63 = vsub.f32 0.0, %v1665_v54 }
 0x66a   : > { %2778 = vrcp.f32 %v1565_v23  ;;  %v3297_v32 = vmul.f32 0.70710677, %v3291_v26  ;;  %v1580_v43 = vand.u32 2147483648, %v1565_v23  ;;  %v1578_v47 = vand.u32 2147483647, %v1565_v23 }
 0x66b   : > { %vm1574_vm14 = vweird.f32 %v1565_v23  ;;  %v1673_v28 = vmul.f32 1.442695, %v1669_v63 }
 0x66c   : > { %v1558_v56 = vand.u32 2147483647, %v3297_v32  ;;  %v1581_v51 = vor.u32 1.1754944e-38, %v1580_v43  ;;  %vm1579_vm0 = vcmp.eq.f32.partialorder %v1578_v47, 8.507059e+37 }
 0x66e   : > { %v1562_v29 = vmul.f32 0.3275911, %v1558_v56  ;;  %v1666_v4 = vmul.f32 %v1558_v56, %v1558_v56 }
 0x66f   : > { %v1544_v21 = vpop.f32.mrf.mxu0 }
 0x670   : > { %v2779_v34 = vpop.eup %2778  ;;  %v3303_v35 = vadd.f32 %v2716_v5, %v1544_v21  ;;  %v1566_v40 = vadd.f32 1.0, %v1562_v29  ;;  %v1670_v60 = vsub.f32 0.0, %v1666_v4 }
 0x671   : > { %v1570_v36 = vmul.f32 %v2779_v34, %v1565_v23  ;;  %vm1575_vm13 = vweird.f32 %v2779_v34 }
 0x672   : > { %v3309_v39 = vmul.f32 0.70710677, %v3303_v35  ;;  %2780 = vrcp.f32 %v1566_v40  ;;  %vm1576_vm15 = vmor %vm1574_vm14, %vm1575_vm13  ;;  %v1595_v0 = vand.u32 2147483648, %v1566_v40  ;;  %v1593_v25 = vand.u32 2147483647, %v1566_v40 }
 0x673   : > { %v1571_v41 = vsub.f32 1.0, %v1570_v36  ;;  %vm1589_vm2 = vweird.f32 %v1566_v40  ;;  %vm1689_vm13 = vcmp.lt.f32.partialorder %v3285_v44, 0.0  ;;  %vm1690_vm14 = vcmp.lt.f32.partialorder %v3297_v32, 0.0 }
 0x674   : > { %v3312_v45 = vand.u32 2147483647, %v3309_v39  ;;  %v1596_v12 = vor.u32 1.1754944e-38, %v1595_v0  ;;  %vm1594_vm4 = vcmp.eq.f32.partialorder %v1593_v25, 8.507059e+37  ;;  %v1550_v44 = vmul.f32 0.5, %v3291_v26 }
 0x675   : > { %v1572_v19 = vmul.f32 %v2779_v34, %v1571_v41 }
 0x676   : > { %v1563_v13 = vmul.f32 0.3275911, %v3312_v45 }
 0x677   : > { %v1573_v53 = vadd.f32 %v2779_v34, %v1572_v19  ;;  %v1546_v49 = vpop.f32.mrf.mxu0 }
 0x678   : > { %v1567_v52 = vadd.f32 1.0, %v1563_v13  ;;  %v3318_v27 = vadd.f32 %v2716_v5, %v1546_v49  ;;  %v2781_v8 = vpop.eup %2780  ;;  %v1675_v13 = vmul.f32 1.442695, %v1670_v60 }
 0x679   : > { %v1577_v30 = vsel %vm1576_vm15, %v2779_v34, %v1573_v53  ;;  %v1585_v55 = vmul.f32 %v2781_v8, %v1566_v40  ;;  %vm1590_vm1 = vweird.f32 %v2781_v8  ;;  %v1667_v53 = vmul.f32 %v3312_v45, %v3312_v45 }
 0x67a   : > { %v1582_v42 = vsel %vm1579_vm0, %v1581_v51, %v1577_v30  ;;  %2782 = vrcp.f32 %v1567_v52  ;;  %v3324_v59 = vmul.f32 0.70710677, %v3318_v27  ;;  %vm1591_vm3 = vmor %vm1589_vm2, %vm1590_vm1  ;;  %v1610_v31 = vand.u32 2147483648, %v1567_v52 }
 0x67b   : > { %v1629_v57 = vmul.f32 1.0614054, %v1582_v42  ;;  %v1586_v58 = vsub.f32 1.0, %v1585_v55  ;;  %v1608_v21 = vand.u32 2147483647, %v1567_v52  ;;  %vm1604_vm6 = vweird.f32 %v1567_v52 }
 0x67c   : > { %v3330_v17 = vand.u32 2147483647, %v3324_v59  ;;  %v1611_v56 = vor.u32 1.1754944e-38, %v1610_v31  ;;  %vm1691_vm15 = vcmp.lt.f32.partialorder %v3309_v39, 0.0  ;;  %vm1692_vm0 = vcmp.lt.f32.partialorder %v3324_v59, 0.0 }
 0x67d   : > { %v1633_v14 = vadd.f32 -1.4531521, %v1629_v57  ;;  %v1587_v1 = vmul.f32 %v2781_v8, %v1586_v58  ;;  %vm1609_vm8 = vcmp.eq.f32.partialorder %v1608_v21, 8.507059e+37  ;;  %v2717_v39 = vld [vmem:[%s3515_s6 + $0x1] ss:$0 sm:$0xff] }
 0x67e   : > { %v1564_v9 = vmul.f32 0.3275911, %v3330_v17 }
 0x67f   : > { %v1637_v2 = vmul.f32 %v1633_v14, %v1582_v42  ;;  %v1588_v38 = vadd.f32 %v2781_v8, %v1587_v1  ;;  %v1671_v14 = vsub.f32 0.0, %v1667_v53 }
 0x680   : > { %v2783_v33 = vpop.eup %2782  ;;  %v1568_v61 = vadd.f32 1.0, %v1564_v9 }
 0x681   : > { %v1641_v10 = vadd.f32 1.4214138, %v1637_v2  ;;  %v1600_v50 = vmul.f32 %v2783_v33, %v1567_v52  ;;  %v1592_v5 = vsel %vm1591_vm3, %v2781_v8, %v1588_v38  ;;  %vm1605_vm5 = vweird.f32 %v2783_v33 }
 0x682   : > { %v1597_v46 = vsel %vm1594_vm4, %v1596_v12, %v1592_v5  ;;  %2784 = vrcp.f32 %v1568_v61  ;;  %vm1606_vm7 = vmor %vm1604_vm6, %vm1605_vm5  ;;  %v1625_v63 = vand.u32 2147483648, %v1568_v61  ;;  %v1623_v24 = vand.u32 2147483647, %v1568_v61 }
 0x683   : > { %v1645_v6 = vmul.f32 %v1641_v10, %v1582_v42  ;;  %v1601_v7 = vsub.f32 1.0, %v1600_v50  ;;  %v1630_v23 = vmul.f32 1.0614054, %v1597_v46  ;;  %2786 = vpow2.f32 %v1673_v28 }
 0x684   : > { %2788 = vpow2.f32 %v1675_v13  ;;  %vm1619_vm10 = vweird.f32 %v1568_v61  ;;  %v1626_v38 = vor.u32 1.1754944e-38, %v1625_v63  ;;  %vm1624_vm12 = vcmp.eq.f32.partialorder %v1623_v24, 8.507059e+37 }
 0x685   : > { %v1649_v18 = vadd.f32 -0.28449672, %v1645_v6  ;;  %v1602_v29 = vmul.f32 %v2783_v33, %v1601_v7  ;;  %v1634_v34 = vadd.f32 -1.4531521, %v1630_v23  ;;  %v1668_v5 = vmul.f32 %v3330_v17, %v3330_v17 }
 0x686   : > { %v1552_v24 = vmul.f32 0.5, %v3318_v27 }
 0x687   : > { %v1653_v36 = vmul.f32 %v1649_v18, %v1582_v42  ;;  %v1603_v40 = vadd.f32 %v2783_v33, %v1602_v29  ;;  %v1638_v41 = vmul.f32 %v1634_v34, %v1597_v46  ;;  %v1672_v21 = vsub.f32 0.0, %v1668_v5 }
 0x688   : > { %v2785_v47 = vpop.eup %2784 }
 0x689   : > { %v1657_v43 = vadd.f32 0.2548296, %v1653_v36  ;;  %v1607_v19 = vsel %vm1606_vm7, %v2783_v33, %v1603_v40  ;;  %v1642_v48 = vadd.f32 1.4214138, %v1638_v41  ;;  %v1615_v37 = vmul.f32 %v2785_v47, %v1568_v61  ;;  %v2787_v30 = vpop.eup %2786 }
 0x68a   : > { %v1612_v49 = vsel %vm1609_vm8, %v1611_v56, %v1607_v19  ;;  %vm1620_vm9 = vweird.f32 %v2785_v47  ;;  %v1677_v33 = vmul.f32 1.442695, %v1671_v14  ;;  %v2789_v28 = vpop.eup %2788  ;;  %v1549_v56 = vmul.f32 0.5, %v3282_v20 }
 0x68b   : > { %v1661_v51 = vmul.f32 %v1657_v43, %v1582_v42  ;;  %v1631_v8 = vmul.f32 1.0614054, %v1612_v49  ;;  %v1646_v54 = vmul.f32 %v1642_v48, %v1597_v46  ;;  %v1616_v52 = vsub.f32 1.0, %v1615_v37  ;;  %vm1621_vm11 = vmor %vm1619_vm10, %vm1620_vm9 }
 0x68c   : > { %2790 = vpow2.f32 %v1677_v33  ;;  %v1679_v19 = vmul.f32 1.442695, %v1672_v21 }
 0x68d   : > { %v1681_v55 = vmul.f32 %v2787_v30, %v1661_v51  ;;  %v1635_v57 = vadd.f32 -1.4531521, %v1631_v8  ;;  %v1650_v58 = vadd.f32 -0.28449672, %v1646_v54  ;;  %v1617_v0 = vmul.f32 %v2785_v47, %v1616_v52 }
 0x68e   : > { %2792 = vpow2.f32 %v1679_v19  ;;  %v2684_v19 = vld [vmem:[%s3518_s9 + $0x58] sm:$0xff] }
 0x68f   : > { %v1639_v1 = vmul.f32 %v1635_v57, %v1612_v49  ;;  %v1685_v25 = vsub.f32 1.0, %v1681_v55  ;;  %v1654_v2 = vmul.f32 %v1650_v58, %v1597_v46  ;;  %v1618_v45 = vadd.f32 %v2785_v47, %v1617_v0 }
 0x690   : > { %v1551_v0 = vmul.f32 0.5, %v3303_v35 }
 0x691   : > { %v1643_v42 = vadd.f32 1.4214138, %v1639_v1  ;;  %v1658_v3 = vadd.f32 0.2548296, %v1654_v2  ;;  %v1622_v9 = vsel %vm1621_vm11, %v2785_v47, %v1618_v45  ;;  %v1693_v12 = vsub.f32 0.0, %v1685_v25 }
 0x692   : > { %v1627_v4 = vsel %vm1624_vm12, %v1626_v38, %v1622_v9  ;;  %v2791_v41 = vpop.eup %2790 }
 0x693   : > { %v1647_v10 = vmul.f32 %v1643_v42, %v1612_v49  ;;  %v1662_v50 = vmul.f32 %v1658_v3, %v1597_v46  ;;  %v1632_v6 = vmul.f32 1.0614054, %v1627_v4  ;;  %v1697_v18 = vsel %vm1689_vm13, %v1693_v12, %v1685_v25 }
 0x694   : > { %v1701_v40 = vadd.f32 1.0, %v1697_v18  ;;  %v2793_v52 = vpop.eup %2792 }
 0x695   : > { %v1651_v7 = vadd.f32 -0.28449672, %v1647_v10  ;;  %v1682_v23 = vmul.f32 %v2789_v28, %v1662_v50  ;;  %v1636_v61 = vadd.f32 -1.4531521, %v1632_v6 }
 0x696   : > { %v1705_v53 = vmul.f32 %v1701_v40, %v1549_v56  ;;  %v2687_v56 = vld [vmem:[%s3518_s9 + $0x70] sm:$0xff] }
 0x697   : > { %v1655_v31 = vmul.f32 %v1651_v7, %v1612_v49  ;;  %v1686_v29 = vsub.f32 1.0, %v1682_v23  ;;  %v1640_v34 = vmul.f32 %v1636_v61, %v1627_v4 }
 0x699   : > { %v1659_v60 = vadd.f32 0.2548296, %v1655_v31  ;;  %v1694_v36 = vsub.f32 0.0, %v1686_v29  ;;  %v1644_v46 = vadd.f32 1.4214138, %v1640_v34 }
 0x69b   : > { %v1663_v17 = vmul.f32 %v1659_v60, %v1612_v49  ;;  %v1698_v43 = vsel %vm1690_vm14, %v1694_v36, %v1686_v29  ;;  %v1648_v48 = vmul.f32 %v1644_v46, %v1627_v4 }
 0x69c   : > { %v1702_v47 = vadd.f32 1.0, %v1698_v43  ;;  %v2686_v43 = vld [vmem:[%s3518_s9 + $0x68] sm:$0xff] }
 0x69d   : > { %v1683_v13 = vmul.f32 %v2791_v41, %v1663_v17  ;;  %v1652_v37 = vadd.f32 -0.28449672, %v1648_v48  ;;  %v2688_v41 = vld [vmem:[%s3518_s9 + $0x78] sm:$0xff]  ;;  %v2682_v48 = vld [vmem:[%s3518_s9 + $0x48] sm:$0xff] }
 0x69e   : > { %v1706_v51 = vmul.f32 %v1702_v47, %v1550_v44  ;;  %1978 = vmatpush.bf16.msrb.mxu2 %v2688_v41  ;;  %v2683_v44 = vld [vmem:[%s3518_s9 + $0x50] sm:$0xff] }
 0x69f   : > { %v1656_v30 = vmul.f32 %v1652_v37, %v1627_v4  ;;  %v1687_v54 = vsub.f32 1.0, %v1683_v13 }
 0x6a0   : > { %v1709_v8 = vpack.c.bf16 %v1706_v51, %v1705_v53  ;;  %v2681_v51 = vld [vmem:[%s3518_s9 + $0x40] sm:$0xff] }
 0x6a1   : > { %v1660_v32 = vadd.f32 0.2548296, %v1656_v30  ;;  %v1695_v55 = vsub.f32 0.0, %v1687_v54 }
 0x6a2   : > { %1770 = vmatmul.bf16.vlgmr.msrb.gmra.mxu1 %v1709_v8  ;;  %1979 = vmatpush.bf16.msrb.mxu2 %v2687_v56 }
 0x6a3   : > { %v1664_v49 = vmul.f32 %v1660_v32, %v1627_v4  ;;  %v1699_v26 = vsel %vm1691_vm15, %v1695_v55, %v1687_v54 }
 0x6a4   : > { %v1703_v14 = vadd.f32 1.0, %v1699_v26 }
 0x6a5   : > { %v1684_v20 = vmul.f32 %v2793_v52, %v1664_v49 }
 0x6a6   : > { %v1707_v25 = vmul.f32 %v1703_v14, %v1551_v0  ;;  %1980 = vmatpush.bf16.msrb.mxu2 %v2686_v43 }
 0x6a7   : > { %v1688_v57 = vsub.f32 1.0, %v1684_v20 }
 0x6a9   : > { %v1696_v58 = vsub.f32 0.0, %v1688_v57 }
 0x6ab   : > { %v1700_v63 = vsel %vm1692_vm0, %v1696_v58, %v1688_v57 }
 0x6ac   : > { %v1704_v1 = vadd.f32 1.0, %v1700_v63 }
 0x6ae   : > { %v1708_v2 = vmul.f32 %v1704_v1, %v1552_v24 }
 0x6b0   : > { %v1710_v45 = vpack.c.bf16 %v1708_v2, %v1707_v25 }
 0x6b2   : > { %1775 = vmatmul.bf16.gmra.mxu1 %v1710_v45 }
 0x71f   : > { %v1771_v42 = vpop.f32.mrf.mxu1 }
 0x720   : > { %v1772_v3 = vadd.f32 %v2717_v39, %v1771_v42  ;;  %v2718_v42 = vld [vmem:[%s3516_s7 + $0x1] ss:$0 sm:$0xff] }
 0x722   : > { %v3352_v33 = vadd.f32 %v1772_v3, %v3265_v22 }
 0x724   : > { %1789 = vadd.xlane.f32.xlu0 %v3352_v33 }
 0x727   : > { %v1773_v59 = vpop.f32.mrf.mxu1 }
 0x728   : > { %v1774_v35 = vadd.f32 %v2717_v39, %v1773_v59 }
 0x72a   : > { %v3356_v27 = vadd.f32 %v1774_v35, %v3267_v62 }
 0x72c   : > { %1791 = vadd.xlane.f32.xlu1 %v3356_v27 }
 0x72f   : > { %v1776_v38 = vpop.f32.mrf.mxu1 }
 0x730   : > { %v1777_v9 = vadd.f32 %v2717_v39, %v1776_v38 }
 0x732   : > { %v3360_v10 = vadd.f32 %v1777_v9, %v3273_v15 }
 0x734   : > { %1793 = vadd.xlane.f32.xlu2 %v3360_v10 }
 0x737   : > { %v1778_v28 = vpop.f32.mrf.mxu1 }
 0x738   : > { %v1779_v12 = vadd.f32 %v2717_v39, %v1778_v28 }
 0x73a   : > { %v3364_v22 = vadd.f32 %v1779_v12, %v3275_v16 }
 0x73c   : > { %1795 = vadd.xlane.f32.xlu0 %v3364_v22 }
 0x797   : > { %v1790_v50 = vpop.xlane.xlu0 %1789 }
 0x798   : > { %v1797_v5 = vmul.f32 0.03125, %v1790_v50 }
 0x79a   : > { %v1801_v62 = vsub.f32 %v3352_v33, %v1797_v5  ;;  %v2719_v5 = vld [vmem:[%s3517_s8 + $0x1] ss:$0 sm:$0xff] }
 0x79c   : > { %v3369_v4 = vmul.f32 %v2913_v11, %v1801_v62 }
 0x79e   : > { %v1809_v15 = vmul.f32 %v3369_v4, %v3369_v4 }
 0x79f   : > { %v1792_v6 = vpop.xlane.xlu1 %1791 }
 0x7a0   : > { %v1798_v7 = vmul.f32 0.03125, %v1792_v6  ;;  %1813 = vadd.xlane.f32.xlu1 %v1809_v15 }
 0x7a2   : > { %v1802_v23 = vsub.f32 %v3356_v27, %v1798_v7 }
 0x7a4   : > { %v3375_v16 = vmul.f32 %v2913_v11, %v1802_v23 }
 0x7a6   : > { %v1810_v61 = vmul.f32 %v3375_v16, %v3375_v16 }
 0x7a7   : > { %v1794_v31 = vpop.xlane.xlu2 %1793 }
 0x7a8   : > { %1815 = vadd.xlane.f32.xlu2 %v1810_v61  ;;  %v1799_v18 = vmul.f32 0.03125, %v1794_v31 }
 0x7aa   : > { %v1803_v29 = vsub.f32 %v3360_v10, %v1799_v18 }
 0x7ac   : > { %v3381_v21 = vmul.f32 %v2913_v11, %v1803_v29 }
 0x7ae   : > { %v1811_v34 = vmul.f32 %v3381_v21, %v3381_v21 }
 0x7af   : > { %v1796_v60 = vpop.xlane.xlu0 %1795 }
 0x7b0   : > { %v1800_v36 = vmul.f32 0.03125, %v1796_v60  ;;  %1817 = vadd.xlane.f32.xlu0 %v1811_v34 }
 0x7b2   : > { %v1804_v40 = vsub.f32 %v3364_v22, %v1800_v36 }
 0x7b4   : > { %v3387_v46 = vmul.f32 %v2913_v11, %v1804_v40  ;;  %v2685_v11 = vld [vmem:[%s3518_s9 + $0x60] sm:$0xff] }
 0x7b5   : > { %1981 = vmatpush.bf16.msrb.mxu2 %v2685_v11 }
 0x7b6   : > { %v1812_v17 = vmul.f32 %v3387_v46, %v3387_v46 }
 0x7b8   : > { %1819 = vadd.xlane.f32.xlu1 %v1812_v17 }
 0x7b9   : > { %1982 = vmatpush.bf16.msrb.mxu2 %v2684_v19 }
 0x7bd   : > { %1983 = vmatpush.bf16.msrb.mxu2 %v2683_v44 }
 0x7c1   : > { %1984 = vmatpush.bf16.msrb.mxu2 %v2682_v48 }
 0x7c5   : > { %1985 = vmatpush.bf16.msrb.mxu2 %v2681_v51 }
 0x813   : > { %v1814_v47 = vpop.xlane.xlu1 %1813 }
 0x814   : > { %v1821_v13 = vmul.f32 0.03125, %v1814_v47  ;;  %v2720_v47 = vld [vmem:[%s3519_s10 + $0x1] ss:$0 sm:$0xff] }
 0x816   : > { %v1825_v53 = vadd.f32 1e-05, %v1821_v13 }
 0x818   : > { %2794 = vrsqrt.f32 %v1825_v53  ;;  %vm1835_vm2 = vweird.f32 %v1825_v53 }
 0x81b   : > { %v1816_v37 = vpop.xlane.xlu2 %1815 }
 0x81c   : > { %v1822_v8 = vmul.f32 0.03125, %v1816_v37 }
 0x81e   : > { %v2795_v30 = vpop.eup %2794  ;;  %v1826_v54 = vadd.f32 1e-05, %v1822_v8 }
 0x81f   : > { %v1830_v32 = vmul.f32 %v2795_v30, %v1825_v53  ;;  %vm1836_vm1 = vweird.f32 %v2795_v30 }
 0x820   : > { %2796 = vrsqrt.f32 %v1826_v54  ;;  %vm1837_vm3 = vmor %vm1835_vm2, %vm1836_vm1  ;;  %vm1845_vm5 = vweird.f32 %v1826_v54 }
 0x821   : > { %v1831_v49 = vmul.f32 %v2795_v30, %v1830_v32 }
 0x823   : > { %v1832_v55 = vmul.f32 0.5, %v1831_v49  ;;  %v1818_v52 = vpop.xlane.xlu0 %1817  ;;  %v2694_v49 = vld [vmem:[%s3520_s11 + $0x68] sm:$0xff] }
 0x824   : > { %v1823_v57 = vmul.f32 0.03125, %v1818_v52 }
 0x825   : > { %v1833_v20 = vsub.f32 1.5, %v1832_v55 }
 0x826   : > { %v2797_v26 = vpop.eup %2796  ;;  %v1827_v63 = vadd.f32 1e-05, %v1823_v57 }
 0x827   : > { %v1834_v58 = vmul.f32 %v2795_v30, %v1833_v20  ;;  %v1840_v14 = vmul.f32 %v2797_v26, %v1826_v54  ;;  %vm1846_vm4 = vweird.f32 %v2797_v26  ;;  %v2695_v54 = vld [vmem:[%s3520_s11 + $0x70] sm:$0xff] }
 0x828   : > { %2798 = vrsqrt.f32 %v1827_v63  ;;  %vm1847_vm6 = vmor %vm1845_vm5, %vm1846_vm4  ;;  %vm1855_vm8 = vweird.f32 %v1827_v63 }
 0x829   : > { %v1841_v0 = vmul.f32 %v2797_v26, %v1840_v14  ;;  %v1838_v24 = vsel %vm1837_vm3, %v2795_v30, %v1834_v58 }
 0x82a   : > { %v1869_v39 = vmul.f32 %v1838_v24, %v3369_v4 }
 0x82b   : > { %v1842_v1 = vmul.f32 0.5, %v1841_v0  ;;  %v1820_v25 = vpop.xlane.xlu1 %1819 }
 0x82c   : > { %v1824_v45 = vmul.f32 0.03125, %v1820_v25  ;;  %v1876_v50 = vmul.f32 %v2718_v42, %v1869_v39 }
 0x82d   : > { %v1843_v2 = vsub.f32 1.5, %v1842_v1 }
 0x82e   : > { %v2799_v3 = vpop.eup %2798  ;;  %v1828_v35 = vadd.f32 1e-05, %v1824_v45  ;;  %v1883_v6 = vadd.f32 %v2719_v5, %v1876_v50  ;;  %v2692_v45 = vld [vmem:[%s3520_s11 + $0x58] sm:$0xff] }
 0x82f   : > { %v1844_v59 = vmul.f32 %v2797_v26, %v1843_v2  ;;  %v1850_v38 = vmul.f32 %v2799_v3, %v1827_v63  ;;  %vm1856_vm7 = vweird.f32 %v2799_v3 }
 0x830   : > { %2800 = vrsqrt.f32 %v1828_v35  ;;  %vm1857_vm9 = vmor %vm1855_vm8, %vm1856_vm7  ;;  %vm1865_vm11 = vweird.f32 %v1828_v35 }
 0x831   : > { %v1848_v9 = vsel %vm1847_vm6, %v2797_v26, %v1844_v59  ;;  %v1851_v12 = vmul.f32 %v2799_v3, %v1850_v38  ;;  %v2693_v26 = vld [vmem:[%s3520_s11 + $0x60] sm:$0xff]  ;;  %v2691_v38 = vld [vmem:[%s3520_s11 + $0x50] sm:$0xff] }
 0x832   : > { %v1870_v28 = vmul.f32 %v1848_v9, %v3375_v16 }
 0x833   : > { %v1852_v62 = vmul.f32 0.5, %v1851_v12 }
 0x834   : > { %v1877_v4 = vmul.f32 %v2718_v42, %v1870_v28 }
 0x835   : > { %v1853_v15 = vsub.f32 1.5, %v1852_v62 }
 0x836   : > { %v1884_v7 = vadd.f32 %v2719_v5, %v1877_v4  ;;  %v2801_v23 = vpop.eup %2800 }
 0x837   : > { %v1854_v61 = vmul.f32 %v2799_v3, %v1853_v15  ;;  %v1860_v31 = vmul.f32 %v2801_v23, %v1828_v35  ;;  %vm1866_vm10 = vweird.f32 %v2801_v23 }
 0x838   : > { %v1925_v18 = vpack.c.bf16 %v1884_v7, %v1883_v6  ;;  %vm1867_vm12 = vmor %vm1865_vm11, %vm1866_vm10 }
 0x839   : > { %v1861_v29 = vmul.f32 %v2801_v23, %v1860_v31  ;;  %v1858_v16 = vsel %vm1857_vm9, %v2799_v3, %v1854_v61 }
 0x83a   : > { %1986 = vmatmul.bf16.vlgmr.msrb.gmra.mxu2 %v1925_v18  ;;  %v1871_v36 = vmul.f32 %v1858_v16, %v3381_v21 }
 0x83b   : > { %v1862_v34 = vmul.f32 0.5, %v1861_v29 }
 0x83c   : > { %v1878_v56 = vmul.f32 %v2718_v42, %v1871_v36  ;;  %v2689_v36 = vld [vmem:[%s3520_s11 + $0x40] sm:$0xff] }
 0x83d   : > { %v1863_v60 = vsub.f32 1.5, %v1862_v34 }
 0x83e   : > { %v1885_v11 = vadd.f32 %v2719_v5, %v1878_v56 }
 0x83f   : > { %v1864_v40 = vmul.f32 %v2801_v23, %v1863_v60 }
 0x841   : > { %v1868_v17 = vsel %vm1867_vm12, %v2801_v23, %v1864_v40  ;;  %v2690_v23 = vld [vmem:[%s3520_s11 + $0x48] sm:$0xff] }
 0x842   : > { %v1872_v41 = vmul.f32 %v1868_v17, %v3387_v46  ;;  %v2696_v46 = vld [vmem:[%s3520_s11 + $0x78] sm:$0xff] }
 0x843   : > { %2210 = vmatpush.bf16.msrb.mxu3 %v2696_v46 }
 0x844   : > { %v1879_v43 = vmul.f32 %v2718_v42, %v1872_v41 }
 0x846   : > { %v1886_v19 = vadd.f32 %v2719_v5, %v1879_v43 }
 0x847   : > { %2211 = vmatpush.bf16.msrb.mxu3 %v2695_v54 }
 0x848   : > { %v1926_v44 = vpack.c.bf16 %v1886_v19, %v1885_v11 }
 0x84a   : > { %1991 = vmatmul.bf16.gmra.mxu2 %v1926_v44 }
 0x84b   : > { %2212 = vmatpush.bf16.msrb.mxu3 %v2694_v49 }
 0x84f   : > { %2213 = vmatpush.bf16.msrb.mxu3 %v2693_v26 }
 0x853   : > { %2214 = vmatpush.bf16.msrb.mxu3 %v2692_v45 }
 0x857   : > { %2215 = vmatpush.bf16.msrb.mxu3 %v2691_v38 }
 0x85b   : > { %2216 = vmatpush.bf16.msrb.mxu3 %v2690_v23 }
 0x85f   : > { %2217 = vmatpush.bf16.msrb.mxu3 %v2689_v36 }
 0x8bd   : > { %v1987_v48 = vpop.f32.mrf.mxu2 }
 0x8be   : > { %v3428_v13 = vadd.f32 %v2720_v47, %v1987_v48 }
 0x8c0   : > { %v3431_v21 = vmul.f32 0.70710677, %v3428_v13 }
 0x8c2   : > { %v2005_v53 = vand.u32 2147483647, %v3431_v21 }
 0x8c4   : > { %v2009_v51 = vmul.f32 0.3275911, %v2005_v53  ;;  %v2113_v12 = vmul.f32 %v2005_v53, %v2005_v53 }
 0x8c5   : > { %v1989_v37 = vpop.f32.mrf.mxu2 }
 0x8c6   : > { %v2013_v8 = vadd.f32 1.0, %v2009_v51  ;;  %v3437_v30 = vadd.f32 %v2720_v47, %v1989_v37  ;;  %v2117_v31 = vsub.f32 0.0, %v2113_v12 }
 0x8c8   : > { %2802 = vrcp.f32 %v2013_v8  ;;  %v3443_v32 = vmul.f32 0.70710677, %v3437_v30  ;;  %v2028_v24 = vand.u32 2147483648, %v2013_v8  ;;  %v2026_v2 = vand.u32 2147483647, %v2013_v8 }
 0x8c9   : > { %vm2022_vm14 = vweird.f32 %v2013_v8  ;;  %v2121_v56 = vmul.f32 1.442695, %v2117_v31 }
 0x8ca   : > { %v2006_v55 = vand.u32 2147483647, %v3443_v32  ;;  %v2029_v3 = vor.u32 1.1754944e-38, %v2028_v24  ;;  %vm2027_vm0 = vcmp.eq.f32.partialorder %v2026_v2, 8.507059e+37 }
 0x8cc   : > { %v2010_v52 = vmul.f32 0.3275911, %v2006_v55  ;;  %v2114_v44 = vmul.f32 %v2006_v55, %v2006_v55 }
 0x8cd   : > { %v1992_v57 = vpop.f32.mrf.mxu2 }
 0x8ce   : > { %v2803_v20 = vpop.eup %2802  ;;  %v2014_v14 = vadd.f32 1.0, %v2010_v52  ;;  %v3452_v63 = vadd.f32 %v2720_v47, %v1992_v57  ;;  %v2118_v49 = vsub.f32 0.0, %v2114_v44 }
 0x8cf   : > { %v2018_v58 = vmul.f32 %v2803_v20, %v2013_v8  ;;  %vm2023_vm13 = vweird.f32 %v2803_v20 }
 0x8d0   : > { %2804 = vrcp.f32 %v2014_v14  ;;  %v3455_v1 = vmul.f32 0.70710677, %v3452_v63  ;;  %vm2024_vm15 = vmor %vm2022_vm14, %vm2023_vm13  ;;  %v2043_v18 = vand.u32 2147483648, %v2014_v14  ;;  %v2041_v16 = vand.u32 2147483647, %v2014_v14 }
 0x8d1   : > { %v2019_v0 = vsub.f32 1.0, %v2018_v58  ;;  %vm2037_vm2 = vweird.f32 %v2014_v14  ;;  %vm2137_vm13 = vcmp.lt.f32.partialorder %v3431_v21, 0.0  ;;  %vm2138_vm14 = vcmp.lt.f32.partialorder %v3443_v32, 0.0 }
 0x8d2   : > { %v3461_v39 = vand.u32 2147483647, %v3455_v1  ;;  %v2044_v43 = vor.u32 1.1754944e-38, %v2043_v18  ;;  %vm2042_vm4 = vcmp.eq.f32.partialorder %v2041_v16, 8.507059e+37  ;;  %v1998_v21 = vmul.f32 0.5, %v3437_v30 }
 0x8d3   : > { %v2020_v25 = vmul.f32 %v2803_v20, %v2019_v0 }
 0x8d4   : > { %v2011_v59 = vmul.f32 0.3275911, %v3461_v39  ;;  %v2115_v45 = vmul.f32 %v3461_v39, %v3461_v39 }
 0x8d5   : > { %v2021_v42 = vadd.f32 %v2803_v20, %v2020_v25  ;;  %v1994_v35 = vpop.f32.mrf.mxu2  ;;  %v2123_v25 = vmul.f32 1.442695, %v2118_v49 }
 0x8d6   : > { %v2805_v9 = vpop.eup %2804  ;;  %v3467_v50 = vadd.f32 %v2720_v47, %v1994_v35  ;;  %v2015_v4 = vadd.f32 1.0, %v2011_v59 }
 0x8d7   : > { %v2025_v28 = vsel %vm2024_vm15, %v2803_v20, %v2021_v42  ;;  %v2033_v62 = vmul.f32 %v2805_v9, %v2014_v14  ;;  %vm2038_vm1 = vweird.f32 %v2805_v9  ;;  %vm2139_vm15 = vcmp.lt.f32.partialorder %v3455_v1, 0.0  ;;  %v2721_v1 = vld [vmem:[%s3521_s12 + $0x1] ss:$0 sm:$0xff] }
 0x8d8   : > { %v2030_v5 = vsel %vm2027_vm0, %v2029_v3, %v2025_v28  ;;  %v3470_v6 = vmul.f32 0.70710677, %v3467_v50  ;;  %2806 = vrcp.f32 %v2015_v4  ;;  %vm2039_vm3 = vmor %vm2037_vm2, %vm2038_vm1  ;;  %v2058_v52 = vand.u32 2147483648, %v2015_v4 }
 0x8d9   : > { %v2077_v15 = vmul.f32 1.0614054, %v2030_v5  ;;  %v2034_v7 = vsub.f32 1.0, %v2033_v62  ;;  %v2056_v26 = vand.u32 2147483647, %v2015_v4  ;;  %vm2052_vm6 = vweird.f32 %v2015_v4 }
 0x8da   : > { %v3476_v34 = vand.u32 2147483647, %v3470_v6  ;;  %v2059_v2 = vor.u32 1.1754944e-38, %v2058_v52  ;;  %vm2140_vm0 = vcmp.lt.f32.partialorder %v3470_v6, 0.0 }
 0x8db   : > { %v2081_v61 = vadd.f32 -1.4531521, %v2077_v15  ;;  %v2035_v29 = vmul.f32 %v2805_v9, %v2034_v7  ;;  %vm2057_vm8 = vcmp.eq.f32.partialorder %v2056_v26, 8.507059e+37  ;;  %v1997_v26 = vmul.f32 0.5, %v3428_v13 }
 0x8dc   : > { %v2012_v17 = vmul.f32 0.3275911, %v3476_v34 }
 0x8dd   : > { %v2085_v60 = vmul.f32 %v2081_v61, %v2030_v5  ;;  %v2036_v40 = vadd.f32 %v2805_v9, %v2035_v29 }
 0x8de   : > { %v2807_v11 = vpop.eup %2806  ;;  %v2016_v47 = vadd.f32 1.0, %v2012_v17 }
 0x8df   : > { %v2089_v41 = vadd.f32 1.4214138, %v2085_v60  ;;  %v2040_v19 = vsel %vm2039_vm3, %v2805_v9, %v2036_v40  ;;  %v2048_v46 = vmul.f32 %v2807_v11, %v2015_v4  ;;  %vm2053_vm5 = vweird.f32 %v2807_v11 }
 0x8e0   : > { %v2045_v53 = vsel %vm2042_vm4, %v2044_v43, %v2040_v19  ;;  %2808 = vrcp.f32 %v2016_v47  ;;  %vm2054_vm7 = vmor %vm2052_vm6, %vm2053_vm5  ;;  %v2119_v4 = vsub.f32 0.0, %v2115_v45  ;;  %v2073_v7 = vand.u32 2147483648, %v2016_v47 }
 0x8e1   : > { %v2093_v48 = vmul.f32 %v2089_v41, %v2030_v5  ;;  %v2078_v51 = vmul.f32 1.0614054, %v2045_v53  ;;  %v2049_v8 = vsub.f32 1.0, %v2048_v46  ;;  %2810 = vpow2.f32 %v2121_v56 }
 0x8e2   : > { %2812 = vpow2.f32 %v2123_v25  ;;  %v2071_v61 = vand.u32 2147483647, %v2016_v47  ;;  %vm2067_vm10 = vweird.f32 %v2016_v47  ;;  %v2074_v60 = vor.u32 1.1754944e-38, %v2073_v7 }
 0x8e3   : > { %v2097_v37 = vadd.f32 -0.28449672, %v2093_v48  ;;  %v2082_v54 = vadd.f32 -1.4531521, %v2078_v51  ;;  %v2050_v57 = vmul.f32 %v2807_v11, %v2049_v8  ;;  %v2125_v36 = vmul.f32 1.442695, %v2119_v4 }
 0x8e4   : > { %vm2072_vm12 = vcmp.eq.f32.partialorder %v2071_v61, 8.507059e+37  ;;  %v2000_v61 = vmul.f32 0.5, %v3467_v50 }
 0x8e5   : > { %v2101_v20 = vmul.f32 %v2097_v37, %v2030_v5  ;;  %v2086_v58 = vmul.f32 %v2082_v54, %v2045_v53  ;;  %v2051_v55 = vadd.f32 %v2807_v11, %v2050_v57  ;;  %2814 = vpow2.f32 %v2125_v36 }
 0x8e6   : > { %v2809_v0 = vpop.eup %2808 }
 0x8e7   : > { %v2105_v14 = vadd.f32 0.2548296, %v2101_v20  ;;  %v2090_v24 = vadd.f32 1.4214138, %v2086_v58  ;;  %v2063_v3 = vmul.f32 %v2809_v0, %v2016_v47  ;;  %v2055_v59 = vsel %vm2054_vm7, %v2807_v11, %v2051_v55  ;;  %v2811_v35 = vpop.eup %2810 }
 0x8e8   : > { %v2060_v9 = vsel %vm2057_vm8, %v2059_v2, %v2055_v59  ;;  %vm2068_vm9 = vweird.f32 %v2809_v0  ;;  %v2813_v41 = vpop.eup %2812  ;;  %v2116_v11 = vmul.f32 %v3476_v34, %v3476_v34 }
 0x8e9   : > { %v2109_v42 = vmul.f32 %v2105_v14, %v2030_v5  ;;  %v2094_v38 = vmul.f32 %v2090_v24, %v2045_v53  ;;  %v2064_v12 = vsub.f32 1.0, %v2063_v3  ;;  %v2079_v62 = vmul.f32 1.0614054, %v2060_v9  ;;  %vm2069_vm11 = vmor %vm2067_vm10, %vm2068_vm9 }
 0x8ea   : > { %v2120_v54 = vsub.f32 0.0, %v2116_v11 }
 0x8eb   : > { %v2129_v28 = vmul.f32 %v2811_v35, %v2109_v42  ;;  %v2098_v15 = vadd.f32 -0.28449672, %v2094_v38  ;;  %v2065_v23 = vmul.f32 %v2809_v0, %v2064_v12  ;;  %v2083_v31 = vadd.f32 -1.4531521, %v2079_v62  ;;  %v2815_v25 = vpop.eup %2814 }
 0x8ec   : > { %v2127_v14 = vmul.f32 1.442695, %v2120_v54 }
 0x8ed   : > { %v2133_v18 = vsub.f32 1.0, %v2129_v28  ;;  %v2102_v39 = vmul.f32 %v2098_v15, %v2045_v53  ;;  %v2066_v5 = vadd.f32 %v2809_v0, %v2065_v23  ;;  %v2087_v29 = vmul.f32 %v2083_v31, %v2060_v9 }
 0x8ee   : > { %2816 = vpow2.f32 %v2127_v14  ;;  %v1999_v23 = vmul.f32 0.5, %v3452_v63 }
 0x8ef   : > { %v2106_v16 = vadd.f32 0.2548296, %v2102_v39  ;;  %v2070_v40 = vsel %vm2069_vm11, %v2809_v0, %v2066_v5  ;;  %v2091_v17 = vadd.f32 1.4214138, %v2087_v29  ;;  %v2141_v56 = vsub.f32 0.0, %v2133_v18 }
 0x8f0   : > { %v2075_v19 = vsel %vm2072_vm12, %v2074_v60, %v2070_v40 }
 0x8f1   : > { %v2110_v43 = vmul.f32 %v2106_v16, %v2045_v53  ;;  %v2080_v44 = vmul.f32 1.0614054, %v2075_v19  ;;  %v2095_v48 = vmul.f32 %v2091_v17, %v2060_v9  ;;  %v2145_v37 = vsel %vm2137_vm13, %v2141_v56, %v2133_v18 }
 0x8f2   : > { %v2149_v57 = vadd.f32 1.0, %v2145_v37 }
 0x8f3   : > { %v2130_v46 = vmul.f32 %v2813_v41, %v2110_v43  ;;  %v2084_v47 = vadd.f32 -1.4531521, %v2080_v44  ;;  %v2099_v51 = vadd.f32 -0.28449672, %v2095_v48 }
 0x8f4   : > { %v2153_v2 = vmul.f32 %v2149_v57, %v1997_v26  ;;  %v2817_v12 = vpop.eup %2816 }
 0x8f5   : > { %v2134_v8 = vsub.f32 1.0, %v2130_v46  ;;  %v2088_v49 = vmul.f32 %v2084_v47, %v2075_v19  ;;  %v2103_v52 = vmul.f32 %v2099_v51, %v2060_v9 }
 0x8f7   : > { %v2142_v20 = vsub.f32 0.0, %v2134_v8  ;;  %v2092_v53 = vadd.f32 1.4214138, %v2088_v49  ;;  %v2107_v34 = vadd.f32 0.2548296, %v2103_v52 }
 0x8f9   : > { %v2146_v58 = vsel %vm2138_vm14, %v2142_v20, %v2134_v8  ;;  %v2096_v0 = vmul.f32 %v2092_v53, %v2075_v19  ;;  %v2111_v24 = vmul.f32 %v2107_v34, %v2060_v9 }
 0x8fa   : > { %v2150_v55 = vadd.f32 1.0, %v2146_v58 }
 0x8fb   : > { %v2100_v42 = vadd.f32 -0.28449672, %v2096_v0  ;;  %v2131_v3 = vmul.f32 %v2815_v25, %v2111_v24 }
 0x8fc   : > { %v2154_v45 = vmul.f32 %v2150_v55, %v1998_v21 }
 0x8fd   : > { %v2104_v35 = vmul.f32 %v2100_v42, %v2075_v19  ;;  %v2135_v32 = vsub.f32 1.0, %v2131_v3 }
 0x8fe   : > { %v2157_v59 = vpack.c.bf16 %v2154_v45, %v2153_v2 }
 0x8ff   : > { %v2108_v38 = vadd.f32 0.2548296, %v2104_v35  ;;  %v2143_v13 = vsub.f32 0.0, %v2135_v32 }
 0x900   : > { %2218 = vmatmul.bf16.vlgmr.msrb.gmra.mxu3 %v2157_v59 }
 0x901   : > { %v2112_v28 = vmul.f32 %v2108_v38, %v2075_v19  ;;  %v2147_v9 = vsel %vm2139_vm15, %v2143_v13, %v2135_v32 }
 0x902   : > { %v2151_v4 = vadd.f32 1.0, %v2147_v9 }
 0x903   : > { %v2132_v62 = vmul.f32 %v2817_v12, %v2112_v28 }
 0x904   : > { %v2155_v18 = vmul.f32 %v2151_v4, %v1999_v23 }
 0x905   : > { %v2136_v30 = vsub.f32 1.0, %v2132_v62 }
 0x907   : > { %v2144_v15 = vsub.f32 0.0, %v2136_v30 }
 0x909   : > { %v2148_v7 = vsel %vm2140_vm0, %v2144_v15, %v2136_v30 }
 0x90a   : > { %v2152_v31 = vadd.f32 1.0, %v2148_v7 }
 0x90c   : > { %v2156_v39 = vmul.f32 %v2152_v31, %v2000_v61 }
 0x90e   : > { %v2158_v5 = vpack.c.bf16 %v2156_v39, %v2155_v18 }
 0x910   : > { %2223 = vmatmul.bf16.gmra.mxu3 %v2158_v5 }
 0x983   : > { %v2219_v29 = vpop.f32.mrf.mxu3 }
 0x984   : > { %v2220_v16 = vadd.f32 %v2721_v1, %v2219_v29 }
 0x986   : > { %v2229_v63 = vadd.f32 %v2220_v16, %v3352_v33 }
 0x988   : > { %2233 = vst [vmem:[%s442_s23] sm:$0xff] %v2229_v63 }
 0x98b   : > { %v2221_v50 = vpop.f32.mrf.mxu3 }
 0x98c   : > { %v2222_v6 = vadd.f32 %v2721_v1, %v2221_v50 }
 0x98e   : > { %v2230_v60 = vadd.f32 %v2222_v6, %v3356_v27 }
 0x990   : > { %2234 = vst [vmem:[%s442_s23 + $0x8] sm:$0xff] %v2230_v60 }
 0x993   : > { %v2224_v36 = vpop.f32.mrf.mxu3 }
 0x994   : > { %v2225_v40 = vadd.f32 %v2721_v1, %v2224_v36 }
 0x996   : > { %v2231_v17 = vadd.f32 %v2225_v40, %v3360_v10 }
 0x998   : > { %2235 = vst [vmem:[%s442_s23 + $0x10] sm:$0xff] %v2231_v17 }
 0x99b   : > { %v2226_v41 = vpop.f32.mrf.mxu3 }
 0x99c   : > { %v2227_v56 = vadd.f32 %v2721_v1, %v2226_v41 }
 0x99e   : > { %v2232_v43 = vadd.f32 %v2227_v56, %v3364_v22 }
 0x9a0   : > { %2236 = vst [vmem:[%s442_s23 + $0x18] sm:$0xff] %v2232_v43 }
 0x9a1 PF: > { %s23_s25 = sadd.s32 1, %s2824_s25  }
 0x9a2   : > { %p20_p4 = scmp.ge.s32.totalorder %s23_s25, 4  }
 0x9a4   :  { %22 = sbr.rel (!%p20_p4) target bundleno = 1 (0x1), region = 114 }

</bundles_post_ra>
